<compile_context>
chip_gen: v5e
topology: v5e:2x2
jax: 0.10.0
libtpu: 0.0.40
codegen_flags: <defaults>
</compile_context>

<pallas_src>
import jax
import jax.numpy as jnp
from jax.experimental import pallas as pl
from jax.experimental.pallas import tpu as pltpu

INPUT_DIM = 768      # fixed by NodeAttention's view(batch, 48, 16)
LATENT_DIM = 48
NUM_CLASSES = 3
NUM_NODES = 48
NODE_FEAT = 16       # 48 * 16 == 768

LATENT_PAD = 128     # lane-dense padded latent width
LOGIT_PAD = 128      # packed z|logits output width (z: lanes 0..47, logits: 48..50)
TB_MAX = 512         # max batch rows per grid step
TB_SPLIT = 256       # force >= 2 grid steps above this batch (v7x megacore)


def _cdiv(a, b):
    return -(-a // b)


def _round_up(n, m):
    return ((n + m - 1) // m) * m


def _attention_full_kernel(
    x_ref,
    w1, b1, w2, b2, w3, b3,      # encoder (alphas folded into w1)
    w45, b45,                    # fused dec0 | cls0  (shared LHS = z)
    w5, b5, w6, b6,              # decoder tail
    wc2, bc2,                    # classifier head (output shifted to lanes 48..50)
    recon_ref, zl_ref,
):
    f32 = jnp.float32
    bf16 = jnp.bfloat16

    def mm(h_bf16, w, b):
        # bf16 x bf16 on the MXU, f32 accumulate; bias add stays f32 (VPU).
        return jnp.dot(h_bf16, w[...], preferred_element_type=f32) + b[...]

    def relu(v):
        return jnp.maximum(v, 0.0)

    xb = x_ref[...].astype(bf16)                    # (tb, 768)

    # Encoder (Dropout == identity at inference).
    h = relu(mm(xb, w1, b1)).astype(bf16)           # (tb, 512)
    h = relu(mm(h, w2, b2)).astype(bf16)            # (tb, 256)
    z = mm(h, w3, b3)                               # (tb, 128) f32; lanes 48.. are 0

    zb = z.astype(bf16)                             # single bf16 cast of z
    dc = relu(mm(zb, w45, b45))                     # (tb, 384) = dec0(z) | cls0(z)
    d = dc[:, :256].astype(bf16)                    # lane-aligned split (256 = 2*128)
    c = dc[:, 256:].astype(bf16)

    # Decoder tail.
    d = relu(mm(d, w5, b5)).astype(bf16)            # (tb, 512)
    recon = mm(d, w6, b6)                           # (tb, 768) f32

    # Classifier head; wc2/bc2 were pre-shifted so logits land in lanes 48..50,
    # all other lanes are exactly zero.
    logits = mm(c, wc2, bc2)                        # (tb, 128)

    recon_ref[...] = recon.astype(recon_ref.dtype)
    # z lanes 48.. are zero and logits lanes 0..47 / 51.. are zero -> packing by add.
    zl_ref[...] = (z + logits).astype(zl_ref.dtype)


def init_params(key):
    """Deterministic synthetic parameters (weights stored as (in, out))."""
    dims_enc = [(INPUT_DIM, 512), (512, 256), (256, LATENT_DIM)]
    dims_dec = [(LATENT_DIM, 256), (256, 512), (512, INPUT_DIM)]
    dims_cls = [(LATENT_DIM, 128), (128, NUM_CLASSES)]

    params = {}
    keys = jax.random.split(key, 2 * (len(dims_enc) + len(dims_dec) + len(dims_cls)) + 1)
    ki = 0

    def mk_linear(name, d_in, d_out):
        nonlocal ki
        scale = 1.0 / jnp.sqrt(jnp.float32(d_in))
        w = jax.random.uniform(keys[ki], (d_in, d_out), jnp.float32, -scale, scale)
        ki += 1
        b = jax.random.uniform(keys[ki], (1, d_out), jnp.float32, -scale, scale)
        ki += 1
        params[name] = (w, b)

    for i, (di, do) in enumerate(dims_enc):
        mk_linear(f"enc{i}", di, do)
    for i, (di, do) in enumerate(dims_dec):
        mk_linear(f"dec{i}", di, do)
    for i, (di, do) in enumerate(dims_cls):
        mk_linear(f"cls{i}", di, do)

    # NodeAttention alphas: module initializes to ones; perturb deterministically
    # so the attention path is exercised.
    alphas = 1.0 + 0.1 * jax.random.normal(keys[ki], (NUM_NODES,), jnp.float32)
    params["alphas"] = alphas
    return params


def _prep_params(params):
    """Fold alphas into enc0, pad/fuse/shift for lane-dense layout, cast weights bf16.

    NOTE: if alphas (or any weight) are updated at runtime, re-run this fold.
    """
    alpha_vec = jnp.repeat(params["alphas"].astype(jnp.float32), NODE_FEAT)  # (768,)

    def wb(name):
        w, b = params[name]
        return w.astype(jnp.float32), b.astype(jnp.float32)

    w1, b1 = wb("enc0"); w2, b2 = wb("enc1"); w3, b3 = wb("enc2")
    w4, b4 = wb("dec0"); w5, b5 = wb("dec1"); w6, b6 = wb("dec2")
    wc1, bc1 = wb("cls0"); wc2, bc2 = wb("cls1")

    # NodeAttention fold (exact): (x * alpha_vec) @ W1 == x @ (diag(alpha_vec) @ W1).
    w1 = alpha_vec[:, None] * w1

    # Lane-dense latent padding: 48 -> 128 (zero weights/bias, so z lanes 48.. == 0).
    w3 = jnp.pad(w3, ((0, 0), (0, LATENT_PAD - LATENT_DIM)))
    b3 = jnp.pad(b3, ((0, 0), (0, LATENT_PAD - LATENT_DIM)))
    w4 = jnp.pad(w4, ((0, LATENT_PAD - LATENT_DIM), (0, 0)))
    wc1 = jnp.pad(wc1, ((0, LATENT_PAD - LATENT_DIM), (0, 0)))

    # Fuse dec0 (128->256) and cls0 (128->128): same LHS (z), one MXU pass.
    w45 = jnp.concatenate([w4, wc1], axis=1)          # (128, 384)
    b45 = jnp.concatenate([b4, bc1], axis=1)          # (1, 384)

    # Shift the classifier head so logits land in lanes 48..50 of the packed
    # (z | logits) output; all other output lanes are exactly zero.
    wc2 = jnp.pad(wc2, ((0, 0), (LATENT_DIM, LOGIT_PAD - LATENT_DIM - NUM_CLASSES)))
    bc2 = jnp.pad(bc2, ((0, 0), (LATENT_DIM, LOGIT_PAD - LATENT_DIM - NUM_CLASSES)))

    weights = [w1, w2, w3, w45, w5, w6, wc2]
    biases = [b1, b2, b3, b45, b5, b6, bc2]
    flat = []
    for w, b in zip(weights, biases):
        flat += [w.astype(jnp.bfloat16), b]            # weights bf16, biases f32
    return flat


def attention_full_model(x, params, *, recon_dtype=jnp.bfloat16):
    """x: (B, 768) -> (x_recon (B,768) [recon_dtype], z (B,48) f32, logits (B,3) f32)."""
    B, D = x.shape
    assert D == INPUT_DIM
    flat = _prep_params(params)

    # Tile sizing: minimize padded rows (nt tiles of ~B/nt rows), cap tiles at
    # TB_MAX, and force >= 2 grid steps once B > TB_SPLIT so both TensorCores
    # get work on v7x.  tb is a multiple of 8 sublanes.
    nt = max(_cdiv(B, TB_MAX), 2 if B > TB_SPLIT else 1)
    tb = _round_up(_cdiv(B, nt), 8)
    Bp = nt * tb
    if Bp != B:
        x = jnp.pad(x, ((0, Bp - B), (0, 0)))

    # Activation tiles stream over the batch grid; weights/biases use a constant
    # index_map so they are DMA'd once and stay VMEM-resident across grid steps.
    x_spec = pl.BlockSpec((tb, INPUT_DIM), lambda i: (i, 0))
    const_specs = [pl.BlockSpec(p.shape, lambda i: (0, 0)) for p in flat]

    out_shape = (
        jax.ShapeDtypeStruct((Bp, INPUT_DIM), recon_dtype),   # recon (bf16 by default)
        jax.ShapeDtypeStruct((Bp, LOGIT_PAD), jnp.float32),   # packed z | logits
    )
    out_specs = (
        pl.BlockSpec((tb, INPUT_DIM), lambda i: (i, 0)),
        pl.BlockSpec((tb, LOGIT_PAD), lambda i: (i, 0)),
    )

    layer_dims = [(INPUT_DIM, 512), (512, 256), (256, LATENT_PAD),
                  (LATENT_PAD, 384), (256, 512), (512, INPUT_DIM),
                  (128, LOGIT_PAD)]
    flops = 2 * Bp * sum(k * n for k, n in layer_dims)
    weight_bytes = sum(int(p.size) * p.dtype.itemsize for p in flat)
    act_bytes = Bp * (x.dtype.itemsize * INPUT_DIM
                      + jnp.dtype(recon_dtype).itemsize * INPUT_DIM
                      + 4 * LOGIT_PAD)
    cost = pl.CostEstimate(flops=int(flops), transcendentals=0,
                           bytes_accessed=int(weight_bytes + act_bytes))

    recon, zl = pl.pallas_call(
        _attention_full_kernel,
        grid=(nt,),
        out_shape=out_shape,
        in_specs=[x_spec] + const_specs,
        out_specs=out_specs,
        compiler_params=pltpu.CompilerParams(
            dimension_semantics=("parallel",),   # shard batch grid over TCs (v7x)
            vmem_limit_bytes=48 << 20,           # fits tb=512 tiles; <= v7x 64 MiB phys
        ),
        cost_estimate=cost,
    )(x, *flat)

    z = zl[:B, :LATENT_DIM]
    logits = zl[:B, LATENT_DIM:LATENT_DIM + NUM_CLASSES]
    return recon[:B], z, logits


def _reference(x, params):
    """Pure-JAX f32 reference mirroring the PyTorch module."""
    alpha_vec = jnp.repeat(params["alphas"], NODE_FEAT).reshape(1, INPUT_DIM)
    h = x * alpha_vec
    relu = lambda v: jnp.maximum(v, 0.0)
    lin = lambda v, p: v @ p[0] + p[1]
    h1 = relu(lin(h, params["enc0"]))
    h2 = relu(lin(h1, params["enc1"]))
    z = lin(h2, params["enc2"])
    d1 = relu(lin(z, params["dec0"]))
    d2 = relu(lin(d1, params["dec1"]))
    recon = lin(d2, params["dec2"])
    c = relu(lin(z, params["cls0"]))
    logits = lin(c, params["cls1"])
    return recon, z, logits


def _check(x, params, atol=5e-2, rtol=5e-2):
    recon, z, logits = attention_full_model(x, params)
    jax.block_until_ready((recon, z, logits))
    r_recon, r_z, r_logits = _reference(x, params)
    B = x.shape[0]
    assert recon.shape == (B, INPUT_DIM)
    assert z.shape == (B, LATENT_DIM)
    assert logits.shape == (B, NUM_CLASSES)
    # bf16 weights/activations (and bf16 recon store) -> loosened tolerance.
    assert jnp.allclose(recon.astype(jnp.float32), r_recon, atol=atol, rtol=rtol)
    assert jnp.allclose(z, r_z, atol=atol, rtol=rtol)
    assert jnp.allclose(logits, r_logits, atol=atol, rtol=rtol)
    return recon, z, logits


if __name__ == "__main__":
    key = jax.random.PRNGKey(0)
    k_param, k_x1, k_x2 = jax.random.split(key, 3)
    params = init_params(k_param)

    # Small batch (single tile, tb=8).
    x_small = jax.random.normal(k_x1, (8, INPUT_DIM), jnp.float32)
    _check(x_small, params)

    # Odd batch > TB_SPLIT: exercises the 2-step grid (2 x 136 rows, ~3% pad),
    # row padding and the megacore-friendly tiling path.
    x_big = jax.random.normal(k_x2, (264, INPUT_DIM), jnp.float32)
    _check(x_big, params)

    print("KERNEL_OK")
</pallas_src>

<mosaic_0001>
module attributes {stable_mosaic.version = 11 : i64} {
  func.func @_attention_full_kernel(%arg0: i32, %arg1: memref<8x768xf32, #tpu.memory_space<vmem>>, %arg2: memref<768x512xbf16, #tpu.memory_space<vmem>>, %arg3: memref<1x512xf32, #tpu.memory_space<vmem>>, %arg4: memref<512x256xbf16, #tpu.memory_space<vmem>>, %arg5: memref<1x256xf32, #tpu.memory_space<vmem>>, %arg6: memref<256x128xbf16, #tpu.memory_space<vmem>>, %arg7: memref<1x128xf32, #tpu.memory_space<vmem>>, %arg8: memref<128x384xbf16, #tpu.memory_space<vmem>>, %arg9: memref<1x384xf32, #tpu.memory_space<vmem>>, %arg10: memref<256x512xbf16, #tpu.memory_space<vmem>>, %arg11: memref<1x512xf32, #tpu.memory_space<vmem>>, %arg12: memref<512x768xbf16, #tpu.memory_space<vmem>>, %arg13: memref<1x768xf32, #tpu.memory_space<vmem>>, %arg14: memref<128x128xbf16, #tpu.memory_space<vmem>>, %arg15: memref<1x128xf32, #tpu.memory_space<vmem>>, %arg16: memref<8x768xbf16, #tpu.memory_space<vmem>>, %arg17: memref<8x128xf32, #tpu.memory_space<vmem>>) attributes {dimension_semantics = [#tpu.dimension_semantics<parallel>], iteration_bounds = array<i64: 1>, scalar_prefetch = 0 : i64, scratch_operands = 0 : i64, tpu.core_type = #tpu.core_type<tc>, window_params = [{transform_indices = @transform_0, window_bounds = array<i64: 8, 768>}, {pipeline_mode = #tpu.pipeline_mode<synchronous>, transform_indices = @transform_1, window_bounds = array<i64: 768, 512>}, {pipeline_mode = #tpu.pipeline_mode<synchronous>, transform_indices = @transform_2, window_bounds = array<i64: 1, 512>}, {pipeline_mode = #tpu.pipeline_mode<synchronous>, transform_indices = @transform_3, window_bounds = array<i64: 512, 256>}, {pipeline_mode = #tpu.pipeline_mode<synchronous>, transform_indices = @transform_4, window_bounds = array<i64: 1, 256>}, {pipeline_mode = #tpu.pipeline_mode<synchronous>, transform_indices = @transform_5, window_bounds = array<i64: 256, 128>}, {pipeline_mode = #tpu.pipeline_mode<synchronous>, transform_indices = @transform_6, window_bounds = array<i64: 1, 128>}, {pipeline_mode = #tpu.pipeline_mode<synchronous>, transform_indices = @transform_7, window_bounds = array<i64: 128, 384>}, {pipeline_mode = #tpu.pipeline_mode<synchronous>, transform_indices = @transform_8, window_bounds = array<i64: 1, 384>}, {pipeline_mode = #tpu.pipeline_mode<synchronous>, transform_indices = @transform_9, window_bounds = array<i64: 256, 512>}, {pipeline_mode = #tpu.pipeline_mode<synchronous>, transform_indices = @transform_10, window_bounds = array<i64: 1, 512>}, {pipeline_mode = #tpu.pipeline_mode<synchronous>, transform_indices = @transform_11, window_bounds = array<i64: 512, 768>}, {pipeline_mode = #tpu.pipeline_mode<synchronous>, transform_indices = @transform_12, window_bounds = array<i64: 1, 768>}, {pipeline_mode = #tpu.pipeline_mode<synchronous>, transform_indices = @transform_13, window_bounds = array<i64: 128, 128>}, {pipeline_mode = #tpu.pipeline_mode<synchronous>, transform_indices = @transform_14, window_bounds = array<i64: 1, 128>}, {transform_indices = @transform_15, window_bounds = array<i64: 8, 768>}, {transform_indices = @transform_16, window_bounds = array<i64: 8, 128>}]} {
    %c0 = arith.constant 0 : index
    %c0_0 = arith.constant 0 : index
    %0 = vector.load %arg1[%c0, %c0_0] : memref<8x768xf32, #tpu.memory_space<vmem>>, vector<8x768xf32>
    %1 = arith.truncf %0 : vector<8x768xf32> to vector<8x768xbf16>
    %c0_1 = arith.constant 0 : index
    %c0_2 = arith.constant 0 : index
    %2 = vector.load %arg2[%c0_1, %c0_2] : memref<768x512xbf16, #tpu.memory_space<vmem>>, vector<768x512xbf16>
    %cst = arith.constant dense<0.000000e+00> : vector<8x512xf32>
    %3 = tpu.matmul %1, %2, %cst {dimension_numbers = #tpu.dot_dimension_numbers<[1], [0], [0], [1], [0, 0, 1, 1], [], []>} : vector<8x768xbf16>, vector<768x512xbf16>, vector<8x512xf32> -> vector<8x512xf32>
    %c0_3 = arith.constant 0 : index
    %c0_4 = arith.constant 0 : index
    %4 = vector.load %arg3[%c0_3, %c0_4] : memref<1x512xf32, #tpu.memory_space<vmem>>, vector<1x512xf32>
    %5 = vector.broadcast %4 : vector<1x512xf32> to vector<8x512xf32>
    %6 = arith.addf %3, %5 : vector<8x512xf32>
    %cst_5 = arith.constant 0.000000e+00 : f32
    %7 = vector.broadcast %cst_5 : f32 to vector<8x512xf32>
    %8 = arith.maximumf %6, %7 : vector<8x512xf32>
    %9 = arith.truncf %8 : vector<8x512xf32> to vector<8x512xbf16>
    %c0_6 = arith.constant 0 : index
    %c0_7 = arith.constant 0 : index
    %10 = vector.load %arg4[%c0_6, %c0_7] : memref<512x256xbf16, #tpu.memory_space<vmem>>, vector<512x256xbf16>
    %cst_8 = arith.constant dense<0.000000e+00> : vector<8x256xf32>
    %11 = tpu.matmul %9, %10, %cst_8 {dimension_numbers = #tpu.dot_dimension_numbers<[1], [0], [0], [1], [0, 0, 1, 1], [], []>} : vector<8x512xbf16>, vector<512x256xbf16>, vector<8x256xf32> -> vector<8x256xf32>
    %c0_9 = arith.constant 0 : index
    %c0_10 = arith.constant 0 : index
    %12 = vector.load %arg5[%c0_9, %c0_10] : memref<1x256xf32, #tpu.memory_space<vmem>>, vector<1x256xf32>
    %13 = vector.broadcast %12 : vector<1x256xf32> to vector<8x256xf32>
    %14 = arith.addf %11, %13 : vector<8x256xf32>
    %cst_11 = arith.constant 0.000000e+00 : f32
    %15 = vector.broadcast %cst_11 : f32 to vector<8x256xf32>
    %16 = arith.maximumf %14, %15 : vector<8x256xf32>
    %17 = arith.truncf %16 : vector<8x256xf32> to vector<8x256xbf16>
    %c0_12 = arith.constant 0 : index
    %c0_13 = arith.constant 0 : index
    %18 = vector.load %arg6[%c0_12, %c0_13] : memref<256x128xbf16, #tpu.memory_space<vmem>>, vector<256x128xbf16>
    %cst_14 = arith.constant dense<0.000000e+00> : vector<8x128xf32>
    %19 = tpu.matmul %17, %18, %cst_14 {dimension_numbers = #tpu.dot_dimension_numbers<[1], [0], [0], [1], [0, 0, 1, 1], [], []>} : vector<8x256xbf16>, vector<256x128xbf16>, vector<8x128xf32> -> vector<8x128xf32>
    %c0_15 = arith.constant 0 : index
    %c0_16 = arith.constant 0 : index
    %20 = vector.load %arg7[%c0_15, %c0_16] : memref<1x128xf32, #tpu.memory_space<vmem>>, vector<1x128xf32>
    %21 = vector.broadcast %20 : vector<1x128xf32> to vector<8x128xf32>
    %22 = arith.addf %19, %21 : vector<8x128xf32>
    %23 = arith.truncf %22 : vector<8x128xf32> to vector<8x128xbf16>
    %c0_17 = arith.constant 0 : index
    %c0_18 = arith.constant 0 : index
    %24 = vector.load %arg8[%c0_17, %c0_18] : memref<128x384xbf16, #tpu.memory_space<vmem>>, vector<128x384xbf16>
    %cst_19 = arith.constant dense<0.000000e+00> : vector<8x384xf32>
    %25 = tpu.matmul %23, %24, %cst_19 {dimension_numbers = #tpu.dot_dimension_numbers<[1], [0], [0], [1], [0, 0, 1, 1], [], []>} : vector<8x128xbf16>, vector<128x384xbf16>, vector<8x384xf32> -> vector<8x384xf32>
    %c0_20 = arith.constant 0 : index
    %c0_21 = arith.constant 0 : index
    %26 = vector.load %arg9[%c0_20, %c0_21] : memref<1x384xf32, #tpu.memory_space<vmem>>, vector<1x384xf32>
    %27 = vector.broadcast %26 : vector<1x384xf32> to vector<8x384xf32>
    %28 = arith.addf %25, %27 : vector<8x384xf32>
    %cst_22 = arith.constant 0.000000e+00 : f32
    %29 = vector.broadcast %cst_22 : f32 to vector<8x384xf32>
    %30 = arith.maximumf %28, %29 : vector<8x384xf32>
    %31 = vector.extract_strided_slice %30 {offsets = [0, 0], sizes = [8, 256], strides = [1, 1]} : vector<8x384xf32> to vector<8x256xf32>
    %32 = arith.truncf %31 : vector<8x256xf32> to vector<8x256xbf16>
    %33 = vector.extract_strided_slice %30 {offsets = [0, 256], sizes = [8, 128], strides = [1, 1]} : vector<8x384xf32> to vector<8x128xf32>
    %34 = arith.truncf %33 : vector<8x128xf32> to vector<8x128xbf16>
    %c0_23 = arith.constant 0 : index
    %c0_24 = arith.constant 0 : index
    %35 = vector.load %arg10[%c0_23, %c0_24] : memref<256x512xbf16, #tpu.memory_space<vmem>>, vector<256x512xbf16>
    %cst_25 = arith.constant dense<0.000000e+00> : vector<8x512xf32>
    %36 = tpu.matmul %32, %35, %cst_25 {dimension_numbers = #tpu.dot_dimension_numbers<[1], [0], [0], [1], [0, 0, 1, 1], [], []>} : vector<8x256xbf16>, vector<256x512xbf16>, vector<8x512xf32> -> vector<8x512xf32>
    %c0_26 = arith.constant 0 : index
    %c0_27 = arith.constant 0 : index
    %37 = vector.load %arg11[%c0_26, %c0_27] : memref<1x512xf32, #tpu.memory_space<vmem>>, vector<1x512xf32>
    %38 = vector.broadcast %37 : vector<1x512xf32> to vector<8x512xf32>
    %39 = arith.addf %36, %38 : vector<8x512xf32>
    %cst_28 = arith.constant 0.000000e+00 : f32
    %40 = vector.broadcast %cst_28 : f32 to vector<8x512xf32>
    %41 = arith.maximumf %39, %40 : vector<8x512xf32>
    %42 = arith.truncf %41 : vector<8x512xf32> to vector<8x512xbf16>
    %c0_29 = arith.constant 0 : index
    %c0_30 = arith.constant 0 : index
    %43 = vector.load %arg12[%c0_29, %c0_30] : memref<512x768xbf16, #tpu.memory_space<vmem>>, vector<512x768xbf16>
    %cst_31 = arith.constant dense<0.000000e+00> : vector<8x768xf32>
    %44 = tpu.matmul %42, %43, %cst_31 {dimension_numbers = #tpu.dot_dimension_numbers<[1], [0], [0], [1], [0, 0, 1, 1], [], []>} : vector<8x512xbf16>, vector<512x768xbf16>, vector<8x768xf32> -> vector<8x768xf32>
    %c0_32 = arith.constant 0 : index
    %c0_33 = arith.constant 0 : index
    %45 = vector.load %arg13[%c0_32, %c0_33] : memref<1x768xf32, #tpu.memory_space<vmem>>, vector<1x768xf32>
    %46 = vector.broadcast %45 : vector<1x768xf32> to vector<8x768xf32>
    %47 = arith.addf %44, %46 : vector<8x768xf32>
    %c0_34 = arith.constant 0 : index
    %c0_35 = arith.constant 0 : index
    %48 = vector.load %arg14[%c0_34, %c0_35] : memref<128x128xbf16, #tpu.memory_space<vmem>>, vector<128x128xbf16>
    %cst_36 = arith.constant dense<0.000000e+00> : vector<8x128xf32>
    %49 = tpu.matmul %34, %48, %cst_36 {dimension_numbers = #tpu.dot_dimension_numbers<[1], [0], [0], [1], [0, 0, 1, 1], [], []>} : vector<8x128xbf16>, vector<128x128xbf16>, vector<8x128xf32> -> vector<8x128xf32>
    %c0_37 = arith.constant 0 : index
    %c0_38 = arith.constant 0 : index
    %50 = vector.load %arg15[%c0_37, %c0_38] : memref<1x128xf32, #tpu.memory_space<vmem>>, vector<1x128xf32>
    %51 = vector.broadcast %50 : vector<1x128xf32> to vector<8x128xf32>
    %52 = arith.addf %49, %51 : vector<8x128xf32>
    %53 = arith.truncf %47 : vector<8x768xf32> to vector<8x768xbf16>
    %c0_39 = arith.constant 0 : index
    %c0_40 = arith.constant 0 : index
    %54 = vector.load %arg16[%c0_39, %c0_40] : memref<8x768xbf16, #tpu.memory_space<vmem>>, vector<8x768xbf16>
    tpu.vector_store %arg16[%c0_39, %c0_40], %53 {strides = array<i32>} : memref<8x768xbf16, #tpu.memory_space<vmem>>, vector<8x768xbf16>,
    %55 = arith.addf %22, %52 : vector<8x128xf32>
    %c0_41 = arith.constant 0 : index
    %c0_42 = arith.constant 0 : index
    %56 = vector.load %arg17[%c0_41, %c0_42] : memref<8x128xf32, #tpu.memory_space<vmem>>, vector<8x128xf32>
    tpu.vector_store %arg17[%c0_41, %c0_42], %55 {strides = array<i32>} : memref<8x128xf32, #tpu.memory_space<vmem>>, vector<8x128xf32>,
    return
  }
  func.func @transform_0(%arg0: i32) -> (i32, i32) {
    %c0_i32 = arith.constant 0 : i32
    %c0_i32_0 = arith.constant 0 : i32
    return %arg0, %c0_i32 : i32, i32
  }
  func.func @transform_1(%arg0: i32) -> (i32, i32) {
    %c0_i32 = arith.constant 0 : i32
    %c0_i32_0 = arith.constant 0 : i32
    %c0_i32_1 = arith.constant 0 : i32
    return %c0_i32, %c0_i32_0 : i32, i32
  }
  func.func @transform_2(%arg0: i32) -> (i32, i32) {
    %c0_i32 = arith.constant 0 : i32
    %c0_i32_0 = arith.constant 0 : i32
    %c0_i32_1 = arith.constant 0 : i32
    return %c0_i32, %c0_i32_0 : i32, i32
  }
  func.func @transform_3(%arg0: i32) -> (i32, i32) {
    %c0_i32 = arith.constant 0 : i32
    %c0_i32_0 = arith.constant 0 : i32
    %c0_i32_1 = arith.constant 0 : i32
    return %c0_i32, %c0_i32_0 : i32, i32
  }
  func.func @transform_4(%arg0: i32) -> (i32, i32) {
    %c0_i32 = arith.constant 0 : i32
    %c0_i32_0 = arith.constant 0 : i32
    %c0_i32_1 = arith.constant 0 : i32
    return %c0_i32, %c0_i32_0 : i32, i32
  }
  func.func @transform_5(%arg0: i32) -> (i32, i32) {
    %c0_i32 = arith.constant 0 : i32
    %c0_i32_0 = arith.constant 0 : i32
    %c0_i32_1 = arith.constant 0 : i32
    return %c0_i32, %c0_i32_0 : i32, i32
  }
  func.func @transform_6(%arg0: i32) -> (i32, i32) {
    %c0_i32 = arith.constant 0 : i32
    %c0_i32_0 = arith.constant 0 : i32
    %c0_i32_1 = arith.constant 0 : i32
    return %c0_i32, %c0_i32_0 : i32, i32
  }
  func.func @transform_7(%arg0: i32) -> (i32, i32) {
    %c0_i32 = arith.constant 0 : i32
    %c0_i32_0 = arith.constant 0 : i32
    %c0_i32_1 = arith.constant 0 : i32
    return %c0_i32, %c0_i32_0 : i32, i32
  }
  func.func @transform_8(%arg0: i32) -> (i32, i32) {
    %c0_i32 = arith.constant 0 : i32
    %c0_i32_0 = arith.constant 0 : i32
    %c0_i32_1 = arith.constant 0 : i32
    return %c0_i32, %c0_i32_0 : i32, i32
  }
  func.func @transform_9(%arg0: i32) -> (i32, i32) {
    %c0_i32 = arith.constant 0 : i32
    %c0_i32_0 = arith.constant 0 : i32
    %c0_i32_1 = arith.constant 0 : i32
    return %c0_i32, %c0_i32_0 : i32, i32
  }
  func.func @transform_10(%arg0: i32) -> (i32, i32) {
    %c0_i32 = arith.constant 0 : i32
    %c0_i32_0 = arith.constant 0 : i32
    %c0_i32_1 = arith.constant 0 : i32
    return %c0_i32, %c0_i32_0 : i32, i32
  }
  func.func @transform_11(%arg0: i32) -> (i32, i32) {
    %c0_i32 = arith.constant 0 : i32
    %c0_i32_0 = arith.constant 0 : i32
    %c0_i32_1 = arith.constant 0 : i32
    return %c0_i32, %c0_i32_0 : i32, i32
  }
  func.func @transform_12(%arg0: i32) -> (i32, i32) {
    %c0_i32 = arith.constant 0 : i32
    %c0_i32_0 = arith.constant 0 : i32
    %c0_i32_1 = arith.constant 0 : i32
    return %c0_i32, %c0_i32_0 : i32, i32
  }
  func.func @transform_13(%arg0: i32) -> (i32, i32) {
    %c0_i32 = arith.constant 0 : i32
    %c0_i32_0 = arith.constant 0 : i32
    %c0_i32_1 = arith.constant 0 : i32
    return %c0_i32, %c0_i32_0 : i32, i32
  }
  func.func @transform_14(%arg0: i32) -> (i32, i32) {
    %c0_i32 = arith.constant 0 : i32
    %c0_i32_0 = arith.constant 0 : i32
    %c0_i32_1 = arith.constant 0 : i32
    return %c0_i32, %c0_i32_0 : i32, i32
  }
  func.func @transform_15(%arg0: i32) -> (i32, i32) {
    %c0_i32 = arith.constant 0 : i32
    %c0_i32_0 = arith.constant 0 : i32
    return %arg0, %c0_i32 : i32, i32
  }
  func.func @transform_16(%arg0: i32) -> (i32, i32) {
    %c0_i32 = arith.constant 0 : i32
    %c0_i32_0 = arith.constant 0 : i32
    return %arg0, %c0_i32 : i32, i32
  }
}

</mosaic_0001>

<bundles_post_ra>
// kernel: tpu_custom_call.1
= control target key start
LH: loop header
LB: loop body
LE: loop exit
PB: predicated region body
PF: predicated region fallthrough
CT: control target
= control target key end

     0   :  { %s8153_s0 = inlined_call_operand.hbm [shape: f32[8,768], index: 0, kind: input, shape index: {}]   ;;  %s8154_s1 = inlined_call_operand.hbm [shape: bf16[768,512], index: 1, kind: input, shape index: {}]   ;;  %s8155_s2 = inlined_call_operand.hbm [shape: f32[1,512], index: 2, kind: input, shape index: {}]   ;;  %s8156_s3 = inlined_call_operand.hbm [shape: bf16[512,256], index: 3, kind: input, shape index: {}]   ;;  %s8157_s4 = inlined_call_operand.hbm [shape: f32[1,256], index: 4, kind: input, shape index: {}]   ;;  %s8158_s5 = inlined_call_operand.hbm [shape: bf16[256,128], index: 5, kind: input, shape index: {}]   ;;  %s8159_s6 = inlined_call_operand.vmem [shape: f32[1,128], index: 6, kind: input, shape index: {}]   ;;  %s8160_s7 = inlined_call_operand.hbm [shape: bf16[128,384], index: 7, kind: input, shape index: {}]   ;;  %s8161_s8 = inlined_call_operand.hbm [shape: f32[1,384], index: 8, kind: input, shape index: {}]   ;;  %s8162_s9 = inlined_call_operand.hbm [shape: bf16[256,512], index: 9, kind: input, shape index: {}]   ;;  %s8163_s10 = inlined_call_operand.vmem [shape: f32[1,512], index: 10, kind: input, shape index: {}]   ;;  %s8164_s11 = inlined_call_operand.hbm [shape: bf16[512,768], index: 11, kind: input, shape index: {}]   ;;  %s8165_s12 = inlined_call_operand.vmem [shape: f32[1,768], index: 12, kind: input, shape index: {}]   ;;  %s8166_s13 = inlined_call_operand.hbm [shape: bf16[128,128], index: 13, kind: input, shape index: {}]   ;;  %s8167_s14 = inlined_call_operand.vmem [shape: f32[1,128], index: 14, kind: input, shape index: {}]   ;;  %s8168_s15 = inlined_call_operand.hbm [shape: bf16[8,768], index: 15, kind: output, shape index: {0}]   ;;  %s8169_s16 = inlined_call_operand.hbm [shape: f32[8,128], index: 16, kind: output, shape index: {1}]  }
   0x1   :  { %8172 = sst [smem:[#allocation31_spill]] %s8153_s0 }
   0x2   :  { %22 = vsyncpa [#allocation3], 0 }
   0x3   :  { %23 = vsyncpa [#allocation6], 0 }
   0x4   :  { %24 = vsyncpa [#allocation9], 0 }
   0x5   :  { %25 = vsyncpa [#allocation12], 0 }
   0x6   :  { %26 = vsyncpa [#allocation15], 0 }
   0x7   :  { %27 = vsyncpa [#allocation18], 0 }
   0x8   :  { %28 = vsyncpa [#allocation4], 0  ;;  %s45_s23 = sshll.u32 %s8154_s1, 4  ;;  %s46_s23 = int_to_ptr.hbm [resolvable:$true] %s45_s23 }
   0x9   :  { %29 = vsyncpa [#allocation22], 0  ;;  %s7846_s24 = smov [#allocation5]   ;;  %s69_s28 = sshll.u32 %s8156_s3, 4  ;;  %s70_s28 = int_to_ptr.hbm [resolvable:$true] %s69_s28 }
   0xa   :  { %s47_s25 = sshll.u32 %s7846_s24, 4  ;;  %s8170_s29 = smov 256   ;;  %s48_s25 = int_to_ptr.vmem [resolvable:$true] %s47_s25 }
   0xb   :  { %s7848_s30 = smov 16   ;;  %s7849_s0 = smov [#allocation8]  }
   0xc   :  { %53 = dma.hbm_to_vmem [thread:$0]  %s46_s23, 24576, %s48_s25, [#allocation6], %s8170_s29, %s8170_s29, %s7848_s30  }
   0xd   :  { %s71_s17 = sshll.u32 %s7849_s0, 4  ;;  %s7850_s1 = smov 128   ;;  %s72_s17 = int_to_ptr.vmem [resolvable:$true] %s71_s17 }
   0xe   :  { %s7851_s18 = smov 8   ;;  %s93_s21 = sshll.u32 %s8158_s5, 4  ;;  %s94_s21 = int_to_ptr.hbm [resolvable:$true] %s93_s21 }
   0xf   :  { %77 = dma.hbm_to_vmem [thread:$0]  %s70_s28, 8192, %s72_s17, [#allocation9], %s7850_s1, %s7850_s1, %s7851_s18  }
  0x10   :  { %s7852_s22 = smov [#allocation11]   ;;  %s122_s27 = sshll.u32 %s8161_s8, 4  ;;  %s123_s27 = int_to_ptr.hbm [resolvable:$true] %s122_s27 }
  0x11   :  { %s95_s3 = sshll.u32 %s7852_s22, 4  ;;  %s8171_s23 = smov 64   ;;  %s96_s3 = int_to_ptr.vmem [resolvable:$true] %s95_s3 }
  0x12   :  { %s7854_s25 = smov 4   ;;  %s7855_s28 = smov [#allocation14]  }
  0x13   :  { %101 = dma.hbm_to_vmem [thread:$0]  %s94_s21, 2048, %s96_s3, [#allocation12], %s8171_s23, %s8171_s23, %s7854_s25  }
  0x14   :  { %s124_s0 = sshll.u32 %s7855_s28, 4  ;;  %s147_s5 = sshll.u32 %s8164_s11, 4  ;;  %s125_s0 = int_to_ptr.vmem [resolvable:$true] %s124_s0  ;;  %s148_s5 = int_to_ptr.hbm [resolvable:$true] %s147_s5 }
  0x15   :  { %127 = dma.hbm_to_vmem [thread:$0]  %s123_s27, 48, %s125_s0, [#allocation15]  }
  0x16   :  { %s7856_s18 = smov [#allocation17]   ;;  %s8173_s22 = sld [smem:[#allocation31_spill]] }
  0x17   :  { %s149_s19 = sshll.u32 %s7856_s18, 4  ;;  %s7857_s26 = smov 384   ;;  %s150_s19 = int_to_ptr.vmem [resolvable:$true] %s149_s19 }
  0x18   :  { %s7858_s29 = smov 24   ;;  %s7859_s21 = smov [#allocation2]  }
  0x19   :  { %155 = dma.hbm_to_vmem [thread:$0]  %s148_s5, 24576, %s150_s19, [#allocation18], %s7857_s26, %s7857_s26, %s7858_s29  }
  0x1a   :  { %s37_s3 = sshll.u32 %s7859_s21, 4  ;;  %s59_s11 = sshll.u32 %s8155_s2, 4  ;;  %s38_s3 = int_to_ptr.vmem [resolvable:$true] %s37_s3  ;;  %s60_s11 = int_to_ptr.hbm [resolvable:$true] %s59_s11 }
  0x1b   :  { %s83_s17 = sshll.u32 %s8157_s4, 4  ;;  %s7860_s1 = smov [#allocation7]   ;;  %s84_s17 = int_to_ptr.hbm [resolvable:$true] %s83_s17 }
  0x1c   :  { %s35_s24 = sshll.u32 %s8173_s22, 4  ;;  %s61_s18 = sshll.u32 %s7860_s1, 4  ;;  %s36_s24 = int_to_ptr.hbm [resolvable:$true] %s35_s24  ;;  %s62_s18 = int_to_ptr.vmem [resolvable:$true] %s61_s18 }
  0x1d   :  { %40 = dma.hbm_to_vmem [thread:$0]  %s36_s24, 768, %s38_s3, [#allocation3]  }
  0x1e   :  { %64 = dma.hbm_to_vmem [thread:$0]  %s60_s11, 64, %s62_s18, [#allocation6]  }
  0x1f   :  { %s7861_s29 = smov [#allocation10]   ;;  %s108_s20 = sshll.u32 %s8160_s7, 4  ;;  %s109_s20 = int_to_ptr.hbm [resolvable:$true] %s108_s20 }
  0x20   :  { %s85_s5 = sshll.u32 %s7861_s29, 4  ;;  %s7862_s2 = smov [#allocation13]   ;;  %s86_s5 = int_to_ptr.vmem [resolvable:$true] %s85_s5 }
  0x21   :  { %88 = dma.hbm_to_vmem [thread:$0]  %s84_s17, 32, %s86_s5, [#allocation9]  }
  0x22   :  { %s110_s23 = sshll.u32 %s7862_s2, 4  ;;  %s132_s4 = sshll.u32 %s8162_s9, 4  ;;  %s111_s23 = int_to_ptr.vmem [resolvable:$true] %s110_s23  ;;  %s133_s4 = int_to_ptr.hbm [resolvable:$true] %s132_s4 }
  0x23   :  { %s7863_s26 = smov 192   ;;  %s7864_s21 = smov 12  }
  0x24   :  { %116 = dma.hbm_to_vmem [thread:$0]  %s109_s20, 3072, %s111_s23, [#allocation12], %s7863_s26, %s7863_s26, %s7864_s21  }
  0x25   :  { %s7865_s3 = smov [#allocation16]   ;;  %s162_s7 = sshll.u32 %s8166_s13, 4  ;;  %s163_s7 = int_to_ptr.hbm [resolvable:$true] %s162_s7 }
  0x26   :  { %s134_s28 = sshll.u32 %s7865_s3, 4  ;;  %s8174_s0 = smov 256   ;;  %s135_s28 = int_to_ptr.vmem [resolvable:$true] %s134_s28 }
  0x27   :  { %140 = dma.hbm_to_vmem [thread:$0]  %s133_s4, 8192, %s135_s28, [#allocation15], %s8174_s0, %s8174_s0, %s7848_s30  }
  0x28   :  { %s7866_s17 = smov [#allocation19]   ;;  %s8175_s9 = smov 64  }
  0x29   :  { %s164_s1 = sshll.u32 %s7866_s17, 4  ;;  %s165_s1 = int_to_ptr.vmem [resolvable:$true] %s164_s1 }
  0x2a   :  { %170 = dma.hbm_to_vmem [thread:$0]  %s163_s7, 1024, %s165_s1, [#allocation18], %s8175_s9, %s8175_s9, %s7854_s25  }
  0x2b   :  { %7830 = dma.done.wait [#allocation3], 768  }
  0x2c   :  { %7831 = vsyncadd [#allocation3], 4294966528 }
  0x2d   :  { %7832 = dma.done.wait [#allocation6], 24640  }
  0x2e   :  { %7833 = vsyncadd [#allocation6], 4294942656 }
  0x2f   :  { %7834 = dma.done.wait [#allocation9], 8224  }
  0x30   :  { %7835 = vsyncadd [#allocation9], 4294959072 }
  0x31   :  { %7836 = dma.done.wait [#allocation12], 5120  }
  0x32   :  { %7837 = vsyncadd [#allocation12], 4294962176 }
  0x33   :  { %7838 = dma.done.wait [#allocation15], 8240  }
  0x34   :  { %7839 = vsyncadd [#allocation15], 4294959056 }
  0x35   :  { %7840 = dma.done.wait [#allocation18], 25600  }
  0x36   :  { %7841 = vsyncadd [#allocation18], 4294941696  ;;  %v4806_v0 = vld [vmem:[#allocation5 + $0xe0] sm:$0xf]  ;;  %v6962_v1 = vld [vmem:[#allocation5 + $0xec] sm:$0xf0] }
  0x37   :  { %v4934_v2 = vld [vmem:[#allocation5 + $0x1e0] sm:$0xf]  ;;  %v4807_v3 = vor.u32 %v6962_v1, %v4806_v0  ;;  %v6994_v4 = vld [vmem:[#allocation5 + $0x1ec] sm:$0xf0]  ;;  %s4661_s8 = sshll.u32 %s8168_s15, 4  ;;  %s7868_s23 = smov [#allocation21]   ;;  %s4662_s8 = int_to_ptr.hbm [resolvable:$true] %s4661_s8 }
  0x38   :  { %v5062_v5 = vld [vmem:[#allocation5 + $0x2e0] sm:$0xf]  ;;  %v7026_v6 = vld [vmem:[#allocation5 + $0x2ec] sm:$0xf0]  ;;  %v4935_v7 = vor.u32 %v6994_v4, %v4934_v2  ;;  %s4670_s22 = sshll.u32 %s7868_s23, 4  ;;  %s4672_s26 = sshll.u32 %s8169_s16, 4  ;;  %s4671_s22 = int_to_ptr.vmem [resolvable:$true] %s4670_s22  ;;  %s4673_s26 = int_to_ptr.hbm [resolvable:$true] %s4672_s26 }
  0x39   :  { %v5063_v8 = vor.u32 %v7026_v6, %v5062_v5  ;;  %v5190_v9 = vld [vmem:[#allocation5 + $0x3e0] sm:$0xf]  ;;  %v7058_v10 = vld [vmem:[#allocation5 + $0x3ec] sm:$0xf0]  ;;  %1391 = vmatpush.bf16.msra.mxu0 %v4807_v3 }
  0x3a   :  { %v4790_v11 = vld [vmem:[#allocation5 + $0xc0] sm:$0xf]  ;;  %v5191_v12 = vor.u32 %v7058_v10, %v5190_v9  ;;  %v6958_v13 = vld [vmem:[#allocation5 + $0xcc] sm:$0xf0]  ;;  %1404 = vmatpush.bf16.msra.mxu1 %v4935_v7 }
  0x3b   :  { %v4918_v14 = vld [vmem:[#allocation5 + $0x1c0] sm:$0xf]  ;;  %v6990_v15 = vld [vmem:[#allocation5 + $0x1cc] sm:$0xf0]  ;;  %1417 = vmatpush.bf16.msra.mxu2 %v5063_v8  ;;  %v4791_v16 = vor.u32 %v6958_v13, %v4790_v11 }
  0x3c   :  { %v4919_v17 = vor.u32 %v6990_v15, %v4918_v14  ;;  %v5046_v18 = vld [vmem:[#allocation5 + $0x2c0] sm:$0xf]  ;;  %v7022_v19 = vld [vmem:[#allocation5 + $0x2cc] sm:$0xf0]  ;;  %1430 = vmatpush.bf16.msra.mxu3 %v5191_v12 }
  0x3d   :  { %v5174_v20 = vld [vmem:[#allocation5 + $0x3c0] sm:$0xf]  ;;  %v5047_v21 = vor.u32 %v7022_v19, %v5046_v18  ;;  %v7054_v22 = vld [vmem:[#allocation5 + $0x3cc] sm:$0xf0]  ;;  %1392 = vmatpush.bf16.msra.mxu0 %v4791_v16 }
  0x3e   :  { %v4774_v23 = vld [vmem:[#allocation5 + $0xa0] sm:$0xf]  ;;  %v6954_v24 = vld [vmem:[#allocation5 + $0xac] sm:$0xf0]  ;;  %v5175_v25 = vor.u32 %v7054_v22, %v5174_v20  ;;  %1405 = vmatpush.bf16.msra.mxu1 %v4919_v17 }
  0x3f   :  { %v4902_v26 = vld [vmem:[#allocation5 + $0x1a0] sm:$0xf]  ;;  %v6986_v27 = vld [vmem:[#allocation5 + $0x1ac] sm:$0xf0]  ;;  %v4775_v29 = vor.u32 %v6954_v24, %v4774_v23  ;;  %1418 = vmatpush.bf16.msra.mxu2 %v5047_v21 }
  0x40   :  { %v5030_v28 = vld [vmem:[#allocation5 + $0x2a0] sm:$0xf]  ;;  %v7018_v30 = vld [vmem:[#allocation5 + $0x2ac] sm:$0xf0]  ;;  %v4903_v33 = vor.u32 %v6986_v27, %v4902_v26  ;;  %1431 = vmatpush.bf16.msra.mxu3 %v5175_v25 }
  0x41   :  { %v5158_v31 = vld [vmem:[#allocation5 + $0x3a0] sm:$0xf]  ;;  %v7050_v32 = vld [vmem:[#allocation5 + $0x3ac] sm:$0xf0]  ;;  %v5031_v34 = vor.u32 %v7018_v30, %v5030_v28  ;;  %1393 = vmatpush.bf16.msra.mxu0 %v4775_v29 }
  0x42   :  { %v4758_v35 = vld [vmem:[#allocation5 + $0x80] sm:$0xf]  ;;  %v6950_v36 = vld [vmem:[#allocation5 + $0x8c] sm:$0xf0]  ;;  %v5159_v38 = vor.u32 %v7050_v32, %v5158_v31  ;;  %1406 = vmatpush.bf16.msra.mxu1 %v4903_v33  ;;  %v6960_v33 = vld [vmem:[#allocation5 + $0xe4] sm:$0xf] }
  0x43   :  { %v4886_v37 = vld [vmem:[#allocation5 + $0x180] sm:$0xf]  ;;  %v6982_v39 = vld [vmem:[#allocation5 + $0x18c] sm:$0xf0]  ;;  %v4759_v44 = vor.u32 %v6950_v36, %v4758_v35  ;;  %1419 = vmatpush.bf16.msra.mxu2 %v5031_v34  ;;  %v4808_v34 = vld [vmem:[#allocation5 + $0xf0] sm:$0xf0] }
  0x44   :  { %v5014_v40 = vld [vmem:[#allocation5 + $0x280] sm:$0xf]  ;;  %v7014_v41 = vld [vmem:[#allocation5 + $0x28c] sm:$0xf0]  ;;  %v4887_v45 = vor.u32 %v6982_v39, %v4886_v37  ;;  %1432 = vmatpush.bf16.msra.mxu3 %v5159_v38  ;;  %v6992_v37 = vld [vmem:[#allocation5 + $0x1e4] sm:$0xf] }
  0x45   :  { %v5142_v42 = vld [vmem:[#allocation5 + $0x380] sm:$0xf]  ;;  %v7046_v43 = vld [vmem:[#allocation5 + $0x38c] sm:$0xf0]  ;;  %v5015_v46 = vor.u32 %v7014_v41, %v5014_v40  ;;  %1394 = vmatpush.bf16.msra.mxu0 %v4759_v44  ;;  %v4936_v38 = vld [vmem:[#allocation5 + $0x1f0] sm:$0xf0] }
  0x46   :  { %v4742_v47 = vld [vmem:[#allocation5 + $0x60] sm:$0xf]  ;;  %v6946_v48 = vld [vmem:[#allocation5 + $0x6c] sm:$0xf0]  ;;  %v5143_v50 = vor.u32 %v7046_v43, %v5142_v42  ;;  %1407 = vmatpush.bf16.msra.mxu1 %v4887_v45  ;;  %v4811_v42 = vor.u32 %v6960_v33, %v4808_v34 }
  0x47   :  { %v4870_v49 = vld [vmem:[#allocation5 + $0x160] sm:$0xf]  ;;  %v6978_v51 = vld [vmem:[#allocation5 + $0x16c] sm:$0xf0]  ;;  %v4743_v56 = vor.u32 %v6946_v48, %v4742_v47  ;;  %1420 = vmatpush.bf16.msra.mxu2 %v5015_v46  ;;  %v4939_v46 = vor.u32 %v6992_v37, %v4936_v38  ;;  %v6956_v48 = vld [vmem:[#allocation5 + $0xc4] sm:$0xf] }
  0x48   :  { %v4998_v52 = vld [vmem:[#allocation5 + $0x260] sm:$0xf]  ;;  %v7010_v53 = vld [vmem:[#allocation5 + $0x26c] sm:$0xf0]  ;;  %v4871_v57 = vor.u32 %v6978_v51, %v4870_v49  ;;  %1433 = vmatpush.bf16.msra.mxu3 %v5143_v50  ;;  %v4792_v49 = vld [vmem:[#allocation5 + $0xd0] sm:$0xf0] }
  0x49   :  { %v5126_v54 = vld [vmem:[#allocation5 + $0x360] sm:$0xf]  ;;  %v7042_v55 = vld [vmem:[#allocation5 + $0x36c] sm:$0xf0]  ;;  %v4999_v58 = vor.u32 %v7010_v53, %v4998_v52  ;;  %1395 = vmatpush.bf16.msra.mxu0 %v4743_v56  ;;  %v6988_v50 = vld [vmem:[#allocation5 + $0x1c4] sm:$0xf] }
  0x4a   :  { %v4726_v59 = vld [vmem:[#allocation5 + $0x40] sm:$0xf]  ;;  %v6942_v60 = vld [vmem:[#allocation5 + $0x4c] sm:$0xf0]  ;;  %v5127_v62 = vor.u32 %v7042_v55, %v5126_v54  ;;  %1408 = vmatpush.bf16.msra.mxu1 %v4871_v57  ;;  %v4920_v51 = vld [vmem:[#allocation5 + $0x1d0] sm:$0xf0]  ;;  %v4795_v55 = vor.u32 %v6956_v48, %v4792_v49 }
  0x4b   :  { %v4854_v61 = vld [vmem:[#allocation5 + $0x140] sm:$0xf]  ;;  %v6974_v63 = vld [vmem:[#allocation5 + $0x14c] sm:$0xf0]  ;;  %v4727_v4 = vor.u32 %v6942_v60, %v4726_v59  ;;  %1421 = vmatpush.bf16.msra.mxu2 %v4999_v58  ;;  %v4923_v59 = vor.u32 %v6988_v50, %v4920_v51  ;;  %v6952_v60 = vld [vmem:[#allocation5 + $0xa4] sm:$0xf] }
  0x4c   :  { %v4982_v0 = vld [vmem:[#allocation5 + $0x240] sm:$0xf]  ;;  %v7006_v1 = vld [vmem:[#allocation5 + $0x24c] sm:$0xf0]  ;;  %v4855_v5 = vor.u32 %v6974_v63, %v4854_v61  ;;  %1434 = vmatpush.bf16.msra.mxu3 %v5127_v62  ;;  %v4776_v61 = vld [vmem:[#allocation5 + $0xb0] sm:$0xf0] }
  0x4d   :  { %v5110_v2 = vld [vmem:[#allocation5 + $0x340] sm:$0xf]  ;;  %v7038_v3 = vld [vmem:[#allocation5 + $0x34c] sm:$0xf0]  ;;  %v4983_v6 = vor.u32 %v7006_v1, %v4982_v0  ;;  %1396 = vmatpush.bf16.msra.mxu0 %v4727_v4  ;;  %v6984_v62 = vld [vmem:[#allocation5 + $0x1a4] sm:$0xf] }
  0x4e   :  { %v4710_v7 = vld [vmem:[#allocation5 + $0x20] sm:$0xf]  ;;  %v6938_v8 = vld [vmem:[#allocation5 + $0x2c] sm:$0xf0]  ;;  %v5111_v10 = vor.u32 %v7038_v3, %v5110_v2  ;;  %1409 = vmatpush.bf16.msra.mxu1 %v4855_v5  ;;  %v4904_v63 = vld [vmem:[#allocation5 + $0x1b0] sm:$0xf0]  ;;  %v4779_v5 = vor.u32 %v6952_v60, %v4776_v61 }
  0x4f   :  { %v4838_v9 = vld [vmem:[#allocation5 + $0x120] sm:$0xf]  ;;  %v6970_v11 = vld [vmem:[#allocation5 + $0x12c] sm:$0xf0]  ;;  %v4711_v16 = vor.u32 %v6938_v8, %v4710_v7  ;;  %1422 = vmatpush.bf16.msra.mxu2 %v4983_v6 }
  0x50   :  { %v4966_v12 = vld [vmem:[#allocation5 + $0x220] sm:$0xf]  ;;  %v7002_v13 = vld [vmem:[#allocation5 + $0x22c] sm:$0xf0]  ;;  %v4839_v19 = vor.u32 %v6970_v11, %v4838_v9  ;;  %1435 = vmatpush.bf16.msra.mxu3 %v5111_v10  ;;  %v220_v10 = vld [vmem:[#allocation2 + $0x18] sm:$0xff]  ;;  %v4907_v11 = vor.u32 %v6984_v62, %v4904_v63 }
  0x51   :  { %v5094_v14 = vld [vmem:[#allocation5 + $0x320] sm:$0xf]  ;;  %v7034_v15 = vld [vmem:[#allocation5 + $0x32c] sm:$0xf0]  ;;  %v4967_v20 = vor.u32 %v7002_v13, %v4966_v12  ;;  %1397 = vmatpush.bf16.msra.mxu0 %v4711_v16  ;;  %v6948_v13 = vld [vmem:[#allocation5 + $0x84] sm:$0xf] }
  0x52   :  { %v4694_v17 = vld [vmem:[#allocation5] sm:$0xf]  ;;  %v6934_v18 = vld [vmem:[#allocation5 + $0xc] sm:$0xf0]  ;;  %v5095_v24 = vor.u32 %v7034_v15, %v5094_v14  ;;  %1410 = vmatpush.bf16.msra.mxu1 %v4839_v19  ;;  %v4760_v14 = vld [vmem:[#allocation5 + $0x90] sm:$0xf0]  ;;  %v8003_v15 = vpack.c.bf16 %v220_v10, %v220_v10 }
  0x53   :  { %v4822_v21 = vld [vmem:[#allocation5 + $0x100] sm:$0xf]  ;;  %v6966_v22 = vld [vmem:[#allocation5 + $0x10c] sm:$0xf0]  ;;  %v4695_v31 = vor.u32 %v6934_v18, %v4694_v17  ;;  %1423 = vmatpush.bf16.msra.mxu2 %v4967_v20  ;;  %v6980_v16 = vld [vmem:[#allocation5 + $0x184] sm:$0xf] }
  0x54   :  { %v4950_v23 = vld [vmem:[#allocation5 + $0x200] sm:$0xf]  ;;  %v6998_v25 = vld [vmem:[#allocation5 + $0x20c] sm:$0xf0]  ;;  %v4823_v35 = vor.u32 %v6966_v22, %v4822_v21  ;;  %1436 = vmatpush.bf16.msra.mxu3 %v5095_v24  ;;  %v4888_v17 = vld [vmem:[#allocation5 + $0x190] sm:$0xf0]  ;;  %v4763_v21 = vor.u32 %v6948_v13, %v4760_v14 }
  0x55   :  { %v5078_v26 = vld [vmem:[#allocation5 + $0x300] sm:$0xf]  ;;  %v7030_v27 = vld [vmem:[#allocation5 + $0x30c] sm:$0xf0]  ;;  %v4951_v36 = vor.u32 %v6998_v25, %v4950_v23  ;;  %1398 = vmatpush.bf16.msra.mxu0 %v4695_v31  ;;  %v218_v19 = vld [vmem:[#allocation2 + $0x8] sm:$0xff] }
  0x56   :  { %v5318_v28 = vld [vmem:[#allocation5 + $0x4e0] sm:$0xf]  ;;  %v7090_v29 = vld [vmem:[#allocation5 + $0x4ec] sm:$0xf0]  ;;  %v5079_v39 = vor.u32 %v7030_v27, %v5078_v26  ;;  %1411 = vmatpush.bf16.msra.mxu1 %v4823_v35  ;;  %v8008_v25 = vpack.c.bf16 %v218_v19, %v218_v19  ;;  %v4891_v26 = vor.u32 %v6980_v16, %v4888_v17  ;;  %v4872_v31 = vld [vmem:[#allocation5 + $0x170] sm:$0xf0] }
  0x57   :  { %v5446_v30 = vld [vmem:[#allocation5 + $0x5e0] sm:$0xf]  ;;  %v7122_v32 = vld [vmem:[#allocation5 + $0x5ec] sm:$0xf0]  ;;  %v5319_v40 = vor.u32 %v7090_v29, %v5318_v28  ;;  %1424 = vmatpush.bf16.msra.mxu2 %v4951_v36  ;;  %v6944_v28 = vld [vmem:[#allocation5 + $0x64] sm:$0xf] }
  0x58   :  { %v5447_v41 = vor.u32 %v7122_v32, %v5446_v30  ;;  %v5302_v43 = vld [vmem:[#allocation5 + $0x4c0] sm:$0xf]  ;;  %v7086_v44 = vld [vmem:[#allocation5 + $0x4cc] sm:$0xf0]  ;;  %1437 = vmatpush.bf16.msra.mxu3 %v5079_v39  ;;  %v4744_v29 = vld [vmem:[#allocation5 + $0x70] sm:$0xf0] }
  0x59   :  { %v5430_v45 = vld [vmem:[#allocation5 + $0x5c0] sm:$0xf]  ;;  %v7118_v47 = vld [vmem:[#allocation5 + $0x5cc] sm:$0xf0]  ;;  %1443 = vmatpush.bf16.msrb.mxu0 %v5319_v40  ;;  %v5303_v52 = vor.u32 %v7086_v44, %v5302_v43  ;;  %v6976_v30 = vld [vmem:[#allocation5 + $0x164] sm:$0xf]  ;;  %1412 = vmatmul.bf16.vlgmr.msra.gmra.mxu1 %v8008_v25  ;;  %v4747_v34 = vor.u32 %v6944_v28, %v4744_v29 }
  0x5a   :  { %v5286_v53 = vld [vmem:[#allocation5 + $0x4a0] sm:$0xf]  ;;  %1456 = vmatpush.bf16.msrb.mxu1 %v5447_v41  ;;  %v5431_v54 = vor.u32 %v7118_v47, %v5430_v45  ;;  %v7082_v56 = vld [vmem:[#allocation5 + $0x4ac] sm:$0xf0]  ;;  %v4875_v38 = vor.u32 %v6976_v30, %v4872_v31  ;;  %v6940_v40 = vld [vmem:[#allocation5 + $0x44] sm:$0xf] }
  0x5b   :  { %1469 = vmatpush.bf16.msrb.mxu2 %v4811_v42  ;;  %v5414_v57 = vld [vmem:[#allocation5 + $0x5a0] sm:$0xf]  ;;  %v7114_v58 = vld [vmem:[#allocation5 + $0x5ac] sm:$0xf0]  ;;  %v5287_v0 = vor.u32 %v7082_v56, %v5286_v53  ;;  %1438 = vmatmul.bf16.vlgmr.msra.gmra.mxu3 %v8003_v15  ;;  %v4728_v41 = vld [vmem:[#allocation5 + $0x50] sm:$0xf0] }
  0x5c   :  { %1482 = vmatpush.bf16.msrb.mxu3 %v4939_v46  ;;  %v5415_v1 = vor.u32 %v7114_v58, %v5414_v57  ;;  %v5270_v2 = vld [vmem:[#allocation5 + $0x480] sm:$0xf]  ;;  %v217_v4 = vld [vmem:[#allocation2] sm:$0xff]  ;;  %v6972_v42 = vld [vmem:[#allocation5 + $0x144] sm:$0xf]  ;;  %v4731_v46 = vor.u32 %v6940_v40, %v4728_v41 }
  0x5d   :  { %1444 = vmatpush.bf16.msrb.mxu0 %v5303_v52  ;;  %v219_v3 = vld [vmem:[#allocation2 + $0x10] sm:$0xff]  ;;  %v7078_v6 = vld [vmem:[#allocation5 + $0x48c] sm:$0xf0]  ;;  %v8001_v9 = vpack.c.bf16 %v217_v4, %v217_v4  ;;  %v4856_v43 = vld [vmem:[#allocation5 + $0x150] sm:$0xf0] }
  0x5e   :  { %1457 = vmatpush.bf16.msrb.mxu1 %v5431_v54  ;;  %v5398_v7 = vld [vmem:[#allocation5 + $0x580] sm:$0xf]  ;;  %v7999_v8 = vpack.c.bf16 %v219_v3, %v219_v3  ;;  %v7110_v12 = vld [vmem:[#allocation5 + $0x58c] sm:$0xf0]  ;;  %v5271_v18 = vor.u32 %v7078_v6, %v5270_v2  ;;  %v4859_v50 = vor.u32 %v6972_v42, %v4856_v43  ;;  %v6936_v52 = vld [vmem:[#allocation5 + $0x24] sm:$0xf] }
  0x5f   :  { %1470 = vmatpush.bf16.msrb.mxu2 %v4795_v55  ;;  %1399 = vmatmul.bf16.vlgmr.msra.gmra.mxu0 %v8001_v9  ;;  %v5399_v20 = vor.u32 %v7110_v12, %v5398_v7  ;;  %v5254_v22 = vld [vmem:[#allocation5 + $0x460] sm:$0xf]  ;;  %v7074_v23 = vld [vmem:[#allocation5 + $0x46c] sm:$0xf0]  ;;  %v4712_v53 = vld [vmem:[#allocation5 + $0x30] sm:$0xf0] }
  0x60   :  { %1483 = vmatpush.bf16.msrb.mxu3 %v4923_v59  ;;  %1425 = vmatmul.bf16.vlgmr.msra.gmra.mxu2 %v7999_v8  ;;  %v5382_v24 = vld [vmem:[#allocation5 + $0x560] sm:$0xf]  ;;  %v7106_v27 = vld [vmem:[#allocation5 + $0x56c] sm:$0xf0]  ;;  %v5255_v32 = vor.u32 %v7074_v23, %v5254_v22  ;;  %v6968_v54 = vld [vmem:[#allocation5 + $0x124] sm:$0xf]  ;;  %v4715_v60 = vor.u32 %v6936_v52, %v4712_v53 }
  0x61   :  { %1445 = vmatpush.bf16.msrb.mxu0 %v5287_v0  ;;  %v5383_v33 = vor.u32 %v7106_v27, %v5382_v24  ;;  %v5238_v35 = vld [vmem:[#allocation5 + $0x440] sm:$0xf]  ;;  %v7070_v36 = vld [vmem:[#allocation5 + $0x44c] sm:$0xf0]  ;;  %v4840_v55 = vld [vmem:[#allocation5 + $0x130] sm:$0xf0] }
  0x62   :  { %1458 = vmatpush.bf16.msrb.mxu1 %v5415_v1  ;;  %v5366_v37 = vld [vmem:[#allocation5 + $0x540] sm:$0xf]  ;;  %v7102_v39 = vld [vmem:[#allocation5 + $0x54c] sm:$0xf0]  ;;  %v5239_v44 = vor.u32 %v7070_v36, %v5238_v35  ;;  %v6932_v63 = vld [vmem:[#allocation5 + $0x4] sm:$0xf]  ;;  %v4843_v0 = vor.u32 %v6968_v54, %v4840_v55 }
  0x63   :  { %1471 = vmatpush.bf16.msrb.mxu2 %v4779_v5  ;;  %v5367_v45 = vor.u32 %v7102_v39, %v5366_v37  ;;  %v5222_v47 = vld [vmem:[#allocation5 + $0x420] sm:$0xf]  ;;  %v7066_v48 = vld [vmem:[#allocation5 + $0x42c] sm:$0xf0]  ;;  %v4696_v1 = vld [vmem:[#allocation5 + $0x10] sm:$0xf0] }
  0x64   :  { %1484 = vmatpush.bf16.msrb.mxu3 %v4907_v11  ;;  %v5350_v49 = vld [vmem:[#allocation5 + $0x520] sm:$0xf]  ;;  %v7098_v51 = vld [vmem:[#allocation5 + $0x52c] sm:$0xf0]  ;;  %v5223_v56 = vor.u32 %v7066_v48, %v5222_v47  ;;  %v6964_v2 = vld [vmem:[#allocation5 + $0x104] sm:$0xf]  ;;  %v4699_v14 = vor.u32 %v6932_v63, %v4696_v1 }
  0x65   :  { %1446 = vmatpush.bf16.msrb.mxu0 %v5271_v18  ;;  %v5206_v57 = vld [vmem:[#allocation5 + $0x400] sm:$0xf]  ;;  %v7062_v58 = vld [vmem:[#allocation5 + $0x40c] sm:$0xf0]  ;;  %v5351_v59 = vor.u32 %v7098_v51, %v5350_v49  ;;  %v4824_v3 = vld [vmem:[#allocation5 + $0x110] sm:$0xf0] }
  0x66   :  { %1459 = vmatpush.bf16.msrb.mxu1 %v5399_v20  ;;  %v5334_v61 = vld [vmem:[#allocation5 + $0x500] sm:$0xf]  ;;  %v7094_v62 = vld [vmem:[#allocation5 + $0x50c] sm:$0xf0]  ;;  %v7024_v4 = vld [vmem:[#allocation5 + $0x2e4] sm:$0xf]  ;;  %v5207_v7 = vor.u32 %v7062_v58, %v5206_v57  ;;  %v4827_v19 = vor.u32 %v6964_v2, %v4824_v3 }
  0x67   :  { %1472 = vmatpush.bf16.msrb.mxu2 %v4763_v21  ;;  %v5064_v5 = vld [vmem:[#allocation5 + $0x2f0] sm:$0xf0]  ;;  %v7056_v6 = vld [vmem:[#allocation5 + $0x3e4] sm:$0xf]  ;;  %v5335_v13 = vor.u32 %v7094_v62, %v5334_v61  ;;  %v222_v21 = vld [vmem:[#allocation2 + $0x28] sm:$0xff] }
  0x68   :  { %1485 = vmatpush.bf16.msrb.mxu3 %v4891_v26  ;;  %v5192_v10 = vld [vmem:[#allocation5 + $0x3f0] sm:$0xf0]  ;;  %v7088_v11 = vld [vmem:[#allocation5 + $0x4e4] sm:$0xf]  ;;  %v5067_v20 = vor.u32 %v7024_v4, %v5064_v5  ;;  %v8013_v35 = vpack.c.bf16 %v222_v21, %v222_v21 }
  0x69   :  { %1447 = vmatpush.bf16.msrb.mxu0 %v5255_v32  ;;  %v5320_v12 = vld [vmem:[#allocation5 + $0x4f0] sm:$0xf0]  ;;  %v7120_v16 = vld [vmem:[#allocation5 + $0x5e4] sm:$0xf]  ;;  %v5195_v22 = vor.u32 %v7056_v6, %v5192_v10 }
  0x6a   :  { %1460 = vmatpush.bf16.msrb.mxu1 %v5383_v33  ;;  %v5448_v17 = vld [vmem:[#allocation5 + $0x5f0] sm:$0xf0]  ;;  %v5323_v23 = vor.u32 %v7088_v11, %v5320_v12  ;;  %v7020_v24 = vld [vmem:[#allocation5 + $0x2c4] sm:$0xf] }
  0x6b   :  { %1473 = vmatpush.bf16.msrb.mxu2 %v4747_v34  ;;  %v221_v18 = vld [vmem:[#allocation2 + $0x20] sm:$0xff]  ;;  %v7052_v27 = vld [vmem:[#allocation5 + $0x3c4] sm:$0xf]  ;;  %v5451_v28 = vor.u32 %v7120_v16, %v5448_v17 }
  0x6c   :  { %1486 = vmatpush.bf16.msrb.mxu3 %v4875_v38  ;;  %v5048_v26 = vld [vmem:[#allocation5 + $0x2d0] sm:$0xf0]  ;;  %v7084_v30 = vld [vmem:[#allocation5 + $0x4c4] sm:$0xf]  ;;  %v8011_v32 = vpack.c.bf16 %v221_v18, %v221_v18 }
  0x6d   :  { %1448 = vmatpush.bf16.msrb.mxu0 %v5239_v44  ;;  %v5176_v29 = vld [vmem:[#allocation5 + $0x3d0] sm:$0xf0]  ;;  %v7116_v33 = vld [vmem:[#allocation5 + $0x5c4] sm:$0xf]  ;;  %v5051_v36 = vor.u32 %v7020_v24, %v5048_v26 }
  0x6e   :  { %1461 = vmatpush.bf16.msrb.mxu1 %v5367_v45  ;;  %v5304_v31 = vld [vmem:[#allocation5 + $0x4d0] sm:$0xf0]  ;;  %v5179_v37 = vor.u32 %v7052_v27, %v5176_v29  ;;  %v7016_v39 = vld [vmem:[#allocation5 + $0x2a4] sm:$0xf] }
  0x6f   :  { %1474 = vmatpush.bf16.msrb.mxu2 %v4731_v46  ;;  %v5432_v34 = vld [vmem:[#allocation5 + $0x5d0] sm:$0xf0]  ;;  %v5307_v38 = vor.u32 %v7084_v30, %v5304_v31  ;;  %v7048_v41 = vld [vmem:[#allocation5 + $0x3a4] sm:$0xf] }
  0x70   :  { %1487 = vmatpush.bf16.msrb.mxu3 %v4859_v50  ;;  %v5032_v40 = vld [vmem:[#allocation5 + $0x2b0] sm:$0xf0]  ;;  %v5435_v42 = vor.u32 %v7116_v33, %v5432_v34  ;;  %v7080_v44 = vld [vmem:[#allocation5 + $0x4a4] sm:$0xf] }
  0x71   :  { %1449 = vmatpush.bf16.msrb.mxu0 %v5223_v56  ;;  %v5160_v43 = vld [vmem:[#allocation5 + $0x3b0] sm:$0xf0]  ;;  %v7112_v46 = vld [vmem:[#allocation5 + $0x5a4] sm:$0xf]  ;;  %v5035_v48 = vor.u32 %v7016_v39, %v5032_v40 }
  0x72   :  { %1462 = vmatpush.bf16.msrb.mxu1 %v5351_v59  ;;  %v5288_v45 = vld [vmem:[#allocation5 + $0x4b0] sm:$0xf0]  ;;  %v5163_v49 = vor.u32 %v7048_v41, %v5160_v43  ;;  %v7012_v51 = vld [vmem:[#allocation5 + $0x284] sm:$0xf] }
  0x73   :  { %1475 = vmatpush.bf16.msrb.mxu2 %v4715_v60  ;;  %v5416_v47 = vld [vmem:[#allocation5 + $0x5b0] sm:$0xf0]  ;;  %v5291_v50 = vor.u32 %v7080_v44, %v5288_v45  ;;  %v7044_v53 = vld [vmem:[#allocation5 + $0x384] sm:$0xf] }
  0x74   :  { %1488 = vmatpush.bf16.msrb.mxu3 %v4843_v0  ;;  %v5016_v52 = vld [vmem:[#allocation5 + $0x290] sm:$0xf0]  ;;  %v5419_v54 = vor.u32 %v7112_v46, %v5416_v47  ;;  %v7076_v56 = vld [vmem:[#allocation5 + $0x484] sm:$0xf] }
  0x75   :  { %1450 = vmatpush.bf16.msrb.mxu0 %v5207_v7  ;;  %v5144_v55 = vld [vmem:[#allocation5 + $0x390] sm:$0xf0]  ;;  %v7108_v58 = vld [vmem:[#allocation5 + $0x584] sm:$0xf]  ;;  %v5019_v60 = vor.u32 %v7012_v51, %v5016_v52  ;;  %v6963_v51 = vld [vmem:[#allocation5 + $0xf4] sm:$0xf0] }
  0x76   :  { %1463 = vmatpush.bf16.msrb.mxu1 %v5335_v13  ;;  %v5272_v57 = vld [vmem:[#allocation5 + $0x490] sm:$0xf0]  ;;  %v5147_v61 = vor.u32 %v7044_v53, %v5144_v55  ;;  %v7008_v63 = vld [vmem:[#allocation5 + $0x264] sm:$0xf]  ;;  %v4942_v52 = vld [vmem:[#allocation5 + $0x1e8] sm:$0xf] }
  0x77   :  { %1476 = vmatpush.bf16.msrb.mxu2 %v4699_v14  ;;  %v5400_v59 = vld [vmem:[#allocation5 + $0x590] sm:$0xf0]  ;;  %v5275_v62 = vor.u32 %v7076_v56, %v5272_v57  ;;  %v7040_v1 = vld [vmem:[#allocation5 + $0x364] sm:$0xf]  ;;  %v5070_v55 = vld [vmem:[#allocation5 + $0x2e8] sm:$0xf] }
  0x78   :  { %1489 = vmatpush.bf16.msrb.mxu3 %v4827_v19  ;;  %1451 = vmatmul.bf16.vlgmr.msrb.gmra.mxu0 %v8011_v32  ;;  %v5000_v0 = vld [vmem:[#allocation5 + $0x270] sm:$0xf0]  ;;  %v5403_v2 = vor.u32 %v7108_v58, %v5400_v59  ;;  %v7072_v4 = vld [vmem:[#allocation5 + $0x464] sm:$0xf]  ;;  %v7027_v56 = vld [vmem:[#allocation5 + $0x2f4] sm:$0xf0] }
  0x79   :  { %1495 = vmatpush.bf16.msra.mxu0 %v5067_v20  ;;  %1464 = vmatmul.bf16.vlgmr.msrb.gmra.mxu1 %v8013_v35  ;;  %v5128_v3 = vld [vmem:[#allocation5 + $0x370] sm:$0xf0]  ;;  %v7104_v6 = vld [vmem:[#allocation5 + $0x564] sm:$0xf]  ;;  %v5003_v10 = vor.u32 %v7008_v63, %v5000_v0  ;;  %v5198_v59 = vld [vmem:[#allocation5 + $0x3e8] sm:$0xf]  ;;  %v5071_v0 = vor.u32 %v7027_v56, %v5070_v55 }
  0x7a   :  { %1508 = vmatpush.bf16.msra.mxu1 %v5195_v22  ;;  %1477 = vmatmul.bf16.vlgmr.msrb.gmra.mxu2 %v8001_v9  ;;  %v5256_v5 = vld [vmem:[#allocation5 + $0x470] sm:$0xf0]  ;;  %v5131_v11 = vor.u32 %v7040_v1, %v5128_v3  ;;  %v7004_v13 = vld [vmem:[#allocation5 + $0x244] sm:$0xf]  ;;  %v4798_v1 = vld [vmem:[#allocation5 + $0xc8] sm:$0xf] }
  0x7b   :  { %1521 = vmatpush.bf16.msra.mxu2 %v5323_v23  ;;  %1490 = vmatmul.bf16.vlgmr.msrb.gmra.mxu3 %v8008_v25  ;;  %v5384_v7 = vld [vmem:[#allocation5 + $0x570] sm:$0xf0]  ;;  %v5259_v12 = vor.u32 %v7072_v4, %v5256_v5  ;;  %v7036_v16 = vld [vmem:[#allocation5 + $0x344] sm:$0xf]  ;;  %v4926_v3 = vld [vmem:[#allocation5 + $0x1c8] sm:$0xf] }
  0x7c   :  { %1534 = vmatpush.bf16.msra.mxu3 %v5451_v28  ;;  %v4984_v14 = vld [vmem:[#allocation5 + $0x250] sm:$0xf0]  ;;  %v5387_v17 = vor.u32 %v7104_v6, %v5384_v7  ;;  %v7068_v19 = vld [vmem:[#allocation5 + $0x444] sm:$0xf]  ;;  %v6991_v5 = vld [vmem:[#allocation5 + $0x1d4] sm:$0xf0] }
  0x7d   :  { %1496 = vmatpush.bf16.msra.mxu0 %v5051_v36  ;;  %v5112_v18 = vld [vmem:[#allocation5 + $0x350] sm:$0xf0]  ;;  %v7100_v21 = vld [vmem:[#allocation5 + $0x544] sm:$0xf]  ;;  %v4987_v23 = vor.u32 %v7004_v13, %v4984_v14  ;;  %v5054_v6 = vld [vmem:[#allocation5 + $0x2c8] sm:$0xf]  ;;  %v4927_v13 = vor.u32 %v6991_v5, %v4926_v3 }
  0x7e   :  { %1509 = vmatpush.bf16.msra.mxu1 %v5179_v37  ;;  %v5240_v20 = vld [vmem:[#allocation5 + $0x450] sm:$0xf0]  ;;  %v7000_v24 = vld [vmem:[#allocation5 + $0x224] sm:$0xf]  ;;  %v5115_v26 = vor.u32 %v7036_v16, %v5112_v18  ;;  %v7023_v7 = vld [vmem:[#allocation5 + $0x2d4] sm:$0xf0] }
  0x7f   :  { %1522 = vmatpush.bf16.msra.mxu2 %v5307_v38  ;;  %v5368_v22 = vld [vmem:[#allocation5 + $0x550] sm:$0xf0]  ;;  %v5243_v27 = vor.u32 %v7068_v19, %v5240_v20  ;;  %v7032_v29 = vld [vmem:[#allocation5 + $0x324] sm:$0xf]  ;;  %v5055_v14 = vor.u32 %v7023_v7, %v5054_v6  ;;  %v4782_v16 = vld [vmem:[#allocation5 + $0xa8] sm:$0xf] }
  0x80   :  { %1535 = vmatpush.bf16.msra.mxu3 %v5435_v42  ;;  %v4968_v28 = vld [vmem:[#allocation5 + $0x230] sm:$0xf0]  ;;  %v5371_v31 = vor.u32 %v7100_v21, %v5368_v22  ;;  %v7064_v33 = vld [vmem:[#allocation5 + $0x424] sm:$0xf]  ;;  %v4910_v18 = vld [vmem:[#allocation5 + $0x1a8] sm:$0xf] }
  0x81   :  { %1497 = vmatpush.bf16.msra.mxu0 %v5035_v48  ;;  %v5096_v30 = vld [vmem:[#allocation5 + $0x330] sm:$0xf0]  ;;  %v7096_v36 = vld [vmem:[#allocation5 + $0x524] sm:$0xf]  ;;  %v4971_v38 = vor.u32 %v7000_v24, %v4968_v28  ;;  %v6987_v20 = vld [vmem:[#allocation5 + $0x1b4] sm:$0xf0] }
  0x82   :  { %1510 = vmatpush.bf16.msra.mxu1 %v5163_v49  ;;  %v5224_v34 = vld [vmem:[#allocation5 + $0x430] sm:$0xf0]  ;;  %v6996_v39 = vld [vmem:[#allocation5 + $0x204] sm:$0xf]  ;;  %v5099_v41 = vor.u32 %v7032_v29, %v5096_v30  ;;  %v5038_v21 = vld [vmem:[#allocation5 + $0x2a8] sm:$0xf] }
  0x83   :  { %1523 = vmatpush.bf16.msra.mxu2 %v5291_v50  ;;  %v5352_v37 = vld [vmem:[#allocation5 + $0x530] sm:$0xf0]  ;;  %v5227_v42 = vor.u32 %v7064_v33, %v5224_v34  ;;  %v7028_v43 = vld [vmem:[#allocation5 + $0x304] sm:$0xf]  ;;  %v4814_v50 = vld [vmem:[#allocation5 + $0xe8] sm:$0xf] }
  0x84   :  { %1536 = vmatpush.bf16.msra.mxu3 %v5419_v54  ;;  %v4952_v40 = vld [vmem:[#allocation5 + $0x210] sm:$0xf0]  ;;  %v7060_v45 = vld [vmem:[#allocation5 + $0x404] sm:$0xf]  ;;  %v5355_v46 = vor.u32 %v7096_v36, %v5352_v37  ;;  %v6995_v54 = vld [vmem:[#allocation5 + $0x1f4] sm:$0xf0] }
  0x85   :  { %1498 = vmatpush.bf16.msra.mxu0 %v5019_v60  ;;  %v5080_v44 = vld [vmem:[#allocation5 + $0x310] sm:$0xf0]  ;;  %v7092_v48 = vld [vmem:[#allocation5 + $0x504] sm:$0xf]  ;;  %v4955_v53 = vor.u32 %v6996_v39, %v4952_v40  ;;  %v7059_v60 = vld [vmem:[#allocation5 + $0x3f4] sm:$0xf0]  ;;  %v4943_v63 = vor.u32 %v6995_v54, %v4942_v52 }
  0x86   :  { %1511 = vmatpush.bf16.msra.mxu1 %v5147_v61  ;;  %v5208_v47 = vld [vmem:[#allocation5 + $0x410] sm:$0xf0]  ;;  %v5083_v57 = vor.u32 %v7028_v43, %v5080_v44  ;;  %v5199_v4 = vor.u32 %v7059_v60, %v5198_v59  ;;  %v7019_v22 = vld [vmem:[#allocation5 + $0x2b4] sm:$0xf0]  ;;  %v4766_v29 = vld [vmem:[#allocation5 + $0x88] sm:$0xf] }
  0x87   :  { %1524 = vmatpush.bf16.msra.mxu2 %v5275_v62  ;;  %v5336_v49 = vld [vmem:[#allocation5 + $0x510] sm:$0xf0]  ;;  %v5211_v58 = vor.u32 %v7060_v45, %v5208_v47  ;;  %v4815_v62 = vor.u32 %v6963_v51, %v4814_v50  ;;  %v7051_v24 = vld [vmem:[#allocation5 + $0x3b4] sm:$0xf0]  ;;  %v5039_v28 = vor.u32 %v7019_v22, %v5038_v21  ;;  %v5022_v36 = vld [vmem:[#allocation5 + $0x288] sm:$0xf] }
  0x88   :  { %1537 = vmatpush.bf16.msra.mxu3 %v5403_v2  ;;  %v5339_v61 = vor.u32 %v7092_v48, %v5336_v49  ;;  %v6959_v2 = vld [vmem:[#allocation5 + $0xd4] sm:$0xf0]  ;;  %v4750_v43 = vld [vmem:[#allocation5 + $0x68] sm:$0xf] }
  0x89   :  { %1499 = vmatpush.bf16.msra.mxu0 %v5003_v10  ;;  %v5182_v10 = vld [vmem:[#allocation5 + $0x3c8] sm:$0xf]  ;;  %v6951_v30 = vld [vmem:[#allocation5 + $0x94] sm:$0xf0] }
  0x8a   :  { %1512 = vmatpush.bf16.msra.mxu1 %v5131_v11  ;;  %v7055_v11 = vld [vmem:[#allocation5 + $0x3d4] sm:$0xf0]  ;;  %v4767_v40 = vor.u32 %v6951_v30, %v4766_v29  ;;  %v4878_v45 = vld [vmem:[#allocation5 + $0x168] sm:$0xf] }
  0x8b   :  { %1525 = vmatpush.bf16.msra.mxu2 %v5259_v12  ;;  %v4799_v12 = vor.u32 %v6959_v2, %v4798_v1  ;;  %v5183_v19 = vor.u32 %v7055_v11, %v5182_v10  ;;  %v6983_v34 = vld [vmem:[#allocation5 + $0x194] sm:$0xf0]  ;;  %v5006_v48 = vld [vmem:[#allocation5 + $0x268] sm:$0xf] }
  0x8c   :  { %1538 = vmatpush.bf16.msra.mxu3 %v5387_v17  ;;  %v6955_v17 = vld [vmem:[#allocation5 + $0xb4] sm:$0xf0]  ;;  %v5134_v50 = vld [vmem:[#allocation5 + $0x368] sm:$0xf] }
  0x8d   :  { %1500 = vmatpush.bf16.msra.mxu0 %v4987_v23  ;;  %v5166_v23 = vld [vmem:[#allocation5 + $0x3a8] sm:$0xf]  ;;  %v7015_v37 = vld [vmem:[#allocation5 + $0x294] sm:$0xf0] }
  0x8e   :  { %1513 = vmatpush.bf16.msra.mxu1 %v5115_v26  ;;  %v4783_v26 = vor.u32 %v6955_v17, %v4782_v16  ;;  %v5167_v33 = vor.u32 %v7051_v24, %v5166_v23  ;;  %v7047_v39 = vld [vmem:[#allocation5 + $0x394] sm:$0xf0]  ;;  %v4734_v55 = vld [vmem:[#allocation5 + $0x48] sm:$0xf] }
  0x8f   :  { %1526 = vmatpush.bf16.msra.mxu2 %v5243_v27  ;;  %v4911_v27 = vor.u32 %v6987_v20, %v4910_v18  ;;  %v6947_v44 = vld [vmem:[#allocation5 + $0x74] sm:$0xf0]  ;;  %v4990_v60 = vld [vmem:[#allocation5 + $0x248] sm:$0xf] }
  0x90   :  { %1539 = vmatpush.bf16.msra.mxu3 %v5371_v31  ;;  %v4894_v31 = vld [vmem:[#allocation5 + $0x188] sm:$0xf]  ;;  %v6979_v47 = vld [vmem:[#allocation5 + $0x174] sm:$0xf0]  ;;  %v4751_v52 = vor.u32 %v6947_v44, %v4750_v43 }
  0x91   :  { %1501 = vmatpush.bf16.msra.mxu0 %v4971_v38  ;;  %v5150_v38 = vld [vmem:[#allocation5 + $0x388] sm:$0xf]  ;;  %v7011_v49 = vld [vmem:[#allocation5 + $0x274] sm:$0xf0] }
  0x92   :  { %1514 = vmatpush.bf16.msra.mxu1 %v5099_v41  ;;  %v4895_v41 = vor.u32 %v6983_v34, %v4894_v31  ;;  %v7043_v51 = vld [vmem:[#allocation5 + $0x374] sm:$0xf0]  ;;  %v5007_v54 = vor.u32 %v7011_v49, %v5006_v48  ;;  %v4718_v3 = vld [vmem:[#allocation5 + $0x28] sm:$0xf]  ;;  %v6961_v34 = vld [vmem:[#allocation5 + $0xec] sm:$0xf] }
  0x93   :  { %1527 = vmatpush.bf16.msra.mxu2 %v5227_v42  ;;  %v5023_v42 = vor.u32 %v7015_v37, %v5022_v36  ;;  %v6943_v56 = vld [vmem:[#allocation5 + $0x54] sm:$0xf0]  ;;  %v4846_v5 = vld [vmem:[#allocation5 + $0x128] sm:$0xf]  ;;  %v4816_v36 = vld [vmem:[#allocation5 + $0xf8] sm:$0xf0] }
  0x94   :  { %1540 = vmatpush.bf16.msra.mxu3 %v5355_v46  ;;  %v5151_v46 = vor.u32 %v7047_v39, %v5150_v38  ;;  %v6975_v59 = vld [vmem:[#allocation5 + $0x154] sm:$0xf0]  ;;  %v4974_v10 = vld [vmem:[#allocation5 + $0x228] sm:$0xf]  ;;  %v6993_v39 = vld [vmem:[#allocation5 + $0x1ec] sm:$0xf]  ;;  %v4819_v44 = vor.u32 %v6961_v34, %v4816_v36 }
  0x95   :  { %1502 = vmatpush.bf16.msra.mxu0 %v4955_v53  ;;  %v4879_v53 = vor.u32 %v6979_v47, %v4878_v45  ;;  %v6971_v7 = vld [vmem:[#allocation5 + $0x134] sm:$0xf0]  ;;  %v4702_v16 = vld [vmem:[#allocation5 + $0x8] sm:$0xf] }
  0x96   :  { %1515 = vmatpush.bf16.msra.mxu1 %v5083_v57  ;;  %v4862_v57 = vld [vmem:[#allocation5 + $0x148] sm:$0xf]  ;;  %v7003_v11 = vld [vmem:[#allocation5 + $0x234] sm:$0xf0]  ;;  %v4847_v18 = vor.u32 %v6971_v7, %v4846_v5 }
  0x97   :  { %1528 = vmatpush.bf16.msra.mxu2 %v5211_v58  ;;  %v5135_v58 = vor.u32 %v7043_v51, %v5134_v50  ;;  %v4863_v1 = vor.u32 %v6975_v59, %v4862_v57  ;;  %v6935_v17 = vld [vmem:[#allocation5 + $0x14] sm:$0xf0]  ;;  %v4830_v20 = vld [vmem:[#allocation5 + $0x108] sm:$0xf]  ;;  %v6957_v50 = vld [vmem:[#allocation5 + $0xcc] sm:$0xf] }
  0x98   :  { %1541 = vmatpush.bf16.msra.mxu3 %v5339_v61  ;;  %1503 = vmatmul.bf16.vlgmr.msra.gmra.mxu0 %v7999_v8  ;;  %v7007_v61 = vld [vmem:[#allocation5 + $0x254] sm:$0xf0]  ;;  %v4958_v22 = vld [vmem:[#allocation5 + $0x208] sm:$0xf]  ;;  %v4703_v31 = vor.u32 %v6935_v17, %v4702_v16  ;;  %v4800_v51 = vld [vmem:[#allocation5 + $0xd8] sm:$0xf0] }
  0x99   :  { %1547 = vmatpush.bf16.msrb.mxu0 %v4815_v62  ;;  %1516 = vmatmul.bf16.vlgmr.msra.gmra.mxu1 %v8003_v15  ;;  %v5118_v62 = vld [vmem:[#allocation5 + $0x348] sm:$0xf]  ;;  %v4991_v2 = vor.u32 %v7007_v61, %v4990_v60  ;;  %v6967_v21 = vld [vmem:[#allocation5 + $0x114] sm:$0xf0]  ;;  %v4896_v16 = vld [vmem:[#allocation5 + $0x198] sm:$0xf0] }
  0x9a   :  { %1560 = vmatpush.bf16.msrb.mxu1 %v4943_v63  ;;  %1529 = vmatmul.bf16.vlgmr.msra.gmra.mxu2 %v8011_v32  ;;  %v7039_v63 = vld [vmem:[#allocation5 + $0x354] sm:$0xf0]  ;;  %v5454_v30 = vld [vmem:[#allocation5 + $0x5e8] sm:$0xf]  ;;  %v4831_v37 = vor.u32 %v6967_v21, %v4830_v20 }
  0x9b   :  { %1573 = vmatpush.bf16.msrb.mxu2 %v5071_v0  ;;  %1542 = vmatmul.bf16.vlgmr.msra.gmra.mxu3 %v8013_v35  ;;  %v4735_v0 = vor.u32 %v6943_v56, %v4734_v55  ;;  %v5119_v6 = vor.u32 %v7039_v63, %v5118_v62  ;;  %v6999_v24 = vld [vmem:[#allocation5 + $0x214] sm:$0xf0]  ;;  %v5310_v45 = vld [vmem:[#allocation5 + $0x4c8] sm:$0xf]  ;;  %v4803_v56 = vor.u32 %v6957_v50, %v4800_v51  ;;  %v6953_v62 = vld [vmem:[#allocation5 + $0xac] sm:$0xf] }
  0x9c   :  { %1586 = vmatpush.bf16.msrb.mxu3 %v5199_v4  ;;  %v6939_v4 = vld [vmem:[#allocation5 + $0x34] sm:$0xf0]  ;;  %v4959_v38 = vor.u32 %v6999_v24, %v4958_v22  ;;  %v5438_v47 = vld [vmem:[#allocation5 + $0x5c8] sm:$0xf]  ;;  %v4784_v63 = vld [vmem:[#allocation5 + $0xb8] sm:$0xf0] }
  0x9d   :  { %1548 = vmatpush.bf16.msrb.mxu0 %v4799_v12  ;;  %v5102_v12 = vld [vmem:[#allocation5 + $0x328] sm:$0xf]  ;;  %v7091_v29 = vld [vmem:[#allocation5 + $0x4f4] sm:$0xf0] }
  0x9e   :  { %1561 = vmatpush.bf16.msrb.mxu1 %v4927_v13  ;;  %v7035_v13 = vld [vmem:[#allocation5 + $0x334] sm:$0xf0]  ;;  %v5294_v57 = vld [vmem:[#allocation5 + $0x4a8] sm:$0xf] }
  0x9f   :  { %1574 = vmatpush.bf16.msrb.mxu2 %v5055_v14  ;;  %v4719_v14 = vor.u32 %v6939_v4, %v4718_v3  ;;  %v5103_v23 = vor.u32 %v7035_v13, %v5102_v12  ;;  %v7119_v49 = vld [vmem:[#allocation5 + $0x5d4] sm:$0xf0]  ;;  %v5422_v59 = vld [vmem:[#allocation5 + $0x5a8] sm:$0xf]  ;;  %v4787_v4 = vor.u32 %v6953_v62, %v4784_v63  ;;  %v6949_v12 = vld [vmem:[#allocation5 + $0x8c] sm:$0xf] }
  0xa0   :  { %1587 = vmatpush.bf16.msrb.mxu3 %v5183_v19  ;;  %v4975_v19 = vor.u32 %v7003_v11, %v4974_v10  ;;  %v5439_v55 = vor.u32 %v7119_v49, %v5438_v47  ;;  %v7115_v61 = vld [vmem:[#allocation5 + $0x5b4] sm:$0xf0]  ;;  %v5278_v5 = vld [vmem:[#allocation5 + $0x488] sm:$0xf]  ;;  %v4768_v13 = vld [vmem:[#allocation5 + $0x98] sm:$0xf0] }
  0xa1   :  { %1549 = vmatpush.bf16.msrb.mxu0 %v4783_v26  ;;  %v5086_v26 = vld [vmem:[#allocation5 + $0x308] sm:$0xf]  ;;  %v5423_v3 = vor.u32 %v7115_v61, %v5422_v59  ;;  %v7111_v11 = vld [vmem:[#allocation5 + $0x594] sm:$0xf0]  ;;  %v6933_v63 = vld [vmem:[#allocation5 + $0xc] sm:$0xf] }
  0xa2   :  { %1562 = vmatpush.bf16.msrb.mxu1 %v4911_v27  ;;  %v7031_v27 = vld [vmem:[#allocation5 + $0x314] sm:$0xf0]  ;;  %v5406_v7 = vld [vmem:[#allocation5 + $0x588] sm:$0xf] }
  0xa3   :  { %1575 = vmatpush.bf16.msrb.mxu2 %v5039_v28  ;;  %v5326_v28 = vld [vmem:[#allocation5 + $0x4e8] sm:$0xf]  ;;  %v7075_v21 = vld [vmem:[#allocation5 + $0x474] sm:$0xf0] }
  0xa4   :  { %1588 = vmatpush.bf16.msrb.mxu3 %v5167_v33  ;;  %v7123_v33 = vld [vmem:[#allocation5 + $0x5f4] sm:$0xf0]  ;;  %v5262_v20 = vld [vmem:[#allocation5 + $0x468] sm:$0xf] }
  0xa5   :  { %1550 = vmatpush.bf16.msrb.mxu0 %v4767_v40  ;;  %v4944_v40 = vld [vmem:[#allocation5 + $0x1f8] sm:$0xf0]  ;;  %v5455_v43 = vor.u32 %v7123_v33, %v5454_v30  ;;  %v5390_v22 = vld [vmem:[#allocation5 + $0x568] sm:$0xf]  ;;  %v7107_v24 = vld [vmem:[#allocation5 + $0x574] sm:$0xf0]  ;;  %v5263_v30 = vor.u32 %v7075_v21, %v5262_v20 }
  0xa6   :  { %1563 = vmatpush.bf16.msrb.mxu1 %v4895_v41  ;;  %v5087_v41 = vor.u32 %v7031_v27, %v5086_v26  ;;  %v4947_v48 = vor.u32 %v6993_v39, %v4944_v40  ;;  %v6945_v26 = vld [vmem:[#allocation5 + $0x6c] sm:$0xf]  ;;  %v4752_v27 = vld [vmem:[#allocation5 + $0x78] sm:$0xf0]  ;;  %v5246_v34 = vld [vmem:[#allocation5 + $0x448] sm:$0xf] }
  0xa7   :  { %1576 = vmatpush.bf16.msrb.mxu2 %v5023_v42  ;;  %v5327_v42 = vor.u32 %v7091_v29, %v5326_v28  ;;  %v6977_v28 = vld [vmem:[#allocation5 + $0x16c] sm:$0xf]  ;;  %v4880_v29 = vld [vmem:[#allocation5 + $0x178] sm:$0xf0]  ;;  %v4755_v33 = vor.u32 %v6945_v26, %v4752_v27  ;;  %v7071_v36 = vld [vmem:[#allocation5 + $0x454] sm:$0xf0] }
  0xa8   :  { %1589 = vmatpush.bf16.msrb.mxu3 %v5151_v46  ;;  %v7087_v46 = vld [vmem:[#allocation5 + $0x4d4] sm:$0xf0]  ;;  %v6941_v40 = vld [vmem:[#allocation5 + $0x4c] sm:$0xf]  ;;  %v5230_v47 = vld [vmem:[#allocation5 + $0x428] sm:$0xf] }
  0xa9   :  { %1551 = vmatpush.bf16.msrb.mxu0 %v4751_v52  ;;  %v6989_v52 = vld [vmem:[#allocation5 + $0x1cc] sm:$0xf]  ;;  %v7103_v39 = vld [vmem:[#allocation5 + $0x554] sm:$0xf0]  ;;  %v5358_v49 = vld [vmem:[#allocation5 + $0x528] sm:$0xf] }
  0xaa   :  { %1564 = vmatpush.bf16.msrb.mxu1 %v4879_v53  ;;  %v4928_v53 = vld [vmem:[#allocation5 + $0x1d8] sm:$0xf0]  ;;  %v7099_v51 = vld [vmem:[#allocation5 + $0x534] sm:$0xf0]  ;;  %v5342_v61 = vld [vmem:[#allocation5 + $0x508] sm:$0xf] }
  0xab   :  { %1577 = vmatpush.bf16.msrb.mxu2 %v5007_v54  ;;  %v5311_v54 = vor.u32 %v7087_v46, %v5310_v45  ;;  %v4931_v60 = vor.u32 %v6989_v52, %v4928_v53  ;;  %v6937_v52 = vld [vmem:[#allocation5 + $0x2c] sm:$0xf]  ;;  %v4720_v53 = vld [vmem:[#allocation5 + $0x38] sm:$0xf0]  ;;  %v5359_v59 = vor.u32 %v7099_v51, %v5358_v49  ;;  %v7095_v62 = vld [vmem:[#allocation5 + $0x514] sm:$0xf0] }
  0xac   :  { %1590 = vmatpush.bf16.msrb.mxu3 %v5135_v58  ;;  %v7083_v58 = vld [vmem:[#allocation5 + $0x4b4] sm:$0xf0]  ;;  %v5184_v27 = vld [vmem:[#allocation5 + $0x3d8] sm:$0xf0]  ;;  %v7013_v49 = vld [vmem:[#allocation5 + $0x28c] sm:$0xf] }
  0xad   :  { %1552 = vmatpush.bf16.msrb.mxu0 %v4735_v0  ;;  %v6985_v0 = vld [vmem:[#allocation5 + $0x1ac] sm:$0xf] }
  0xae   :  { %1565 = vmatpush.bf16.msrb.mxu1 %v4863_v1  ;;  %v4912_v1 = vld [vmem:[#allocation5 + $0x1b8] sm:$0xf0]  ;;  %v7045_v51 = vld [vmem:[#allocation5 + $0x38c] sm:$0xf] }
  0xaf   :  { %1578 = vmatpush.bf16.msrb.mxu2 %v4991_v2  ;;  %v5295_v2 = vor.u32 %v7083_v58, %v5294_v57  ;;  %v4915_v10 = vor.u32 %v6985_v0, %v4912_v1  ;;  %v5214_v57 = vld [vmem:[#allocation5 + $0x408] sm:$0xf]  ;;  %v7063_v58 = vld [vmem:[#allocation5 + $0x414] sm:$0xf0]  ;;  %v4704_v1 = vld [vmem:[#allocation5 + $0x18] sm:$0xf0] }
  0xb0   :  { %1591 = vmatpush.bf16.msrb.mxu3 %v5119_v6  ;;  %v7079_v6 = vld [vmem:[#allocation5 + $0x494] sm:$0xf0] }
  0xb1   :  { %1553 = vmatpush.bf16.msrb.mxu0 %v4719_v14  ;;  %v6981_v14 = vld [vmem:[#allocation5 + $0x18c] sm:$0xf]  ;;  %v5279_v17 = vor.u32 %v7079_v6, %v5278_v5  ;;  %v5072_v5 = vld [vmem:[#allocation5 + $0x2f8] sm:$0xf0] }
  0xb2   :  { %1566 = vmatpush.bf16.msrb.mxu1 %v4847_v18  ;;  %v5407_v18 = vor.u32 %v7111_v11, %v5406_v7  ;;  %v7057_v6 = vld [vmem:[#allocation5 + $0x3ec] sm:$0xf]  ;;  %v5215_v7 = vor.u32 %v7063_v58, %v5214_v57 }
  0xb3   :  { %1579 = vmatpush.bf16.msrb.mxu2 %v4975_v19  ;;  %v4771_v19 = vor.u32 %v6949_v12, %v4768_v13  ;;  %v7089_v11 = vld [vmem:[#allocation5 + $0x4ec] sm:$0xf]  ;;  %v5328_v12 = vld [vmem:[#allocation5 + $0x4f8] sm:$0xf0]  ;;  %v5343_v13 = vor.u32 %v7095_v62, %v5342_v61 }
  0xb4   :  { %1592 = vmatpush.bf16.msrb.mxu3 %v5103_v23  ;;  %v4899_v23 = vor.u32 %v6981_v14, %v4896_v16  ;;  %v4707_v14 = vor.u32 %v6933_v63, %v4704_v1  ;;  %v7121_v16 = vld [vmem:[#allocation5 + $0x5ec] sm:$0xf]  ;;  %v5331_v21 = vor.u32 %v7089_v11, %v5328_v12  ;;  %v5136_v63 = vld [vmem:[#allocation5 + $0x378] sm:$0xf0] }
  0xb5   :  { %1554 = vmatpush.bf16.msrb.mxu0 %v4703_v31  ;;  %v5391_v31 = vor.u32 %v7107_v24, %v5390_v22  ;;  %v7021_v22 = vld [vmem:[#allocation5 + $0x2cc] sm:$0xf]  ;;  %v5264_v1 = vld [vmem:[#allocation5 + $0x478] sm:$0xf0] }
  0xb6   :  { %1567 = vmatpush.bf16.msrb.mxu1 %v4831_v37  ;;  %v5374_v37 = vld [vmem:[#allocation5 + $0x548] sm:$0xf]  ;;  %v7053_v24 = vld [vmem:[#allocation5 + $0x3cc] sm:$0xf]  ;;  %v4992_v11 = vld [vmem:[#allocation5 + $0x258] sm:$0xf0] }
  0xb7   :  { %1580 = vmatpush.bf16.msrb.mxu2 %v4959_v38  ;;  %v4883_v38 = vor.u32 %v6977_v28, %v4880_v29  ;;  %v5375_v45 = vor.u32 %v7103_v39, %v5374_v37  ;;  %v7085_v28 = vld [vmem:[#allocation5 + $0x4cc] sm:$0xf]  ;;  %v5312_v29 = vld [vmem:[#allocation5 + $0x4d8] sm:$0xf0] }
  0xb8   :  { %1593 = vmatpush.bf16.msrb.mxu3 %v5087_v41  ;;  %1555 = vmatmul.bf16.vlgmr.msrb.gmra.mxu0 %v8001_v9  ;;  %v4736_v41 = vld [vmem:[#allocation5 + $0x58] sm:$0xf0]  ;;  %v7017_v37 = vld [vmem:[#allocation5 + $0x2ac] sm:$0xf] }
  0xb9   :  { %1599 = vmatpush.bf16.msra.mxu0 %v5327_v42  ;;  %1568 = vmatmul.bf16.vlgmr.msrb.gmra.mxu1 %v8008_v25  ;;  %v6973_v42 = vld [vmem:[#allocation5 + $0x14c] sm:$0xf]  ;;  %v4739_v46 = vor.u32 %v6941_v40, %v4736_v41  ;;  %v5168_v41 = vld [vmem:[#allocation5 + $0x3b8] sm:$0xf0] }
  0xba   :  { %1612 = vmatpush.bf16.msra.mxu1 %v5455_v43  ;;  %1581 = vmatmul.bf16.vlgmr.msrb.gmra.mxu2 %v7999_v8  ;;  %v4864_v43 = vld [vmem:[#allocation5 + $0x158] sm:$0xf0]  ;;  %v7049_v39 = vld [vmem:[#allocation5 + $0x3ac] sm:$0xf] }
  0xbb   :  { %1625 = vmatpush.bf16.msra.mxu2 %v4819_v44  ;;  %1594 = vmatmul.bf16.vlgmr.msrb.gmra.mxu3 %v8003_v15  ;;  %v5247_v44 = vor.u32 %v7071_v36, %v5246_v34  ;;  %v4867_v50 = vor.u32 %v6973_v42, %v4864_v43  ;;  %v5187_v34 = vor.u32 %v7053_v24, %v5184_v27  ;;  %v7081_v42 = vld [vmem:[#allocation5 + $0x4ac] sm:$0xf]  ;;  %v5296_v43 = vld [vmem:[#allocation5 + $0x4b8] sm:$0xf0] }
  0xbc   :  { %1638 = vmatpush.bf16.msra.mxu3 %v4947_v48  ;;  %v7067_v48 = vld [vmem:[#allocation5 + $0x434] sm:$0xf0]  ;;  %v5315_v36 = vor.u32 %v7085_v28, %v5312_v29  ;;  %v7041_v61 = vld [vmem:[#allocation5 + $0x36c] sm:$0xf]  ;;  %v5104_v29 = vld [vmem:[#allocation5 + $0x338] sm:$0xf0] }
  0xbd   :  { %1600 = vmatpush.bf16.msra.mxu0 %v5311_v54  ;;  %v6969_v54 = vld [vmem:[#allocation5 + $0x12c] sm:$0xf] }
  0xbe   :  { %1613 = vmatpush.bf16.msra.mxu1 %v5439_v55  ;;  %v4848_v55 = vld [vmem:[#allocation5 + $0x138] sm:$0xf0]  ;;  %v7037_v12 = vld [vmem:[#allocation5 + $0x34c] sm:$0xf] }
  0xbf   :  { %1626 = vmatpush.bf16.msra.mxu2 %v4803_v56  ;;  %v5231_v56 = vor.u32 %v7067_v48, %v5230_v47  ;;  %v4851_v0 = vor.u32 %v6969_v54, %v4848_v55  ;;  %v5171_v47 = vor.u32 %v7049_v39, %v5168_v41  ;;  %v5299_v48 = vor.u32 %v7081_v42, %v5296_v43  ;;  %v7077_v54 = vld [vmem:[#allocation5 + $0x48c] sm:$0xf]  ;;  %v5280_v55 = vld [vmem:[#allocation5 + $0x498] sm:$0xf0] }
  0xc0   :  { %1639 = vmatpush.bf16.msra.mxu3 %v4931_v60  ;;  %v4723_v60 = vor.u32 %v6937_v52, %v4720_v53  ;;  %v5152_v53 = vld [vmem:[#allocation5 + $0x398] sm:$0xf0]  ;;  %v7001_v24 = vld [vmem:[#allocation5 + $0x22c] sm:$0xf] }
  0xc1   :  { %1601 = vmatpush.bf16.msra.mxu0 %v5295_v2  ;;  %v6965_v2 = vld [vmem:[#allocation5 + $0x10c] sm:$0xf]  ;;  %v5155_v58 = vor.u32 %v7045_v51, %v5152_v53  ;;  %v4960_v43 = vld [vmem:[#allocation5 + $0x218] sm:$0xf0]  ;;  %v5518_v51 = vld [vmem:[#allocation8 + $0x70] sm:$0xf] }
  0xc2   :  { %1614 = vmatpush.bf16.msra.mxu1 %v5423_v3  ;;  %v4832_v3 = vld [vmem:[#allocation5 + $0x118] sm:$0xf0]  ;;  %v7033_v27 = vld [vmem:[#allocation5 + $0x32c] sm:$0xf] }
  0xc3   :  { %1627 = vmatpush.bf16.msra.mxu2 %v4787_v4  ;;  %v7025_v4 = vld [vmem:[#allocation5 + $0x2ec] sm:$0xf]  ;;  %v5107_v41 = vor.u32 %v7033_v27, %v5104_v29  ;;  %v7147_v27 = vld [vmem:[#allocation8 + $0xb4] sm:$0xf0]  ;;  %v5478_v29 = vld [vmem:[#allocation8 + $0x20] sm:$0xf] }
  0xc4   :  { %1640 = vmatpush.bf16.msra.mxu3 %v4915_v10  ;;  %v5200_v10 = vld [vmem:[#allocation5 + $0x3f8] sm:$0xf0]  ;;  %v6997_v39 = vld [vmem:[#allocation5 + $0x20c] sm:$0xf] }
  0xc5   :  { %1602 = vmatpush.bf16.msra.mxu0 %v5279_v17  ;;  %v5456_v17 = vld [vmem:[#allocation5 + $0x5f8] sm:$0xf0]  ;;  %v5203_v20 = vor.u32 %v7057_v6, %v5200_v10  ;;  %v5139_v6 = vor.u32 %v7041_v61, %v5136_v63  ;;  %v7005_v10 = vld [vmem:[#allocation5 + $0x24c] sm:$0xf]  ;;  %v4963_v53 = vor.u32 %v6997_v39, %v4960_v43  ;;  %v5470_v43 = vld [vmem:[#allocation8 + $0x10] sm:$0xf] }
  0xc6   :  { %1615 = vmatpush.bf16.msra.mxu1 %v5407_v18  ;;  %v4835_v18 = vor.u32 %v6965_v2, %v4832_v3  ;;  %v5459_v26 = vor.u32 %v7121_v16, %v5456_v17  ;;  %v7105_v2 = vld [vmem:[#allocation5 + $0x56c] sm:$0xf]  ;;  %v5392_v3 = vld [vmem:[#allocation5 + $0x578] sm:$0xf0] }
  0xc7   :  { %1628 = vmatpush.bf16.msra.mxu2 %v4771_v19  ;;  %v5075_v19 = vor.u32 %v7025_v4, %v5072_v5  ;;  %v7069_v16 = vld [vmem:[#allocation5 + $0x44c] sm:$0xf]  ;;  %v5248_v17 = vld [vmem:[#allocation5 + $0x458] sm:$0xf0] }
  0xc8   :  { %1641 = vmatpush.bf16.msra.mxu3 %v4899_v23  ;;  %v5056_v23 = vld [vmem:[#allocation5 + $0x2d8] sm:$0xf0]  ;;  %v7137_v63 = vld [vmem:[#allocation8 + $0x64] sm:$0xf0] }
  0xc9   :  { %1603 = vmatpush.bf16.msra.mxu0 %v5263_v30  ;;  %v7117_v30 = vld [vmem:[#allocation5 + $0x5cc] sm:$0xf] }
  0xca   :  { %1616 = vmatpush.bf16.msra.mxu1 %v5391_v31  ;;  %v5440_v31 = vld [vmem:[#allocation5 + $0x5d8] sm:$0xf0] }
  0xcb   :  { %1629 = vmatpush.bf16.msra.mxu2 %v4755_v33  ;;  %v5059_v33 = vor.u32 %v7021_v22, %v5056_v23  ;;  %v5443_v40 = vor.u32 %v7117_v30, %v5440_v31  ;;  %v5251_v23 = vor.u32 %v7069_v16, %v5248_v17  ;;  %v7065_v30 = vld [vmem:[#allocation5 + $0x42c] sm:$0xf]  ;;  %v5232_v31 = vld [vmem:[#allocation5 + $0x438] sm:$0xf0]  ;;  %v5494_v17 = vld [vmem:[#allocation8 + $0x40] sm:$0xf] }
  0xcc   :  { %1642 = vmatpush.bf16.msra.mxu3 %v4883_v38  ;;  %v5040_v38 = vld [vmem:[#allocation5 + $0x2b8] sm:$0xf0]  ;;  %v5235_v42 = vor.u32 %v7065_v30, %v5232_v31  ;;  %v7129_v30 = vld [vmem:[#allocation8 + $0x24] sm:$0xf0] }
  0xcd   :  { %1604 = vmatpush.bf16.msra.mxu0 %v5247_v44  ;;  %v7113_v44 = vld [vmem:[#allocation5 + $0x5ac] sm:$0xf] }
  0xce   :  { %1617 = vmatpush.bf16.msra.mxu1 %v5375_v45  ;;  %v5424_v45 = vld [vmem:[#allocation5 + $0x5b8] sm:$0xf0] }
  0xcf   :  { %1630 = vmatpush.bf16.msra.mxu2 %v4739_v46  ;;  %v5043_v46 = vor.u32 %v7017_v37, %v5040_v38  ;;  %v5427_v52 = vor.u32 %v7113_v44, %v5424_v45  ;;  %v7029_v44 = vld [vmem:[#allocation5 + $0x30c] sm:$0xf]  ;;  %v5088_v45 = vld [vmem:[#allocation5 + $0x318] sm:$0xf0] }
  0xd0   :  { %1643 = vmatpush.bf16.msra.mxu3 %v4867_v50  ;;  %v5024_v50 = vld [vmem:[#allocation5 + $0x298] sm:$0xf0] }
  0xd1   :  { %1605 = vmatpush.bf16.msra.mxu0 %v5231_v56  ;;  %v7109_v56 = vld [vmem:[#allocation5 + $0x58c] sm:$0xf]  ;;  %v5027_v57 = vor.u32 %v7013_v49, %v5024_v50  ;;  %v5344_v50 = vld [vmem:[#allocation5 + $0x518] sm:$0xf0] }
  0xd2   :  { %1618 = vmatpush.bf16.msra.mxu1 %v5359_v59  ;;  %v7009_v59 = vld [vmem:[#allocation5 + $0x26c] sm:$0xf] }
  0xd3   :  { %1631 = vmatpush.bf16.msra.mxu2 %v4723_v60  ;;  %v5008_v60 = vld [vmem:[#allocation5 + $0x278] sm:$0xf0]  ;;  %v7093_v49 = vld [vmem:[#allocation5 + $0x50c] sm:$0xf] }
  0xd4   :  { %1644 = vmatpush.bf16.msra.mxu3 %v4851_v0  ;;  %v7073_v0 = vld [vmem:[#allocation5 + $0x46c] sm:$0xf]  ;;  %v5011_v4 = vor.u32 %v7009_v59, %v5008_v60 }
  0xd5   :  { %1606 = vmatpush.bf16.msra.mxu0 %v5215_v7  ;;  %v5267_v7 = vor.u32 %v7073_v0, %v5264_v1 }
  0xd6   :  { %1619 = vmatpush.bf16.msra.mxu1 %v5343_v13  ;;  %v5395_v13 = vor.u32 %v7105_v2, %v5392_v3  ;;  %v5574_v2 = vld [vmem:[#allocation8 + $0xe0] sm:$0xf]  ;;  %v7153_v3 = vld [vmem:[#allocation8 + $0xe4] sm:$0xf0] }
  0xd7   :  { %1632 = vmatpush.bf16.msra.mxu2 %v4707_v14  ;;  %v5120_v14 = vld [vmem:[#allocation5 + $0x358] sm:$0xf0] }
  0xd8   :  { %1645 = vmatpush.bf16.msra.mxu3 %v4835_v18  ;;  %1607 = vmatmul.bf16.vlgmr.msra.gmra.mxu0 %v8011_v32  ;;  %v7101_v18 = vld [vmem:[#allocation5 + $0x54c] sm:$0xf]  ;;  %v5123_v22 = vor.u32 %v7037_v12, %v5120_v14  ;;  %v5566_v12 = vld [vmem:[#allocation8 + $0xd0] sm:$0xf] }
  0xd9   :  { %1651 = vmatpush.bf16.msrb.mxu0 %v5075_v19  ;;  %1620 = vmatmul.bf16.vlgmr.msra.gmra.mxu1 %v8013_v35  ;;  %v5376_v19 = vld [vmem:[#allocation5 + $0x558] sm:$0xf0] }
  0xda   :  { %1664 = vmatpush.bf16.msrb.mxu1 %v5203_v20  ;;  %1633 = vmatmul.bf16.vlgmr.msra.gmra.mxu2 %v8001_v9  ;;  %v5408_v9 = vld [vmem:[#allocation5 + $0x598] sm:$0xf0]  ;;  %v4995_v20 = vor.u32 %v7005_v10, %v4992_v11  ;;  %v5379_v28 = vor.u32 %v7101_v18, %v5376_v19  ;;  %v5575_v11 = vor.u32 %v7153_v3, %v5574_v2  ;;  %v5558_v18 = vld [vmem:[#allocation8 + $0xc0] sm:$0xf]  ;;  %v7149_v19 = vld [vmem:[#allocation8 + $0xc4] sm:$0xf0] }
  0xdb   :  { %1677 = vmatpush.bf16.msrb.mxu2 %v5331_v21  ;;  %1646 = vmatmul.bf16.vlgmr.msra.gmra.mxu3 %v8008_v25  ;;  %v5283_v25 = vor.u32 %v7077_v54, %v5280_v55  ;;  %v5411_v62 = vor.u32 %v7109_v56, %v5408_v9  ;;  %v8033_v21 = vpop.f32.mrf.mxu1  ;;  %v8039_v54 = vld [vmem:[#allocation7] sm:$0xf]  ;;  %v5582_v55 = vld [vmem:[#allocation8 + $0xf0] sm:$0xf]  ;;  %v7155_v56 = vld [vmem:[#allocation8 + $0xf4] sm:$0xf0] }
  0xdc   :  { %1690 = vmatpush.bf16.msrb.mxu3 %v5459_v26  ;;  %v8031_v5 = vpop.f32.mrf.mxu0  ;;  %v4976_v26 = vld [vmem:[#allocation5 + $0x238] sm:$0xf0]  ;;  %v423_v61 = vperm.slane %v8039_v54, 0  ;;  %v5583_v0 = vor.u32 %v7155_v56, %v5582_v55  ;;  %v5526_v56 = vld [vmem:[#allocation8 + $0x80] sm:$0xf]  ;;  %v424_v2 = vperm.slane %v8039_v54, 1 }
  0xdd   :  { %1652 = vmatpush.bf16.msrb.mxu0 %v5059_v33  ;;  %v4979_v38 = vor.u32 %v7001_v24, %v4976_v26  ;;  %v7135_v10 = vld [vmem:[#allocation8 + $0x54] sm:$0xf0]  ;;  %v5550_v26 = vld [vmem:[#allocation8 + $0xb0] sm:$0xf]  ;;  %v7152_v3 = vld [vmem:[#allocation8 + $0xe4] sm:$0xf] }
  0xde   :  { %1665 = vmatpush.bf16.msrb.mxu1 %v5187_v34  ;;  %v7097_v34 = vld [vmem:[#allocation5 + $0x52c] sm:$0xf]  ;;  %v8037_v37 = vpop.f32.mrf.mxu3  ;;  %v7131_v24 = vld [vmem:[#allocation8 + $0x34] sm:$0xf0]  ;;  %v5551_v31 = vor.u32 %v7147_v27, %v5550_v26  ;;  %v7148_v27 = vld [vmem:[#allocation8 + $0xc4] sm:$0xf] }
  0xdf   :  { %1678 = vmatpush.bf16.msrb.mxu2 %v5315_v36  ;;  %v5360_v36 = vld [vmem:[#allocation5 + $0x538] sm:$0xf0] }
  0xe0   :  { %1691 = vmatpush.bf16.msrb.mxu3 %v5443_v40 }
  0xe1   :  { %1653 = vmatpush.bf16.msrb.mxu0 %v5043_v46  ;;  %v5363_v46 = vor.u32 %v7097_v34, %v5360_v36  ;;  %v5542_v36 = vld [vmem:[#allocation8 + $0xa0] sm:$0xf] }
  0xe2   :  { %1666 = vmatpush.bf16.msrb.mxu1 %v5171_v47  ;;  %v7061_v47 = vld [vmem:[#allocation5 + $0x40c] sm:$0xf] }
  0xe3   :  { %1679 = vmatpush.bf16.msrb.mxu2 %v5299_v48  ;;  %v8035_v33 = vpop.f32.mrf.mxu2  ;;  %v5216_v48 = vld [vmem:[#allocation5 + $0x418] sm:$0xf0]  ;;  %v1415_v9 = vpop.f32.mrf.mxu1 }
  0xe4   :  { %1692 = vmatpush.bf16.msrb.mxu3 %v5427_v52  ;;  %v1402_v40 = vpop.f32.mrf.mxu0  ;;  %v7139_v52 = vld [vmem:[#allocation8 + $0x74] sm:$0xf0]  ;;  %v7141_v9 = vld [vmem:[#allocation8 + $0x84] sm:$0xf0] }
  0xe5   :  { %1654 = vmatpush.bf16.msrb.mxu0 %v5027_v57  ;;  %v5091_v57 = vor.u32 %v7029_v44, %v5088_v45  ;;  %v5519_v59 = vor.u32 %v7139_v52, %v5518_v51  ;;  %v5479_v40 = vor.u32 %v7129_v30, %v5478_v29  ;;  %v7127_v44 = vld [vmem:[#allocation8 + $0x14] sm:$0xf0]  ;;  %v7138_v51 = vld [vmem:[#allocation8 + $0x74] sm:$0xf]  ;;  %v5622_v29 = vld [vmem:[#allocation8 + $0x140] sm:$0xf] }
  0xe6   :  { %1667 = vmatpush.bf16.msrb.mxu1 %v5155_v58  ;;  %v5219_v58 = vor.u32 %v7061_v47, %v5216_v48  ;;  %v1441_v1 = vpop.f32.mrf.mxu3  ;;  %v5471_v47 = vor.u32 %v7127_v44, %v5470_v43  ;;  %v7165_v30 = vld [vmem:[#allocation8 + $0x144] sm:$0xf0]  ;;  %v5552_v43 = vld [vmem:[#allocation8 + $0xb8] sm:$0xf0] }
  0xe7   :  { %1680 = vmatpush.bf16.msrb.mxu2 %v5283_v25  ;;  %v5347_v25 = vor.u32 %v7093_v49, %v5344_v50  ;;  %v5462_v49 = vld [vmem:[#allocation8] sm:$0xf]  ;;  %v7125_v50 = vld [vmem:[#allocation8 + $0x4] sm:$0xf0]  ;;  %v5623_v44 = vor.u32 %v7165_v30, %v5622_v29  ;;  %v7187_v29 = vld [vmem:[#allocation8 + $0x1f4] sm:$0xf0] }
  0xe8   :  { %1693 = vmatpush.bf16.msrb.mxu3 %v5411_v62  ;;  %v5510_v62 = vld [vmem:[#allocation8 + $0x60] sm:$0xf] }
  0xe9   :  { %1655 = vmatpush.bf16.msrb.mxu0 %v5011_v4  ;;  %v5511_v4 = vor.u32 %v7137_v63, %v5510_v62  ;;  %v5527_v62 = vor.u32 %v7141_v9, %v5526_v56  ;;  %v7136_v63 = vld [vmem:[#allocation8 + $0x64] sm:$0xf]  ;;  %v5606_v9 = vld [vmem:[#allocation8 + $0x120] sm:$0xf] }
  0xea   :  { %1668 = vmatpush.bf16.msrb.mxu1 %v5139_v6  ;;  %v1401_v6 = vadd.f32 %v8031_v5, %v423_v61 }
  0xeb   :  { %1681 = vmatpush.bf16.msrb.mxu2 %v5267_v7  ;;  %v1428_v60 = vpop.f32.mrf.mxu2  ;;  %v5502_v7 = vld [vmem:[#allocation8 + $0x50] sm:$0xf] }
  0xec   :  { %1694 = vmatpush.bf16.msrb.mxu3 %v5395_v13  ;;  %v7151_v13 = vld [vmem:[#allocation8 + $0xd4] sm:$0xf0]  ;;  %v5503_v14 = vor.u32 %v7135_v10, %v5502_v7  ;;  %v1414_v16 = vadd.f32 %v8033_v21, %v1401_v6  ;;  %v5646_v6 = vld [vmem:[#allocation8 + $0x170] sm:$0xf] }
  0xed   :  { %1656 = vmatpush.bf16.msrb.mxu0 %v4995_v20  ;;  %v5567_v5 = vor.u32 %v7151_v13, %v5566_v12  ;;  %v7171_v7 = vld [vmem:[#allocation8 + $0x174] sm:$0xf0]  ;;  %v5638_v13 = vld [vmem:[#allocation8 + $0x160] sm:$0xf] }
  0xee   :  { %1669 = vmatpush.bf16.msrb.mxu1 %v5123_v22  ;;  %v5647_v12 = vor.u32 %v7171_v7, %v5646_v6  ;;  %v7159_v6 = vld [vmem:[#allocation8 + $0x114] sm:$0xf0] }
  0xef   :  { %1682 = vmatpush.bf16.msrb.mxu2 %v5251_v23  ;;  %v5486_v23 = vld [vmem:[#allocation8 + $0x30] sm:$0xf] }
  0xf0   :  { %1695 = vmatpush.bf16.msrb.mxu3 %v5379_v28  ;;  %v5487_v21 = vor.u32 %v7131_v24, %v5486_v23  ;;  %v7132_v23 = vld [vmem:[#allocation8 + $0x44] sm:$0xf]  ;;  %v5496_v24 = vld [vmem:[#allocation8 + $0x48] sm:$0xf0] }
  0xf1   :  { %1657 = vmatpush.bf16.msrb.mxu0 %v4979_v38  ;;  %v7145_v38 = vld [vmem:[#allocation8 + $0xa4] sm:$0xf0] }
  0xf2   :  { %1670 = vmatpush.bf16.msrb.mxu1 %v5107_v41  ;;  %v5543_v45 = vor.u32 %v7145_v38, %v5542_v36  ;;  %v7130_v36 = vld [vmem:[#allocation8 + $0x34] sm:$0xf]  ;;  %v5488_v38 = vld [vmem:[#allocation8 + $0x38] sm:$0xf0] }
  0xf3   :  { %1683 = vmatpush.bf16.msrb.mxu2 %v5235_v42 }
  0xf4   :  { %1696 = vmatpush.bf16.msrb.mxu3 %v5363_v46  ;;  %v5534_v46 = vld [vmem:[#allocation8 + $0x90] sm:$0xf] }
  0xf5   :  { %1658 = vmatpush.bf16.msrb.mxu0 %v4963_v53  ;;  %v1452_v20 = vpop.f32.mrf.mxu0  ;;  %v5520_v53 = vld [vmem:[#allocation8 + $0x78] sm:$0xf0] }
  0xf6   :  { %1671 = vmatpush.bf16.msrb.mxu1 %v5091_v57  ;;  %v5523_v61 = vor.u32 %v7138_v51, %v5520_v53  ;;  %v7144_v51 = vld [vmem:[#allocation8 + $0xa4] sm:$0xf] }
  0xf7   :  { %1684 = vmatpush.bf16.msrb.mxu2 %v5219_v58  ;;  %v7154_v58 = vld [vmem:[#allocation8 + $0xf4] sm:$0xf] }
  0xf8   :  { %1697 = vmatpush.bf16.msrb.mxu3 %v5347_v25  ;;  %1659 = vmatmul.bf16.vlgmr.msrb.gmra.mxu0 %v7999_v8  ;;  %v7133_v8 = vld [vmem:[#allocation8 + $0x44] sm:$0xf0]  ;;  %v5584_v25 = vld [vmem:[#allocation8 + $0xf8] sm:$0xf0] }
  0xf9   :  { %2101 = vmatpush.bf16.msra.mxu0 %v5519_v59  ;;  %1672 = vmatmul.bf16.vlgmr.msrb.gmra.mxu1 %v8003_v15  ;;  %v5495_v22 = vor.u32 %v7133_v8, %v5494_v17  ;;  %v1465_v15 = vpop.f32.mrf.mxu1  ;;  %v5463_v59 = vor.u32 %v7125_v50, %v5462_v49  ;;  %v5587_v1 = vor.u32 %v7154_v58, %v5584_v25  ;;  %v5504_v17 = vld [vmem:[#allocation8 + $0x58] sm:$0xf0] }
  0xfa   :  { %2114 = vmatpush.bf16.msra.mxu1 %v5583_v0  ;;  %1685 = vmatmul.bf16.vlgmr.msrb.gmra.mxu2 %v8011_v32  ;;  %v1427_v32 = vadd.f32 %v8035_v33, %v1414_v16  ;;  %v5512_v0 = vld [vmem:[#allocation8 + $0x68] sm:$0xf0]  ;;  %v7134_v16 = vld [vmem:[#allocation8 + $0x54] sm:$0xf] }
  0xfb   :  { %1698 = vmatmul.bf16.vlgmr.msrb.gmra.mxu3 %v8013_v35  ;;  %v5559_v35 = vor.u32 %v7149_v19, %v5558_v18  ;;  %v7150_v18 = vld [vmem:[#allocation8 + $0xd4] sm:$0xf]  ;;  %v5568_v19 = vld [vmem:[#allocation8 + $0xd8] sm:$0xf0]  ;;  %2127 = vmatpush.bf16.msra.mxu2 %v5647_v12  ;;  %v7124_v12 = vld [vmem:[#allocation8 + $0x4] sm:$0xf] }
  0xfc   :  { %v1440_v28 = vadd.f32 %v8037_v37, %v1427_v32  ;;  %v7143_v37 = vld [vmem:[#allocation8 + $0x94] sm:$0xf0]  ;;  %v5507_v32 = vor.u32 %v7134_v16, %v5504_v17  ;;  %v7140_v16 = vld [vmem:[#allocation8 + $0x84] sm:$0xf]  ;;  %v5528_v17 = vld [vmem:[#allocation8 + $0x88] sm:$0xf0] }
  0xfd   :  { %2102 = vmatpush.bf16.msra.mxu0 %v5511_v4  ;;  %v1478_v34 = vpop.f32.mrf.mxu2  ;;  %v1454_v33 = vpop.f32.mrf.mxu0  ;;  %v5535_v52 = vor.u32 %v7143_v37, %v5534_v46  ;;  %v5576_v4 = vld [vmem:[#allocation8 + $0xe8] sm:$0xf0]  ;;  %v5491_v37 = vor.u32 %v7130_v36, %v5488_v38 }
  0xfe   :  { %2115 = vmatpush.bf16.msra.mxu1 %v5575_v11  ;;  %v8050_v39 = vpop.f32.mrf.mxu3  ;;  %v1453_v42 = vadd.f32 %v1452_v20, %v1440_v28  ;;  %v5515_v11 = vor.u32 %v7136_v63, %v5512_v0  ;;  %v5579_v8 = vor.u32 %v7152_v3, %v5576_v4  ;;  %v7142_v63 = vld [vmem:[#allocation8 + $0x94] sm:$0xf]  ;;  %v5536_v0 = vld [vmem:[#allocation8 + $0x98] sm:$0xf0]  ;;  %v5598_v4 = vld [vmem:[#allocation8 + $0x110] sm:$0xf] }
 0x100   :  { %v1466_v48 = vadd.f32 %v1465_v15, %v1453_v42  ;;  %v7167_v15 = vld [vmem:[#allocation8 + $0x154] sm:$0xf0]  ;;  %v7146_v42 = vld [vmem:[#allocation8 + $0xb4] sm:$0xf] }
 0x101   :  { %2103 = vmatpush.bf16.msra.mxu0 %v5503_v14  ;;  %v1467_v41 = vpop.f32.mrf.mxu1  ;;  %v7169_v14 = vld [vmem:[#allocation8 + $0x164] sm:$0xf0]  ;;  %v5555_v49 = vor.u32 %v7146_v42, %v5552_v43  ;;  %v7164_v43 = vld [vmem:[#allocation8 + $0x144] sm:$0xf] }
 0x102   :  { %2116 = vmatpush.bf16.msra.mxu1 %v5567_v5  ;;  %v1703_v60 = vmax.f32 %v1466_v48, 0.0  ;;  %v1479_v5 = vadd.f32 %v1478_v34, %v424_v2  ;;  %v5639_v20 = vor.u32 %v7169_v14, %v5638_v13  ;;  %v5480_v48 = vld [vmem:[#allocation8 + $0x28] sm:$0xf0]  ;;  %v5539_v14 = vor.u32 %v7142_v63, %v5536_v0  ;;  %v5670_v0 = vld [vmem:[#allocation8 + $0x1a0] sm:$0xf] }
 0x103   :  { %v5464_v13 = vld [vmem:[#allocation8 + $0x8] sm:$0xf0] }
 0x104   :  { %v8053_v10 = vpack.c.bf16 %v1703_v60, %v1703_v60  ;;  %v1492_v26 = vadd.f32 %v8050_v39, %v1479_v5  ;;  %2128 = vmatpush.bf16.msra.mxu2 %v5639_v20  ;;  %v5614_v39 = vld [vmem:[#allocation8 + $0x130] sm:$0xf]  ;;  %v5472_v60 = vld [vmem:[#allocation8 + $0x18] sm:$0xf0]  ;;  %v5599_v5 = vor.u32 %v7159_v6, %v5598_v4  ;;  %v7157_v20 = vld [vmem:[#allocation8 + $0x104] sm:$0xf0] }
 0x105   :  { %2104 = vmatpush.bf16.msra.mxu0 %v5495_v22  ;;  %v1480_v55 = vpop.f32.mrf.mxu2  ;;  %v5630_v22 = vld [vmem:[#allocation8 + $0x150] sm:$0xf]  ;;  %v7156_v6 = vld [vmem:[#allocation8 + $0x104] sm:$0xf] }
 0x106   :  { %2117 = vmatpush.bf16.msra.mxu1 %v5559_v35  ;;  %v1493_v57 = vpop.f32.mrf.mxu3  ;;  %v5571_v35 = vor.u32 %v7150_v18, %v5568_v19  ;;  %v5631_v28 = vor.u32 %v7167_v15, %v5630_v22  ;;  %v5590_v19 = vld [vmem:[#allocation8 + $0x100] sm:$0xf]  ;;  %v5467_v22 = vor.u32 %v7124_v12, %v5464_v13  ;;  %v7170_v15 = vld [vmem:[#allocation8 + $0x174] sm:$0xf]  ;;  %v5662_v13 = vld [vmem:[#allocation8 + $0x190] sm:$0xf] }
 0x107   :  { %v7161_v57 = vld [vmem:[#allocation8 + $0x124] sm:$0xf0] }
 0x108   :  { %2129 = vmatpush.bf16.msra.mxu2 %v5631_v28  ;;  %v5607_v2 = vor.u32 %v7161_v57, %v5606_v9  ;;  %v5710_v28 = vld [vmem:[#allocation8 + $0x1f0] sm:$0xf]  ;;  %v5608_v57 = vld [vmem:[#allocation8 + $0x128] sm:$0xf0] }
 0x109   :  { %2105 = vmatpush.bf16.msra.mxu0 %v5487_v21  ;;  %v5560_v21 = vld [vmem:[#allocation8 + $0xc8] sm:$0xf0]  ;;  %v5711_v30 = vor.u32 %v7187_v29, %v5710_v28 }
 0x10a   :  { %2118 = vmatpush.bf16.msra.mxu1 %v5551_v31  ;;  %v5499_v31 = vor.u32 %v7132_v23, %v5496_v24  ;;  %v5563_v33 = vor.u32 %v7148_v27, %v5560_v21  ;;  %v5531_v23 = vor.u32 %v7140_v16, %v5528_v17  ;;  %v5591_v24 = vor.u32 %v7157_v20, %v5590_v19  ;;  %v5640_v27 = vld [vmem:[#allocation8 + $0x168] sm:$0xf0]  ;;  %v7173_v19 = vld [vmem:[#allocation8 + $0x184] sm:$0xf0] }
 0x10b   :  { %2140 = vmatpush.bf16.msra.mxu3 %v5711_v30  ;;  %v7182_v30 = vld [vmem:[#allocation8 + $0x1d4] sm:$0xf] }
 0x10c   :  { %2130 = vmatpush.bf16.msra.mxu2 %v5623_v44  ;;  %v5624_v44 = vld [vmem:[#allocation8 + $0x148] sm:$0xf0] }
 0x10d   :  { %2106 = vmatpush.bf16.msra.mxu0 %v5479_v40 }
 0x10e   :  { %2119 = vmatpush.bf16.msra.mxu1 %v5543_v45  ;;  %v7163_v45 = vld [vmem:[#allocation8 + $0x134] sm:$0xf0] }
 0x10f   :  { %v5615_v53 = vor.u32 %v7163_v45, %v5614_v39  ;;  %v5694_v39 = vld [vmem:[#allocation8 + $0x1d0] sm:$0xf]  ;;  %v7183_v45 = vld [vmem:[#allocation8 + $0x1d4] sm:$0xf0] }
 0x111   :  { %2107 = vmatpush.bf16.msra.mxu0 %v5471_v47  ;;  %v7128_v47 = vld [vmem:[#allocation8 + $0x24] sm:$0xf]  ;;  %2131 = vmatpush.bf16.msra.mxu2 %v5615_v53  ;;  %v7181_v53 = vld [vmem:[#allocation8 + $0x1c4] sm:$0xf0] }
 0x112   :  { %2120 = vmatpush.bf16.msra.mxu1 %v5535_v52  ;;  %v5544_v52 = vld [vmem:[#allocation8 + $0xa8] sm:$0xf0]  ;;  %v5483_v58 = vor.u32 %v7128_v47, %v5480_v48  ;;  %v7162_v47 = vld [vmem:[#allocation8 + $0x134] sm:$0xf]  ;;  %v5616_v48 = vld [vmem:[#allocation8 + $0x138] sm:$0xf0] }
 0x115   :  { %2108 = vmatpush.bf16.msra.mxu0 %v5463_v59  ;;  %v1504_v34 = vpop.f32.mrf.mxu0  ;;  %v7126_v59 = vld [vmem:[#allocation8 + $0x14] sm:$0xf]  ;;  %2132 = vmatpush.bf16.msra.mxu2 %v5607_v2 }
 0x116   :  { %2121 = vmatpush.bf16.msra.mxu1 %v5527_v62  ;;  %v1505_v40 = vadd.f32 %v1504_v34, %v1492_v26  ;;  %v1517_v41 = vpop.f32.mrf.mxu1  ;;  %v5475_v7 = vor.u32 %v7126_v59, %v5472_v60  ;;  %v7168_v26 = vld [vmem:[#allocation8 + $0x164] sm:$0xf]  ;;  %v5632_v34 = vld [vmem:[#allocation8 + $0x158] sm:$0xf0]  ;;  %v425_v60 = vperm.slane %v8039_v54, 2 }
 0x117   :  { %v5643_v21 = vor.u32 %v7168_v26, %v5640_v27  ;;  %v5704_v26 = vld [vmem:[#allocation8 + $0x1e8] sm:$0xf0] }
 0x118   :  { %2109 = vmatmul.bf16.vlgmr.msra.gmra.mxu0 %v8053_v10  ;;  %v1518_v46 = vadd.f32 %v1517_v41, %v1505_v40  ;;  %v5702_v40 = vld [vmem:[#allocation8 + $0x1e0] sm:$0xf]  ;;  %v7185_v41 = vld [vmem:[#allocation8 + $0x1e4] sm:$0xf0] }
 0x119   :  { %2153 = vmatpush.bf16.msrb.mxu0 %v5523_v61  ;;  %v5547_v61 = vor.u32 %v7144_v51, %v5544_v52  ;;  %2133 = vmatpush.bf16.msra.mxu2 %v5599_v5  ;;  %v5703_v42 = vor.u32 %v7185_v41, %v5702_v40  ;;  %v5619_v51 = vor.u32 %v7162_v47, %v5616_v48  ;;  %v5686_v52 = vld [vmem:[#allocation8 + $0x1c0] sm:$0xf]  ;;  %v5672_v47 = vld [vmem:[#allocation8 + $0x1a8] sm:$0xf0] }
 0x11a   :  { %2166 = vmatpush.bf16.msrb.mxu1 %v5587_v1  ;;  %v5687_v9 = vor.u32 %v7181_v53, %v5686_v52  ;;  %v5664_v52 = vld [vmem:[#allocation8 + $0x198] sm:$0xf0] }
 0x11b   :  { %2141 = vmatpush.bf16.msra.mxu3 %v5703_v42  ;;  %v7180_v42 = vld [vmem:[#allocation8 + $0x1c4] sm:$0xf] }
 0x11d   :  { %2154 = vmatpush.bf16.msrb.mxu0 %v5515_v11  ;;  %v1530_v50 = vpop.f32.mrf.mxu2  ;;  %v1506_v62 = vpop.f32.mrf.mxu0  ;;  %2134 = vmatpush.bf16.msra.mxu2 %v5591_v24 }
 0x11e   :  { %2167 = vmatpush.bf16.msrb.mxu1 %v5579_v8  ;;  %v1531_v55 = vadd.f32 %v1530_v50, %v1518_v46  ;;  %v1543_v56 = vpop.f32.mrf.mxu3  ;;  %v1519_v1 = vpop.f32.mrf.mxu1  ;;  %v5695_v46 = vor.u32 %v7183_v45, %v5694_v39  ;;  %v5600_v62 = vld [vmem:[#allocation8 + $0x118] sm:$0xf0]  ;;  %v7178_v39 = vld [vmem:[#allocation8 + $0x1b4] sm:$0xf] }
 0x11f   :  { %v7177_v1 = vld [vmem:[#allocation8 + $0x1a4] sm:$0xf0]  ;;  %v5680_v45 = vld [vmem:[#allocation8 + $0x1b8] sm:$0xf0] }
 0x120   :  { %v1544_v25 = vadd.f32 %v1543_v56, %v1531_v55  ;;  %2142 = vmatpush.bf16.msra.mxu3 %v5695_v46  ;;  %v7160_v55 = vld [vmem:[#allocation8 + $0x124] sm:$0xf]  ;;  %v5671_v12 = vor.u32 %v7177_v1, %v5670_v0  ;;  %v5683_v46 = vor.u32 %v7178_v39, %v5680_v45 }
 0x121   :  { %2155 = vmatpush.bf16.msrb.mxu0 %v5507_v32  ;;  %v5648_v32 = vld [vmem:[#allocation8 + $0x178] sm:$0xf0]  ;;  %v5611_v59 = vor.u32 %v7160_v55, %v5608_v57  ;;  %v7172_v55 = vld [vmem:[#allocation8 + $0x184] sm:$0xf] }
 0x122   :  { %2168 = vmatpush.bf16.msrb.mxu1 %v5571_v35  ;;  %v1704_v3 = vmax.f32 %v1544_v25, 0.0  ;;  %v5651_v35 = vor.u32 %v7170_v15, %v5648_v32  ;;  %v7179_v25 = vld [vmem:[#allocation8 + $0x1b4] sm:$0xf0]  ;;  %v5712_v15 = vld [vmem:[#allocation8 + $0x1f8] sm:$0xf0]  ;;  %v7196_v39 = vld [vmem:[#allocation11 + $0x40] sm:$0xff] }
 0x124   :  { %v1708_v11 = vpack.c.bf16 %v1704_v3, %v1704_v3  ;;  %2179 = vmatpush.bf16.msrb.mxu2 %v5651_v35  ;;  %2143 = vmatpush.bf16.msra.mxu3 %v5687_v9  ;;  %v7184_v35 = vld [vmem:[#allocation8 + $0x1e4] sm:$0xf]  ;;  %v426_v9 = vperm.slane %v8039_v54, 3 }
 0x125   :  { %2156 = vmatpush.bf16.msrb.mxu0 %v5499_v31  ;;  %v1532_v8 = vpop.f32.mrf.mxu2  ;;  %v7166_v31 = vld [vmem:[#allocation8 + $0x154] sm:$0xf]  ;;  %v5707_v28 = vor.u32 %v7184_v35, %v5704_v26  ;;  %v7195_v35 = vld [vmem:[#allocation11 + $0x38] sm:$0xff] }
 0x126   :  { %2169 = vmatpush.bf16.msrb.mxu1 %v5563_v33  ;;  %v1545_v18 = vpop.f32.mrf.mxu3  ;;  %v5635_v38 = vor.u32 %v7166_v31, %v5632_v34  ;;  %v5696_v31 = vld [vmem:[#allocation8 + $0x1d8] sm:$0xf0]  ;;  %v7194_v26 = vld [vmem:[#allocation11 + $0x30] sm:$0xff] }
 0x127   :  { %2122 = vmatmul.bf16.vlgmr.msra.gmra.mxu1 %v1708_v11  ;;  %v5654_v18 = vld [vmem:[#allocation8 + $0x180] sm:$0xf] }
 0x128   :  { %2180 = vmatpush.bf16.msrb.mxu2 %v5643_v21  ;;  %v5655_v20 = vor.u32 %v7173_v19, %v5654_v18 }
 0x129   :  { %2157 = vmatpush.bf16.msrb.mxu0 %v5491_v37 }
 0x12a   :  { %2170 = vmatpush.bf16.msrb.mxu1 %v5555_v49 }
 0x12c   :  { %2181 = vmatpush.bf16.msrb.mxu2 %v5635_v38 }
 0x12d   :  { %2158 = vmatpush.bf16.msrb.mxu0 %v5483_v58  ;;  %v5678_v58 = vld [vmem:[#allocation8 + $0x1b0] sm:$0xf] }
 0x12e   :  { %2171 = vmatpush.bf16.msrb.mxu1 %v5547_v61  ;;  %v7158_v61 = vld [vmem:[#allocation8 + $0x114] sm:$0xf]  ;;  %v5679_v63 = vor.u32 %v7179_v25, %v5678_v58 }
 0x12f   :  { %v5603_v2 = vor.u32 %v7158_v61, %v5600_v62 }
 0x130   :  { %2144 = vmatpush.bf16.msra.mxu3 %v5679_v63 }
 0x131   :  { %2159 = vmatpush.bf16.msrb.mxu0 %v5475_v7  ;;  %v5592_v7 = vld [vmem:[#allocation8 + $0x108] sm:$0xf0] }
 0x132   :  { %2172 = vmatpush.bf16.msrb.mxu1 %v5539_v14  ;;  %v7175_v14 = vld [vmem:[#allocation8 + $0x194] sm:$0xf0]  ;;  %v5595_v16 = vor.u32 %v7156_v6, %v5592_v7 }
 0x133   :  { %v5663_v8 = vor.u32 %v7175_v14, %v5662_v13  ;;  %v1775_v14 = vld [vmem:[#allocation10] sm:$0x3] }
 0x134   :  { %2145 = vmatpush.bf16.msra.mxu3 %v5671_v12 }
 0x135   :  { %2160 = vmatpush.bf16.msrb.mxu0 %v5467_v22  ;;  %v1556_v36 = vpop.f32.mrf.mxu0  ;;  %v7186_v22 = vld [vmem:[#allocation8 + $0x1f4] sm:$0xf] }
 0x136   :  { %2173 = vmatpush.bf16.msrb.mxu1 %v5531_v23  ;;  %v1569_v33 = vpop.f32.mrf.mxu1  ;;  %v1557_v3 = vadd.f32 %v1556_v36, %v425_v60  ;;  %v5715_v23 = vor.u32 %v7186_v22, %v5712_v15  ;;  %v5699_v36 = vor.u32 %v7182_v30, %v5696_v31  ;;  %v7202_v30 = vld [vmem:[#allocation11 + $0x70] sm:$0xff] }
 0x137   :  { %v7190_v31 = vld [vmem:[#allocation11 + $0x10] sm:$0xff] }
 0x138   :  { %2161 = vmatmul.bf16.vlgmr.msrb.gmra.mxu0 %v8053_v10  ;;  %v5627_v10 = vor.u32 %v7164_v43, %v5624_v44  ;;  %v1570_v17 = vadd.f32 %v1569_v33, %v1557_v3  ;;  %2146 = vmatpush.bf16.msra.mxu3 %v5663_v8  ;;  %v5688_v43 = vld [vmem:[#allocation8 + $0x1c8] sm:$0xf0] }
 0x139   :  { %2174 = vmatmul.bf16.vlgmr.msrb.gmra.mxu1 %v1708_v11  ;;  %2341 = vmatpush.bf16.msra.mxu0 %v7195_v35  ;;  %v5832_v35 = vld [vmem:[#allocation13 + $0x6c] sm:$0xf0] }
 0x13a   :  { %2182 = vmatpush.bf16.msrb.mxu2 %v5627_v10  ;;  %v5691_v10 = vor.u32 %v7180_v42, %v5688_v43  ;;  %v7199_v42 = vld [vmem:[#allocation11 + $0x58] sm:$0xff]  ;;  %v7198_v43 = vld [vmem:[#allocation11 + $0x50] sm:$0xff] }
 0x13c   :  { %2147 = vmatpush.bf16.msra.mxu3 %v5655_v20  ;;  %v1778_v20 = vperm.slane %v1775_v14, 1 }
 0x13d   :  { %v1582_v37 = vpop.f32.mrf.mxu2  ;;  %v1558_v49 = vpop.f32.mrf.mxu0  ;;  %2342 = vmatpush.bf16.msra.mxu0 %v7194_v26  ;;  %v5838_v26 = vld [vmem:[#allocation13 + $0x68] sm:$0xf] }
 0x13e   :  { %v1595_v50 = vpop.f32.mrf.mxu3  ;;  %v1571_v56 = vpop.f32.mrf.mxu1  ;;  %2183 = vmatpush.bf16.msrb.mxu2 %v5619_v51  ;;  %v1583_v5 = vadd.f32 %v1582_v37, %v1570_v17  ;;  %v7176_v37 = vld [vmem:[#allocation8 + $0x1a4] sm:$0xf]  ;;  %v7174_v51 = vld [vmem:[#allocation8 + $0x194] sm:$0xf] }
 0x13f   :  { %v5675_v49 = vor.u32 %v7176_v37, %v5672_v47  ;;  %v5667_v53 = vor.u32 %v7174_v51, %v5664_v52  ;;  %v5656_v56 = vld [vmem:[#allocation8 + $0x188] sm:$0xf0]  ;;  %v7226_v37 = vld [vmem:[#allocation13 + $0xb0] sm:$0xf0]  ;;  %v7227_v51 = vld [vmem:[#allocation13 + $0xb8] sm:$0xf0] }
 0x140   :  { %v1596_v32 = vadd.f32 %v1595_v50, %v1583_v5  ;;  %2192 = vmatpush.bf16.msrb.mxu3 %v5715_v23  ;;  %v5659_v57 = vor.u32 %v7172_v55, %v5656_v56  ;;  %v7225_v47 = vld [vmem:[#allocation13 + $0xac] sm:$0xf]  ;;  %v5854_v55 = vld [vmem:[#allocation13 + $0x90] sm:$0xf]  ;;  %v7223_v56 = vld [vmem:[#allocation13 + $0x98] sm:$0xf0] }
 0x142   :  { %2184 = vmatpush.bf16.msrb.mxu2 %v5611_v59 }
 0x144   :  { %2193 = vmatpush.bf16.msrb.mxu3 %v5707_v28  ;;  %v7191_v28 = vld [vmem:[#allocation11 + $0x18] sm:$0xff] }
 0x145   :  { %v1584_v4 = vpop.f32.mrf.mxu2 }
 0x146   :  { %v1597_v11 = vpop.f32.mrf.mxu3  ;;  %2185 = vmatpush.bf16.msrb.mxu2 %v5603_v2 }
 0x148   :  { %2194 = vmatpush.bf16.msrb.mxu3 %v5699_v36  ;;  %v7189_v36 = vld [vmem:[#allocation11 + $0x8] sm:$0xff] }
 0x14a   :  { %2186 = vmatpush.bf16.msrb.mxu2 %v5595_v16  ;;  %v1777_v16 = vperm.slane %v1775_v14, 0 }
 0x14c   :  { %2195 = vmatpush.bf16.msrb.mxu3 %v5691_v10  ;;  %v7197_v10 = vld [vmem:[#allocation11 + $0x48] sm:$0xff] }
 0x150   :  { %2196 = vmatpush.bf16.msrb.mxu3 %v5683_v46  ;;  %v5866_v46 = vld [vmem:[#allocation13 + $0xa8] sm:$0xf] }
 0x154   :  { %2197 = vmatpush.bf16.msrb.mxu3 %v5675_v49  ;;  %v5868_v49 = vld [vmem:[#allocation13 + $0xb4] sm:$0xf0] }
 0x155   :  { %v1608_v24 = vpop.f32.mrf.mxu0  ;;  %v5871_v52 = vor.u32 %v7225_v47, %v5868_v49  ;;  %v5794_v47 = vld [vmem:[#allocation13 + $0x18] sm:$0xf]  ;;  %v7207_v49 = vld [vmem:[#allocation13 + $0x1c] sm:$0xf] }
 0x156   :  { %v1609_v27 = vadd.f32 %v1608_v24, %v1596_v32  ;;  %v1621_v21 = vpop.f32.mrf.mxu1 }
 0x158   :  { %v1622_v29 = vadd.f32 %v1621_v21, %v1609_v27  ;;  %2198 = vmatpush.bf16.msrb.mxu3 %v5667_v53  ;;  %v7193_v27 = vld [vmem:[#allocation11 + $0x28] sm:$0xff]  ;;  %v7192_v21 = vld [vmem:[#allocation11 + $0x20] sm:$0xff] }
 0x159   :  { %2343 = vmatpush.bf16.msra.mxu0 %v7193_v27  ;;  %v7218_v27 = vld [vmem:[#allocation13 + $0x70] sm:$0xf0] }
 0x15a   :  { %v1705_v34 = vmax.f32 %v1622_v29, 0.0  ;;  %v7203_v29 = vld [vmem:[#allocation11 + $0x78] sm:$0xff] }
 0x15b   :  { %2354 = vmatpush.bf16.msra.mxu1 %v7203_v29  ;;  %v5818_v29 = vld [vmem:[#allocation13 + $0x48] sm:$0xf] }
 0x15c   :  { %v1709_v38 = vpack.c.bf16 %v1705_v34, %v1705_v34  ;;  %2199 = vmatpush.bf16.msrb.mxu3 %v5659_v57  ;;  %v5855_v57 = vor.u32 %v7223_v56, %v5854_v55 }
 0x15d   :  { %v1634_v33 = vpop.f32.mrf.mxu2  ;;  %v1610_v41 = vpop.f32.mrf.mxu0  ;;  %2344 = vmatpush.bf16.msra.mxu0 %v7192_v21 }
 0x15e   :  { %v1647_v40 = vpop.f32.mrf.mxu3  ;;  %2135 = vmatmul.bf16.vlgmr.msra.gmra.mxu2 %v1709_v38  ;;  %v1623_v44 = vpop.f32.mrf.mxu1  ;;  %v1635_v58 = vadd.f32 %v1634_v33, %v426_v9  ;;  %v7188_v33 = vld [vmem:[#allocation11] sm:$0xff]  ;;  %v7222_v9 = vld [vmem:[#allocation13 + $0x94] sm:$0xf] }
 0x15f   :  { %2355 = vmatpush.bf16.msra.mxu1 %v7202_v30  ;;  %v7214_v30 = vld [vmem:[#allocation13 + $0x50] sm:$0xf0] }
 0x160   :  { %v1648_v25 = vadd.f32 %v1647_v40, %v1635_v58  ;;  %v7200_v40 = vld [vmem:[#allocation11 + $0x60] sm:$0xff] }
 0x161   :  { %2345 = vmatpush.bf16.msra.mxu0 %v7191_v28  ;;  %v5856_v58 = vld [vmem:[#allocation13 + $0x9c] sm:$0xf0]  ;;  %v5839_v28 = vor.u32 %v7218_v27, %v5838_v26  ;;  %v7250_v26 = vld [vmem:[#allocation16 + $0xac] sm:$0xf0] }
 0x165   :  { %v1636_v48 = vpop.f32.mrf.mxu2  ;;  %2346 = vmatpush.bf16.msra.mxu0 %v7190_v31  ;;  %v7213_v31 = vld [vmem:[#allocation13 + $0x4c] sm:$0xf] }
 0x166   :  { %v1649_v50 = vpop.f32.mrf.mxu3  ;;  %v5867_v48 = vor.u32 %v7226_v37, %v5866_v46 }
 0x167   :  { %v5874_v50 = vld [vmem:[#allocation13 + $0xb0] sm:$0xf] }
 0x168   :  { %v5875_v53 = vor.u32 %v7227_v51, %v5874_v50  ;;  %2536 = vmatpush.bf16.msra.mxu2 %v5867_v48  ;;  %v7208_v48 = vld [vmem:[#allocation13 + $0x20] sm:$0xf0]  ;;  %v5796_v51 = vld [vmem:[#allocation13 + $0x24] sm:$0xf0] }
 0x169   :  { %2347 = vmatpush.bf16.msra.mxu0 %v7189_v36  ;;  %v5826_v36 = vld [vmem:[#allocation13 + $0x50] sm:$0xf]  ;;  %v5795_v50 = vor.u32 %v7208_v48, %v5794_v47  ;;  %v5799_v55 = vor.u32 %v7207_v49, %v5796_v51  ;;  %v5926_v49 = vld [vmem:[#allocation16 + $0x60] sm:$0xf] }
 0x16a   :  { %v6054_v51 = vld [vmem:[#allocation16 + $0x160] sm:$0xf] }
 0x16c   :  { %2537 = vmatpush.bf16.msra.mxu2 %v5855_v57  ;;  %v7205_v57 = vld [vmem:[#allocation13 + $0x8] sm:$0xf0] }
 0x16d   :  { %2348 = vmatpush.bf16.msra.mxu0 %v7188_v33 }
 0x16e   :  { %2187 = vmatmul.bf16.vlgmr.msrb.gmra.mxu2 %v1709_v38  ;;  %v7201_v38 = vld [vmem:[#allocation11 + $0x68] sm:$0xff] }
 0x16f   :  { %2356 = vmatpush.bf16.msra.mxu1 %v7201_v38  ;;  %v7215_v38 = vld [vmem:[#allocation13 + $0x58] sm:$0xf0] }
 0x171   :  { %2562 = vmatpush.bf16.msrb.mxu0 %v5875_v53  ;;  %v7209_v53 = vld [vmem:[#allocation13 + $0x28] sm:$0xf0] }
 0x173   :  { %2357 = vmatpush.bf16.msra.mxu1 %v7200_v40  ;;  %v5827_v40 = vor.u32 %v7215_v38, %v5826_v36 }
 0x175   :  { %v1660_v59 = vpop.f32.mrf.mxu0 }
 0x176   :  { %v1673_v60 = vpop.f32.mrf.mxu1  ;;  %v1661_v61 = vadd.f32 %v1660_v59, %v1648_v25  ;;  %v5862_v25 = vld [vmem:[#allocation13 + $0x98] sm:$0xf]  ;;  %v7224_v59 = vld [vmem:[#allocation13 + $0xa0] sm:$0xf0] }
 0x177   :  { %2358 = vmatpush.bf16.msra.mxu1 %v7199_v42  ;;  %v7211_v42 = vld [vmem:[#allocation13 + $0x38] sm:$0xf0] }
 0x178   :  { %v1674_v62 = vadd.f32 %v1673_v60, %v1661_v61  ;;  %v5859_v60 = vor.u32 %v7222_v9, %v5856_v58  ;;  %v5863_v61 = vor.u32 %v7224_v59, %v5862_v25  ;;  %v5782_v9 = vld [vmem:[#allocation13] sm:$0xf]  ;;  %v7204_v58 = vld [vmem:[#allocation13 + $0x4] sm:$0xf]  ;;  %v5784_v59 = vld [vmem:[#allocation13 + $0xc] sm:$0xf0] }
 0x179   :  { %v5783_v25 = vor.u32 %v7205_v57, %v5782_v9  ;;  %v7272_v9 = vld [vmem:[#allocation16 + $0x164] sm:$0xf]  ;;  %v6056_v57 = vld [vmem:[#allocation16 + $0x170] sm:$0xf0] }
 0x17a   :  { %2563 = vmatpush.bf16.msrb.mxu0 %v5863_v61  ;;  %v7206_v61 = vld [vmem:[#allocation13 + $0x10] sm:$0xf0] }
 0x17b   :  { %2359 = vmatpush.bf16.msra.mxu1 %v7198_v43  ;;  %v7210_v43 = vld [vmem:[#allocation13 + $0x34] sm:$0xf] }
 0x17d   :  { %v1686_v63 = vpop.f32.mrf.mxu2  ;;  %v1662_v2 = vpop.f32.mrf.mxu0 }
 0x17e   :  { %v1687_v0 = vadd.f32 %v1686_v63, %v1674_v62  ;;  %v1699_v1 = vpop.f32.mrf.mxu3  ;;  %v1675_v3 = vpop.f32.mrf.mxu1  ;;  %v5842_v62 = vld [vmem:[#allocation13 + $0x78] sm:$0xf]  ;;  %v7220_v63 = vld [vmem:[#allocation13 + $0x80] sm:$0xf0]  ;;  %v5850_v2 = vld [vmem:[#allocation13 + $0x80] sm:$0xf] }
 0x17f   :  { %2360 = vmatpush.bf16.msra.mxu1 %v7197_v10  ;;  %v7221_v3 = vld [vmem:[#allocation13 + $0x88] sm:$0xf0]  ;;  %v5808_v10 = vld [vmem:[#allocation13 + $0x3c] sm:$0xf0] }
 0x180   :  { %v1700_v4 = vadd.f32 %v1699_v1, %v1687_v0  ;;  %v7219_v0 = vld [vmem:[#allocation13 + $0x7c] sm:$0xf]  ;;  %v5844_v1 = vld [vmem:[#allocation13 + $0x84] sm:$0xf0]  ;;  %v5811_v46 = vor.u32 %v7210_v43, %v5808_v10 }
 0x181   :  { %v7244_v10 = vld [vmem:[#allocation16 + $0x84] sm:$0xf] }
 0x182   :  { %v1706_v6 = vmax.f32 %v1700_v4, 0.0 }
 0x183   :  { %2361 = vmatpush.bf16.msra.mxu1 %v7196_v39  ;;  %v5814_v39 = vld [vmem:[#allocation13 + $0x38] sm:$0xf] }
 0x184   :  { %v1710_v7 = vpack.c.bf16 %v1706_v6, %v1706_v6  ;;  %v5843_v6 = vor.u32 %v7220_v63, %v5842_v62  ;;  %v5787_v62 = vor.u32 %v7204_v58, %v5784_v59 }
 0x185   :  { %v1688_v11 = vpop.f32.mrf.mxu2 }
 0x186   :  { %v1701_v54 = vpop.f32.mrf.mxu3  ;;  %2148 = vmatmul.bf16.vlgmr.msra.gmra.mxu3 %v1710_v7  ;;  %v5847_v11 = vor.u32 %v7219_v0, %v5844_v1  ;;  %2538 = vmatpush.bf16.msra.mxu2 %v5843_v6  ;;  %v5990_v0 = vld [vmem:[#allocation16 + $0xe0] sm:$0xf]  ;;  %v7258_v1 = vld [vmem:[#allocation16 + $0xec] sm:$0xf0]  ;;  %v7256_v6 = vld [vmem:[#allocation16 + $0xe4] sm:$0xf] }
 0x187   :  { %2549 = vmatpush.bf16.msra.mxu3 %v5871_v52  ;;  %v5851_v54 = vor.u32 %v7221_v3, %v5850_v2  ;;  %v5802_v52 = vld [vmem:[#allocation13 + $0x20] sm:$0xf]  ;;  %v6118_v2 = vld [vmem:[#allocation16 + $0x1e0] sm:$0xf]  ;;  %v5991_v3 = vor.u32 %v7258_v1, %v5990_v0  ;;  %v6059_v0 = vor.u32 %v7272_v9, %v6056_v57  ;;  %v7270_v1 = vld [vmem:[#allocation16 + $0x14c] sm:$0xf0] }
 0x188   :  { %v5803_v56 = vor.u32 %v7209_v53, %v5802_v52  ;;  %v7274_v53 = vld [vmem:[#allocation16 + $0x16c] sm:$0xf0]  ;;  %v7287_v57 = vld [vmem:[#allocation16 + $0x1d4] sm:$0xf0] }
 0x189   :  { %2564 = vmatpush.bf16.msrb.mxu0 %v5851_v54  ;;  %2975 = vmatpush.bf16.msrb.mxu1 %v5991_v3  ;;  %v6055_v59 = vor.u32 %v7274_v53, %v6054_v51  ;;  %v5912_v3 = vld [vmem:[#allocation16 + $0x50] sm:$0xf0]  ;;  %v5982_v53 = vld [vmem:[#allocation16 + $0xc8] sm:$0xf] }
 0x18b   :  { %2550 = vmatpush.bf16.msra.mxu3 %v5859_v60  ;;  %v5790_v60 = vld [vmem:[#allocation13 + $0x8] sm:$0xf] }
 0x18c   :  { %v5791_v63 = vor.u32 %v7206_v61, %v5790_v60  ;;  %v5910_v61 = vld [vmem:[#allocation16 + $0x40] sm:$0xf] }
 0x18d   :  { %2565 = vmatpush.bf16.msrb.mxu0 %v5839_v28  ;;  %v7282_v28 = vld [vmem:[#allocation16 + $0x1ac] sm:$0xf0] }
 0x18f   :  { %2551 = vmatpush.bf16.msra.mxu3 %v5847_v11 }
 0x191   :  { %2566 = vmatpush.bf16.msrb.mxu0 %v5827_v40  ;;  %v5942_v40 = vld [vmem:[#allocation16 + $0x80] sm:$0xf] }
 0x195   :  { %v2110_v12 = vpop.f32.mrf.mxu0 }
 0x196   :  { %2200 = vmatmul.bf16.vlgmr.msrb.gmra.mxu3 %v1710_v7  ;;  %v2111_v17 = vadd.f32 %v2110_v12, %v1777_v16 }
 0x19d   :  { %v2112_v13 = vpop.f32.mrf.mxu0 }
 0x1a4   :  { %v2123_v8 = vpop.f32.mrf.mxu1 }
 0x1a5   :  { %v8060_v5 = vadd.f32 %v2123_v8, %v2111_v17 }
 0x1ac   :  { %v2125_v19 = vpop.f32.mrf.mxu1 }
 0x1b5   :  { %v2162_v18 = vpop.f32.mrf.mxu0 }
 0x1b6   :  { %v2163_v22 = vadd.f32 %v2162_v18, %v1778_v20  ;;  %v2175_v32 = vpop.f32.mrf.mxu1 }
 0x1b8   :  { %v8062_v23 = vadd.f32 %v2175_v32, %v2163_v22  ;;  %v5830_v22 = vld [vmem:[#allocation13 + $0x60] sm:$0xf]  ;;  %v7216_v32 = vld [vmem:[#allocation13 + $0x64] sm:$0xf] }
 0x1b9   :  { %v5835_v21 = vor.u32 %v7216_v32, %v5832_v35  ;;  %v5958_v35 = vld [vmem:[#allocation16 + $0xa0] sm:$0xf] }
 0x1bb   :  { %2552 = vmatpush.bf16.msra.mxu3 %v5835_v21  ;;  %v6086_v21 = vld [vmem:[#allocation16 + $0x1a0] sm:$0xf] }
 0x1bc   :  { %v6087_v38 = vor.u32 %v7282_v28, %v6086_v21  ;;  %v6006_v21 = vld [vmem:[#allocation16 + $0x100] sm:$0xf]  ;;  %v7262_v28 = vld [vmem:[#allocation16 + $0x10c] sm:$0xf0] }
 0x1bd   :  { %v2164_v15 = vpop.f32.mrf.mxu0 }
 0x1be   :  { %v2177_v24 = vpop.f32.mrf.mxu1  ;;  %v7217_v15 = vld [vmem:[#allocation13 + $0x68] sm:$0xf0] }
 0x1bf   :  { %v5831_v24 = vor.u32 %v7217_v15, %v5830_v22  ;;  %v5976_v22 = vld [vmem:[#allocation16 + $0xd0] sm:$0xf0]  ;;  %v7284_v15 = vld [vmem:[#allocation16 + $0x1c4] sm:$0xf] }
 0x1c1   :  { %2539 = vmatpush.bf16.msra.mxu2 %v5831_v24  ;;  %v6104_v24 = vld [vmem:[#allocation16 + $0x1d0] sm:$0xf0] }
 0x1c2   :  { %v6107_v27 = vor.u32 %v7284_v15, %v6104_v24  ;;  %v6024_v15 = vld [vmem:[#allocation16 + $0x130] sm:$0xf0] }
 0x1e1   :  { %v2136_v34 = vpop.f32.mrf.mxu2 }
 0x1e2   :  { %v2137_v4 = vadd.f32 %v2136_v34, %v8060_v5  ;;  %v5820_v34 = vld [vmem:[#allocation13 + $0x54] sm:$0xf0] }
 0x1e3   :  { %v5823_v33 = vor.u32 %v7213_v31, %v5820_v34  ;;  %v5960_v31 = vld [vmem:[#allocation16 + $0xb0] sm:$0xf0] }
 0x1e4   :  { %v6088_v34 = vld [vmem:[#allocation16 + $0x1b0] sm:$0xf0] }
 0x1e5   :  { %2553 = vmatpush.bf16.msra.mxu3 %v5823_v33 }
 0x1e9   :  { %v2138_v41 = vpop.f32.mrf.mxu2  ;;  %2554 = vmatpush.bf16.msra.mxu3 %v5811_v46  ;;  %v6072_v46 = vld [vmem:[#allocation16 + $0x190] sm:$0xf0] }
 0x1ea   :  { %v5806_v41 = vld [vmem:[#allocation13 + $0x30] sm:$0xf] }
 0x1ed   :  { %2555 = vmatpush.bf16.msra.mxu3 %v5799_v55  ;;  %v7240_v55 = vld [vmem:[#allocation16 + $0x64] sm:$0xf] }
 0x1f1   :  { %v2188_v44 = vpop.f32.mrf.mxu2  ;;  %2556 = vmatpush.bf16.msra.mxu3 %v5787_v62  ;;  %v7238_v62 = vld [vmem:[#allocation16 + $0x4c] sm:$0xf0] }
 0x1f2   :  { %v2189_v17 = vadd.f32 %v2188_v44, %v8062_v23  ;;  %v5819_v23 = vor.u32 %v7214_v30, %v5818_v29  ;;  %v5807_v44 = vor.u32 %v7211_v42, %v5806_v41  ;;  %v7248_v29 = vld [vmem:[#allocation16 + $0xa4] sm:$0xf]  ;;  %v5959_v30 = vor.u32 %v7250_v26, %v5958_v35  ;;  %v7246_v41 = vld [vmem:[#allocation16 + $0x8c] sm:$0xf0]  ;;  %v6070_v42 = vld [vmem:[#allocation16 + $0x180] sm:$0xf] }
 0x1f3   :  { %v5963_v33 = vor.u32 %v7248_v29, %v5960_v31  ;;  %v5880_v31 = vld [vmem:[#allocation16 + $0x10] sm:$0xf0] }
 0x1f4   :  { %2540 = vmatpush.bf16.msra.mxu2 %v5819_v23  ;;  %v7280_v23 = vld [vmem:[#allocation16 + $0x1a4] sm:$0xf] }
 0x1f5   :  { %v6091_v43 = vor.u32 %v7280_v23, %v6088_v34  ;;  %v5998_v23 = vld [vmem:[#allocation16 + $0xe8] sm:$0xf]  ;;  %v7259_v34 = vld [vmem:[#allocation16 + $0xf4] sm:$0xf0] }
 0x1f8   :  { %2541 = vmatpush.bf16.msra.mxu2 %v5807_v44  ;;  %v7278_v44 = vld [vmem:[#allocation16 + $0x18c] sm:$0xf0] }
 0x1f9   :  { %v2190_v45 = vpop.f32.mrf.mxu2  ;;  %v6071_v47 = vor.u32 %v7278_v44, %v6070_v42  ;;  %v7257_v42 = vld [vmem:[#allocation16 + $0xec] sm:$0xf]  ;;  %v6007_v44 = vor.u32 %v7262_v28, %v6006_v21  ;;  %v6062_v21 = vld [vmem:[#allocation16 + $0x168] sm:$0xf] }
 0x1fa   :  { %v7212_v45 = vld [vmem:[#allocation13 + $0x40] sm:$0xf0] }
 0x1fb   :  { %v5815_v37 = vor.u32 %v7212_v45, %v5814_v39  ;;  %v5944_v39 = vld [vmem:[#allocation16 + $0x90] sm:$0xf0]  ;;  %v7276_v45 = vld [vmem:[#allocation16 + $0x184] sm:$0xf] }
 0x1fc   :  { %2542 = vmatpush.bf16.msra.mxu2 %v5795_v50  ;;  %v5947_v48 = vor.u32 %v7244_v10, %v5944_v39  ;;  %v7242_v50 = vld [vmem:[#allocation16 + $0x6c] sm:$0xf0]  ;;  %v6075_v52 = vor.u32 %v7276_v45, %v6072_v46  ;;  %v7260_v39 = vld [vmem:[#allocation16 + $0x104] sm:$0xf]  ;;  %v6008_v45 = vld [vmem:[#allocation16 + $0x110] sm:$0xf0]  ;;  %v5999_v46 = vor.u32 %v7259_v34, %v5998_v23 }
 0x1fd   :  { %2567 = vmatpush.bf16.msrb.mxu0 %v5815_v37  ;;  %v5943_v37 = vor.u32 %v7246_v41, %v5942_v40  ;;  %v5927_v58 = vor.u32 %v7242_v50, %v5926_v49  ;;  %v6011_v50 = vor.u32 %v7260_v39, %v6008_v45  ;;  %v5936_v23 = vld [vmem:[#allocation16 + $0x78] sm:$0xf0]  ;;  %v7237_v45 = vld [vmem:[#allocation16 + $0x4c] sm:$0xf] }
 0x200   :  { %2543 = vmatpush.bf16.msra.mxu2 %v5783_v25 }
 0x201   :  { %2568 = vmatpush.bf16.msrb.mxu0 %v5803_v56  ;;  %v5928_v56 = vld [vmem:[#allocation16 + $0x70] sm:$0xf0] }
 0x202   :  { %v5931_v60 = vor.u32 %v7240_v55, %v5928_v56  ;;  %v7255_v55 = vld [vmem:[#allocation16 + $0xd4] sm:$0xf0]  ;;  %v6110_v56 = vld [vmem:[#allocation16 + $0x1c8] sm:$0xf] }
 0x203   :  { %v5983_v9 = vor.u32 %v7255_v55, %v5982_v53  ;;  %v7267_v53 = vld [vmem:[#allocation16 + $0x134] sm:$0xf0]  ;;  %v7233_v55 = vld [vmem:[#allocation16 + $0x2c] sm:$0xf] }
 0x205   :  { %2569 = vmatpush.bf16.msrb.mxu0 %v5791_v63  ;;  %v6038_v63 = vld [vmem:[#allocation16 + $0x140] sm:$0xf] }
 0x209   :  { %v2149_v7 = vpop.f32.mrf.mxu3 }
 0x20a   :  { %v2150_v12 = vadd.f32 %v2149_v7, %v2137_v4  ;;  %v7290_v4 = vld [vmem:[#allocation16 + $0x1ec] sm:$0xf0]  ;;  %v5992_v7 = vld [vmem:[#allocation16 + $0xf0] sm:$0xf0] }
 0x20b   :  { %v6119_v11 = vor.u32 %v7290_v4, %v6118_v2  ;;  %v5995_v54 = vor.u32 %v7256_v6, %v5992_v7  ;;  %v7236_v2 = vld [vmem:[#allocation16 + $0x44] sm:$0xf]  ;;  %v6040_v6 = vld [vmem:[#allocation16 + $0x150] sm:$0xf0] }
 0x20c   :  { %v2205_v13 = vmax.f32 %v2150_v12, 0.0  ;;  %v7288_v12 = vld [vmem:[#allocation16 + $0x1e4] sm:$0xf] }
 0x20d   :  { %2988 = vmatpush.bf16.msrb.mxu2 %v6119_v11  ;;  %3001 = vmatpush.bf16.msrb.mxu3 %v5995_v54  ;;  %v7268_v4 = vld [vmem:[#allocation16 + $0x144] sm:$0xf]  ;;  %v5911_v11 = vor.u32 %v7238_v62, %v5910_v61  ;;  %v6039_v54 = vor.u32 %v7270_v1, %v6038_v63  ;;  %v7285_v61 = vld [vmem:[#allocation16 + $0x1cc] sm:$0xf]  ;;  %v6112_v62 = vld [vmem:[#allocation16 + $0x1d8] sm:$0xf0] }
 0x20e   :  { %v2207_v14 = vpack.c.bf16 %v2205_v13, %v2205_v13  ;;  %v6120_v13 = vld [vmem:[#allocation16 + $0x1f0] sm:$0xf0]  ;;  %v7515_v7 = vld [vmem:[%s8159_s6] ss:$0 sm:$0xff]  ;;  %v6115_v63 = vor.u32 %v7285_v61, %v6112_v62  ;;  %v7251_v1 = vld [vmem:[#allocation16 + $0xb4] sm:$0xf0] }
 0x20f   :  { %v7231_v61 = vld [vmem:[#allocation16 + $0x14] sm:$0xf0]  ;;  %v6014_v62 = vld [vmem:[#allocation16 + $0x108] sm:$0xf] }
 0x210   :  { %2349 = vmatmul.bf16.vlgmr.msra.gmra.mxu0 %v2207_v14  ;;  %v5974_v14 = vld [vmem:[#allocation16 + $0xc0] sm:$0xf] }
 0x211   :  { %v2151_v16 = vpop.f32.mrf.mxu3 }
 0x212   :  { %v6123_v16 = vor.u32 %v7288_v12, %v6120_v13  ;;  %v5915_v12 = vor.u32 %v7236_v2, %v5912_v3  ;;  %v5894_v13 = vld [vmem:[#allocation16 + $0x20] sm:$0xf]  ;;  %v6094_v2 = vld [vmem:[#allocation16 + $0x1a8] sm:$0xf] }
 0x214   :  { %3014 = vmatpush.bf16.msra.mxu0 %v6123_v16  ;;  %v6022_v16 = vld [vmem:[#allocation16 + $0x120] sm:$0xf] }
 0x218   :  { %3015 = vmatpush.bf16.msra.mxu0 %v6107_v27  ;;  %v7230_v27 = vld [vmem:[#allocation16 + $0xc] sm:$0xf0] }
 0x219   :  { %v2201_v8 = vpop.f32.mrf.mxu3 }
 0x21a   :  { %v2202_v18 = vadd.f32 %v2201_v8, %v2189_v17  ;;  %v7254_v17 = vld [vmem:[#allocation16 + $0xcc] sm:$0xf0]  ;;  %v6102_v8 = vld [vmem:[#allocation16 + $0x1c0] sm:$0xf] }
 0x21c   :  { %v2206_v5 = vmax.f32 %v2202_v18, 0.0  ;;  %v7286_v18 = vld [vmem:[#allocation16 + $0x1cc] sm:$0xf0]  ;;  %3016 = vmatpush.bf16.msra.mxu0 %v6091_v43  ;;  %v6000_v43 = vld [vmem:[#allocation16 + $0xf8] sm:$0xf0] }
 0x21d   :  { %v6003_v49 = vor.u32 %v7257_v42, %v6000_v43  ;;  %v7239_v42 = vld [vmem:[#allocation16 + $0x54] sm:$0xf0]  ;;  %v6046_v43 = vld [vmem:[#allocation16 + $0x148] sm:$0xf] }
 0x21e   :  { %v2208_v19 = vpack.c.bf16 %v2206_v5, %v2206_v5  ;;  %v5975_v5 = vor.u32 %v7254_v17, %v5974_v14  ;;  %v7234_v14 = vld [vmem:[#allocation16 + $0x2c] sm:$0xf0]  ;;  %v6043_v17 = vor.u32 %v7268_v4, %v6040_v6  ;;  %v7283_v4 = vld [vmem:[#allocation16 + $0x1b4] sm:$0xf0]  ;;  %v7249_v6 = vld [vmem:[#allocation16 + $0xac] sm:$0xf] }
 0x220   :  { %2362 = vmatmul.bf16.vlgmr.msra.gmra.mxu1 %v2208_v19  ;;  %v6103_v19 = vor.u32 %v7286_v18, %v6102_v8  ;;  %3017 = vmatpush.bf16.msra.mxu0 %v6075_v52  ;;  %v7266_v8 = vld [vmem:[#allocation16 + $0x12c] sm:$0xf0]  ;;  %v7232_v18 = vld [vmem:[#allocation16 + $0x24] sm:$0xf] }
 0x221   :  { %v2203_v20 = vpop.f32.mrf.mxu3  ;;  %2976 = vmatpush.bf16.msrb.mxu1 %v5975_v5  ;;  %v5896_v5 = vld [vmem:[#allocation16 + $0x30] sm:$0xf0]  ;;  %v6023_v35 = vor.u32 %v7266_v8, %v6022_v16  ;;  %v5950_v16 = vld [vmem:[#allocation16 + $0x88] sm:$0xf] }
 0x222   :  { %v7252_v20 = vld [vmem:[#allocation16 + $0xc4] sm:$0xf]  ;;  %2989 = vmatpush.bf16.msrb.mxu2 %v6103_v19  ;;  %v5899_v26 = vor.u32 %v7232_v18, %v5896_v5  ;;  %v6078_v8 = vld [vmem:[#allocation16 + $0x188] sm:$0xf]  ;;  %v7279_v5 = vld [vmem:[#allocation16 + $0x194] sm:$0xf0] }
 0x223   :  { %v5979_v32 = vor.u32 %v7252_v20, %v5976_v22  ;;  %v5895_v20 = vor.u32 %v7234_v14, %v5894_v13  ;;  %v7264_v22 = vld [vmem:[#allocation16 + $0x124] sm:$0xf]  ;;  %v6096_v13 = vld [vmem:[#allocation16 + $0x1b8] sm:$0xf0] }
 0x224   :  { %3018 = vmatpush.bf16.msra.mxu0 %v6059_v0  ;;  %v6027_v40 = vor.u32 %v7264_v22, %v6024_v15  ;;  %v5966_v0 = vld [vmem:[#allocation16 + $0xa8] sm:$0xf]  ;;  %v6079_v22 = vor.u32 %v7279_v5, %v6078_v8 }
 0x225   :  { %3002 = vmatpush.bf16.msrb.mxu3 %v5979_v32  ;;  %2977 = vmatpush.bf16.msrb.mxu1 %v5959_v30  ;;  %v5878_v32 = vld [vmem:[#allocation16] sm:$0xf]  ;;  %v7228_v30 = vld [vmem:[#allocation16 + $0x4] sm:$0xf]  ;;  %v5967_v3 = vor.u32 %v7251_v1, %v5966_v0  ;;  %v7263_v0 = vld [vmem:[#allocation16 + $0x114] sm:$0xf0] }
 0x226   :  { %2990 = vmatpush.bf16.msrb.mxu2 %v6087_v38  ;;  %v7291_v38 = vld [vmem:[#allocation16 + $0x1f4] sm:$0xf0]  ;;  %v5879_v41 = vor.u32 %v7230_v27, %v5878_v32  ;;  %v5883_v10 = vor.u32 %v7228_v30, %v5880_v31  ;;  %v7277_v32 = vld [vmem:[#allocation16 + $0x18c] sm:$0xf] }
 0x227   :  { %v7243_v27 = vld [vmem:[#allocation16 + $0x74] sm:$0xf0]  ;;  %v7241_v31 = vld [vmem:[#allocation16 + $0x6c] sm:$0xf] }
 0x228   :  { %3019 = vmatpush.bf16.msra.mxu0 %v6043_v17  ;;  %v7247_v17 = vld [vmem:[#allocation16 + $0x94] sm:$0xf0]  ;;  %v7229_v1 = vld [vmem:[#allocation16 + $0xc] sm:$0xf] }
 0x229   :  { %3003 = vmatpush.bf16.msrb.mxu3 %v5963_v33  ;;  %2978 = vmatpush.bf16.msrb.mxu1 %v5943_v37  ;;  %v5951_v18 = vor.u32 %v7247_v17, %v5950_v16  ;;  %v7275_v30 = vld [vmem:[#allocation16 + $0x174] sm:$0xf0] }
 0x22a   :  { %2991 = vmatpush.bf16.msrb.mxu2 %v6071_v47  ;;  %v7289_v47 = vld [vmem:[#allocation16 + $0x1ec] sm:$0xf]  ;;  %v6063_v34 = vor.u32 %v7275_v30, %v6062_v21  ;;  %v6878_v21 = vld [vmem:[#allocation17 + $0x5d0] sm:$0xf] }
 0x22c   :  { %3020 = vmatpush.bf16.msra.mxu0 %v6027_v40  ;;  %v5918_v40 = vld [vmem:[#allocation16 + $0x48] sm:$0xf] }
 0x22d   :  { %3004 = vmatpush.bf16.msrb.mxu3 %v5947_v48  ;;  %2979 = vmatpush.bf16.msrb.mxu1 %v5927_v58  ;;  %v6128_v48 = vld [vmem:[#allocation16 + $0x1f8] sm:$0xf0]  ;;  %v7253_v58 = vld [vmem:[#allocation16 + $0xcc] sm:$0xf] }
 0x22e   :  { %2992 = vmatpush.bf16.msrb.mxu2 %v6055_v59  ;;  %v6131_v52 = vor.u32 %v7289_v47, %v6128_v48  ;;  %v6111_v59 = vor.u32 %v7287_v57, %v6110_v56  ;;  %v6048_v48 = vld [vmem:[#allocation16 + $0x158] sm:$0xf0]  ;;  %v7265_v57 = vld [vmem:[#allocation16 + $0x12c] sm:$0xf] }
 0x230   :  { %3021 = vmatpush.bf16.msra.mxu0 %v6011_v50  ;;  %v7235_v50 = vld [vmem:[#allocation16 + $0x34] sm:$0xf0] }
 0x231   :  { %3005 = vmatpush.bf16.msrb.mxu3 %v5931_v60  ;;  %2980 = vmatpush.bf16.msrb.mxu1 %v5911_v11  ;;  %v6095_v11 = vor.u32 %v7283_v4, %v6094_v2  ;;  %v5888_v2 = vld [vmem:[#allocation16 + $0x18] sm:$0xf0] }
 0x232   :  { %2993 = vmatpush.bf16.msrb.mxu2 %v6039_v54  ;;  %v6016_v4 = vld [vmem:[#allocation16 + $0x118] sm:$0xf0] }
 0x235   :  { %3006 = vmatpush.bf16.msrb.mxu3 %v5915_v12  ;;  %2981 = vmatpush.bf16.msrb.mxu1 %v5895_v20  ;;  %v7281_v12 = vld [vmem:[#allocation16 + $0x1ac] sm:$0xf]  ;;  %v5952_v20 = vld [vmem:[#allocation16 + $0x98] sm:$0xf0] }
 0x236   :  { %2994 = vmatpush.bf16.msrb.mxu2 %v6023_v35  ;;  %v6099_v14 = vor.u32 %v7281_v12, %v6096_v13  ;;  %v2400_v13 = vld [vmem:[#allocation14] sm:$0x7] }
 0x237   :  { %v2403_v16 = vperm.slane %v2400_v13, 1 }
 0x239   :  { %3007 = vmatpush.bf16.msrb.mxu3 %v5899_v26  ;;  %2982 = vmatpush.bf16.msrb.mxu1 %v5879_v41  ;;  %v5934_v26 = vld [vmem:[#allocation16 + $0x68] sm:$0xf] }
 0x23a   :  { %2995 = vmatpush.bf16.msrb.mxu2 %v6007_v44  ;;  %v5935_v28 = vor.u32 %v7243_v27, %v5934_v26  ;;  %v7271_v44 = vld [vmem:[#allocation16 + $0x154] sm:$0xf0] }
 0x23b   :  { %v6047_v39 = vor.u32 %v7271_v44, %v6046_v43  ;;  %v6662_v43 = vld [vmem:[#allocation17 + $0x420] sm:$0xf]  ;;  %v7427_v44 = vld [vmem:[#allocation17 + $0x434] sm:$0xf0] }
 0x23d   :  { %3008 = vmatpush.bf16.msrb.mxu3 %v5883_v10  ;;  %3027 = vmatpush.bf16.msra.mxu1 %v5999_v46  ;;  %v5919_v10 = vor.u32 %v7239_v42, %v5918_v40  ;;  %v5920_v46 = vld [vmem:[#allocation16 + $0x58] sm:$0xf0]  ;;  %v7379_v40 = vld [vmem:[#allocation17 + $0x2b4] sm:$0xf0] }
 0x23e   :  { %v5923_v47 = vor.u32 %v7237_v45, %v5920_v46 }
 0x241   :  { %3028 = vmatpush.bf16.msra.mxu1 %v5983_v9  ;;  %v5904_v9 = vld [vmem:[#allocation16 + $0x38] sm:$0xf0] }
 0x245   :  { %3029 = vmatpush.bf16.msra.mxu1 %v5967_v3  ;;  %v7261_v3 = vld [vmem:[#allocation16 + $0x10c] sm:$0xf] }
 0x249   :  { %3030 = vmatpush.bf16.msra.mxu1 %v5951_v18 }
 0x24d   :  { %3031 = vmatpush.bf16.msra.mxu1 %v5935_v28  ;;  %v7481_v28 = vld [vmem:[#allocation17 + $0x5e4] sm:$0xf0] }
 0x24e   :  { %v6879_v42 = vor.u32 %v7481_v28, %v6878_v21  ;;  %v6566_v21 = vld [vmem:[#allocation17 + $0x360] sm:$0xf]  ;;  %v7403_v28 = vld [vmem:[#allocation17 + $0x374] sm:$0xf0] }
 0x251   :  { %3032 = vmatpush.bf16.msra.mxu1 %v5919_v10  ;;  %v6854_v10 = vld [vmem:[#allocation17 + $0x5a0] sm:$0xf] }
 0x28d   :  { %v8066_v36 = vpop.f32.mrf.mxu0 }
 0x28e   :  { %v2351_v19 = vadd.f32 %v7515_v7, %v8066_v36  ;;  %v6126_v36 = vld [vmem:[#allocation16 + $0x1e8] sm:$0xf]  ;;  %v5968_v7 = vld [vmem:[#allocation16 + $0xb8] sm:$0xf0] }
 0x28f   :  { %v6127_v37 = vor.u32 %v7291_v38, %v6126_v36  ;;  %v5971_v54 = vor.u32 %v7249_v6, %v5968_v7  ;;  %v5939_v36 = vor.u32 %v7241_v31, %v5936_v23  ;;  %v7273_v38 = vld [vmem:[#allocation16 + $0x16c] sm:$0xf]  ;;  %v6015_v7 = vor.u32 %v7263_v0, %v6014_v62  ;;  %v7367_v62 = vld [vmem:[#allocation17 + $0x254] sm:$0xf0] }
 0x295   :  { %v2352_v25 = vpop.f32.mrf.mxu0 }
 0x296   :  { %v5984_v25 = vld [vmem:[#allocation16 + $0xd8] sm:$0xf0] }
 0x297   :  { %v5987_v60 = vor.u32 %v7253_v58, %v5984_v25  ;;  %v6032_v58 = vld [vmem:[#allocation16 + $0x138] sm:$0xf0] }
 0x29d   :  { %v2363_v24 = vpop.f32.mrf.mxu1 }
 0x29e   :  { %v8072_v29 = vadd.f32 %v2363_v24, %v2351_v19  ;;  %v7245_v19 = vld [vmem:[#allocation16 + $0x8c] sm:$0xf]  ;;  %v6080_v24 = vld [vmem:[#allocation16 + $0x198] sm:$0xf0] }
 0x29f   :  { %v5955_v15 = vor.u32 %v7245_v19, %v5952_v20  ;;  %v6083_v35 = vor.u32 %v7277_v32, %v6080_v24  ;;  %v6302_v19 = vld [vmem:[#allocation17 + $0x150] sm:$0xf]  ;;  %v7337_v20 = vld [vmem:[#allocation17 + $0x164] sm:$0xf0] }
 0x2a0   :  { %v2367_v33 = vpack.c.bf16 %v8072_v29, %v8072_v29  ;;  %v6686_v32 = vld [vmem:[#allocation17 + $0x450] sm:$0xf]  ;;  %v7433_v24 = vld [vmem:[#allocation17 + $0x464] sm:$0xf0]  ;;  %v6303_v23 = vor.u32 %v7337_v20, %v6302_v19 }
 0x2a1   :  { %v7457_v19 = vld [vmem:[#allocation17 + $0x524] sm:$0xf0] }
 0x2a2   :  { %2544 = vmatmul.bf16.vlgmr.msra.gmra.mxu2 %v2367_v33  ;;  %2557 = vmatmul.bf16.vlgmr.msra.gmra.mxu3 %v2367_v33 }
 0x2a3   :  { %2570 = vmatmul.bf16.vlgmr.msrb.gmra.mxu0 %v2367_v33  ;;  %3040 = vmatpush.bf16.msra.mxu2 %v6127_v37  ;;  %v6064_v33 = vld [vmem:[#allocation16 + $0x178] sm:$0xf0]  ;;  %v7269_v37 = vld [vmem:[#allocation16 + $0x14c] sm:$0xf] }
 0x2a4   :  { %3053 = vmatpush.bf16.msra.mxu3 %v6003_v49  ;;  %3066 = vmatpush.bf16.msrb.mxu0 %v6131_v52  ;;  %v6067_v41 = vor.u32 %v7273_v38, %v6064_v33  ;;  %v5902_v49 = vld [vmem:[#allocation16 + $0x28] sm:$0xf]  ;;  %v7331_v38 = vld [vmem:[#allocation17 + $0x134] sm:$0xf0]  ;;  %v6470_v33 = vld [vmem:[#allocation17 + $0x2a0] sm:$0xf] }
 0x2a5   :  { %v2365_v51 = vpop.f32.mrf.mxu1  ;;  %v6030_v52 = vld [vmem:[#allocation16 + $0x128] sm:$0xf]  ;;  %v5903_v56 = vor.u32 %v7235_v50, %v5902_v49  ;;  %v6446_v50 = vld [vmem:[#allocation17 + $0x270] sm:$0xf] }
 0x2a6   :  { %v6051_v51 = vor.u32 %v7269_v37, %v6048_v48  ;;  %v6031_v25 = vor.u32 %v7267_v53, %v6030_v52  ;;  %v6254_v48 = vld [vmem:[#allocation17 + $0xf0] sm:$0xf]  ;;  %v7325_v49 = vld [vmem:[#allocation17 + $0x104] sm:$0xf0]  ;;  %v6663_v52 = vor.u32 %v7427_v44, %v6662_v43  ;;  %v6567_v43 = vor.u32 %v7403_v28, %v6566_v21  ;;  %v7358_v21 = vld [vmem:[#allocation17 + $0x214] sm:$0xf] }
 0x2a7   :  { %3041 = vmatpush.bf16.msra.mxu2 %v6111_v59  ;;  %v5907_v59 = vor.u32 %v7233_v55, %v5904_v9  ;;  %3033 = vmatpush.bf16.msra.mxu1 %v5903_v56  ;;  %v6638_v55 = vld [vmem:[#allocation17 + $0x3f0] sm:$0xf]  ;;  %v7421_v56 = vld [vmem:[#allocation17 + $0x404] sm:$0xf0]  ;;  %v6400_v28 = vld [vmem:[#allocation17 + $0x228] sm:$0xf0] }
 0x2a8   :  { %3054 = vmatpush.bf16.msra.mxu3 %v5987_v60  ;;  %3067 = vmatpush.bf16.msrb.mxu0 %v6115_v63  ;;  %v5886_v60 = vld [vmem:[#allocation16 + $0x8] sm:$0xf]  ;;  %v6035_v63 = vor.u32 %v7265_v57, %v6032_v58  ;;  %v6830_v9 = vld [vmem:[#allocation17 + $0x570] sm:$0xf]  ;;  %v6255_v58 = vor.u32 %v7325_v49, %v6254_v48  ;;  %v7334_v48 = vld [vmem:[#allocation17 + $0x154] sm:$0xf] }
 0x2a9   :  { %v5887_v6 = vor.u32 %v7231_v61, %v5886_v60  ;;  %v7469_v57 = vld [vmem:[#allocation17 + $0x584] sm:$0xf0]  ;;  %v7319_v60 = vld [vmem:[#allocation17 + $0xd4] sm:$0xf0]  ;;  %v6422_v61 = vld [vmem:[#allocation17 + $0x240] sm:$0xf] }
 0x2aa   :  { %v6831_v0 = vor.u32 %v7469_v57, %v6830_v9  ;;  %v6326_v49 = vld [vmem:[#allocation17 + $0x180] sm:$0xf]  ;;  %v7391_v57 = vld [vmem:[#allocation17 + $0x314] sm:$0xf0] }
 0x2ab   :  { %3042 = vmatpush.bf16.msra.mxu2 %v6095_v11  ;;  %v5891_v11 = vor.u32 %v7229_v1, %v5888_v2  ;;  %3034 = vmatpush.bf16.msra.mxu1 %v5887_v6  ;;  %v6614_v1 = vld [vmem:[#allocation17 + $0x3c0] sm:$0xf]  ;;  %v7415_v2 = vld [vmem:[#allocation17 + $0x3d4] sm:$0xf0] }
 0x2ac   :  { %3055 = vmatpush.bf16.msra.mxu3 %v5971_v54  ;;  %3068 = vmatpush.bf16.msrb.mxu0 %v6099_v14  ;;  %v6019_v54 = vor.u32 %v7261_v3, %v6016_v4  ;;  %v2402_v14 = vperm.slane %v2400_v13, 0  ;;  %v6806_v3 = vld [vmem:[#allocation17 + $0x540] sm:$0xf]  ;;  %v7463_v4 = vld [vmem:[#allocation17 + $0x554] sm:$0xf0] }
 0x2ad   :  { %v6398_v13 = vld [vmem:[#allocation17 + $0x210] sm:$0xf]  ;;  %v6518_v9 = vld [vmem:[#allocation17 + $0x300] sm:$0xf] }
 0x2af   :  { %3043 = vmatpush.bf16.msra.mxu2 %v6079_v22  ;;  %v6494_v22 = vld [vmem:[#allocation17 + $0x2d0] sm:$0xf] }
 0x2b0   :  { %3056 = vmatpush.bf16.msra.mxu3 %v5955_v15  ;;  %3069 = vmatpush.bf16.msrb.mxu0 %v6083_v35  ;;  %v7385_v15 = vld [vmem:[#allocation17 + $0x2e4] sm:$0xf0] }
 0x2b3   :  { %3044 = vmatpush.bf16.msra.mxu2 %v6063_v34  ;;  %v6495_v34 = vor.u32 %v7385_v15, %v6494_v22  ;;  %v6182_v15 = vld [vmem:[#allocation17 + $0x60] sm:$0xf] }
 0x2b4   :  { %3057 = vmatpush.bf16.msra.mxu3 %v5939_v36  ;;  %3070 = vmatpush.bf16.msrb.mxu0 %v6067_v41  ;;  %v6278_v36 = vld [vmem:[#allocation17 + $0x120] sm:$0xf]  ;;  %v6687_v41 = vor.u32 %v7433_v24, %v6686_v32  ;;  %v7307_v32 = vld [vmem:[#allocation17 + $0x74] sm:$0xf0] }
 0x2b5   :  { %v6279_v37 = vor.u32 %v7331_v38, %v6278_v36  ;;  %v6374_v24 = vld [vmem:[#allocation17 + $0x1e0] sm:$0xf]  ;;  %v6183_v36 = vor.u32 %v7307_v32, %v6182_v15  ;;  %v6688_v32 = vld [vmem:[#allocation17 + $0x468] sm:$0xf0] }
 0x2b7   :  { %3045 = vmatpush.bf16.msra.mxu2 %v6047_v39  ;;  %v7475_v39 = vld [vmem:[#allocation17 + $0x5b4] sm:$0xf0] }
 0x2b8   :  { %3058 = vmatpush.bf16.msra.mxu3 %v5923_v47  ;;  %3071 = vmatpush.bf16.msrb.mxu0 %v6051_v51  ;;  %v6471_v47 = vor.u32 %v7379_v40, %v6470_v33  ;;  %v7373_v51 = vld [vmem:[#allocation17 + $0x284] sm:$0xf0]  ;;  %v6855_v53 = vor.u32 %v7475_v39, %v6854_v10  ;;  %v6158_v33 = vld [vmem:[#allocation17 + $0x30] sm:$0xf] }
 0x2b9   :  { %v7301_v40 = vld [vmem:[#allocation17 + $0x44] sm:$0xf0]  ;;  %v6542_v10 = vld [vmem:[#allocation17 + $0x330] sm:$0xf] }
 0x2ba   :  { %v7397_v39 = vld [vmem:[#allocation17 + $0x344] sm:$0xf0] }
 0x2bb   :  { %3046 = vmatpush.bf16.msra.mxu2 %v6031_v25  ;;  %v6447_v25 = vor.u32 %v7373_v51, %v6446_v50  ;;  %v7343_v50 = vld [vmem:[#allocation17 + $0x194] sm:$0xf0]  ;;  %v6543_v51 = vor.u32 %v7397_v39, %v6542_v10  ;;  %v7352_v10 = vld [vmem:[#allocation17 + $0x1e4] sm:$0xf]  ;;  %v6376_v39 = vld [vmem:[#allocation17 + $0x1f8] sm:$0xf0] }
 0x2bc   :  { %3059 = vmatpush.bf16.msra.mxu3 %v5907_v59  ;;  %3072 = vmatpush.bf16.msrb.mxu0 %v6035_v63  ;;  %v6230_v59 = vld [vmem:[#allocation17 + $0xc0] sm:$0xf]  ;;  %v6639_v63 = vor.u32 %v7421_v56, %v6638_v55  ;;  %v7382_v55 = vld [vmem:[#allocation17 + $0x2d4] sm:$0xf]  ;;  %v6496_v56 = vld [vmem:[#allocation17 + $0x2e8] sm:$0xf0] }
 0x2bd   :  { %v6231_v6 = vor.u32 %v7319_v60, %v6230_v59  ;;  %v6499_v60 = vor.u32 %v7382_v55, %v6496_v56  ;;  %v7466_v55 = vld [vmem:[#allocation17 + $0x574] sm:$0xf] }
 0x2bf   :  { %3047 = vmatpush.bf16.msra.mxu2 %v6015_v7  ;;  %v6423_v7 = vor.u32 %v7367_v62, %v6422_v61  ;;  %v7328_v61 = vld [vmem:[#allocation17 + $0x124] sm:$0xf]  ;;  %v6280_v62 = vld [vmem:[#allocation17 + $0x138] sm:$0xf0] }
 0x2c0   :  { %3060 = vmatpush.bf16.msra.mxu3 %v5891_v11  ;;  %3073 = vmatpush.bf16.msrb.mxu0 %v6019_v54  ;;  %v6206_v11 = vld [vmem:[#allocation17 + $0x90] sm:$0xf]  ;;  %v7313_v54 = vld [vmem:[#allocation17 + $0xa4] sm:$0xf0] }
 0x2c1   :  { %v6207_v20 = vor.u32 %v7313_v54, %v6206_v11  ;;  %v6448_v11 = vld [vmem:[#allocation17 + $0x288] sm:$0xf0] }
 0x320   :  { %v8076_v12 = vpop.f32.mrf.mxu0 }
 0x325   :  { %v2545_v17 = vpop.f32.mrf.mxu2  ;;  %v2558_v8 = vpop.f32.mrf.mxu3 }
 0x326   :  { %v2546_v18 = vadd.f32 %v2545_v17, %v2402_v14  ;;  %v2559_v5 = vadd.f32 %v2558_v8, %v2403_v16  ;;  %v7361_v14 = vld [vmem:[#allocation17 + $0x224] sm:$0xf0]  ;;  %v6615_v16 = vor.u32 %v7415_v2, %v6614_v1  ;;  %v6807_v17 = vor.u32 %v7463_v4, %v6806_v3  ;;  %v6590_v8 = vld [vmem:[#allocation17 + $0x390] sm:$0xf]  ;;  %v7322_v4 = vld [vmem:[#allocation17 + $0xf4] sm:$0xf] }
 0x327   :  { %v6399_v22 = vor.u32 %v7361_v14, %v6398_v13  ;;  %v6519_v1 = vor.u32 %v7391_v57, %v6518_v9  ;;  %v6283_v2 = vor.u32 %v7328_v61, %v6280_v62  ;;  %v7316_v14 = vld [vmem:[#allocation17 + $0xc4] sm:$0xf]  ;;  %v6832_v9 = vld [vmem:[#allocation17 + $0x588] sm:$0xf0]  ;;  %v6616_v61 = vld [vmem:[#allocation17 + $0x3d8] sm:$0xf0] }
 0x328   :  { %v2575_v35 = vmax.f32 %v2546_v18, 0.0  ;;  %v2576_v26 = vmax.f32 %v2559_v5, 0.0  ;;  %v2573_v27 = vpop.f32.mrf.mxu0  ;;  %v7409_v18 = vld [vmem:[#allocation17 + $0x3a4] sm:$0xf0]  ;;  %v6782_v5 = vld [vmem:[#allocation17 + $0x510] sm:$0xf]  ;;  %v6835_v57 = vor.u32 %v7466_v55, %v6832_v9 }
 0x329   :  { %v6783_v27 = vor.u32 %v7457_v19, %v6782_v5  ;;  %v7310_v19 = vld [vmem:[#allocation17 + $0x94] sm:$0xf] }
 0x32a   :  { %v8078_v30 = vpack.c.bf16 %v2575_v35, %v2575_v35  ;;  %v8080_v31 = vpack.c.bf16 %v2576_v26, %v2576_v26  ;;  %v7355_v35 = vld [vmem:[#allocation17 + $0x1f4] sm:$0xf0]  ;;  %v6591_v26 = vor.u32 %v7409_v18, %v6590_v8  ;;  %v6424_v8 = vld [vmem:[#allocation17 + $0x258] sm:$0xf0] }
 0x32b   :  { %v6375_v38 = vor.u32 %v7355_v35, %v6374_v24  ;;  %v6710_v24 = vld [vmem:[#allocation17 + $0x480] sm:$0xf]  ;;  %v7439_v35 = vld [vmem:[#allocation17 + $0x494] sm:$0xf0] }
 0x32c   :  { %2983 = vmatmul.bf16.vlgmr.msrb.gmra.mxu1 %v8078_v30  ;;  %2996 = vmatmul.bf16.vlgmr.msrb.gmra.mxu2 %v8080_v31 }
 0x32d   :  { %3009 = vmatmul.bf16.vlgmr.msrb.gmra.mxu3 %v8078_v30  ;;  %3022 = vmatmul.bf16.vlgmr.msra.gmra.mxu0 %v8080_v31  ;;  %v2547_v45 = vpop.f32.mrf.mxu2  ;;  %v2560_v46 = vpop.f32.mrf.mxu3 }
 0x32e   :  { %4253 = vmatpush.bf16.msrb.mxu1 %v6303_v23  ;;  %4266 = vmatpush.bf16.msrb.mxu2 %v6495_v34  ;;  %v6758_v23 = vld [vmem:[#allocation17 + $0x4e0] sm:$0xf]  ;;  %v7451_v34 = vld [vmem:[#allocation17 + $0x4f4] sm:$0xf0]  ;;  %v6734_v45 = vld [vmem:[#allocation17 + $0x4b0] sm:$0xf] }
 0x32f   :  { %4279 = vmatpush.bf16.msrb.mxu3 %v6687_v41  ;;  %4292 = vmatpush.bf16.msra.mxu0 %v6879_v42  ;;  %v6350_v41 = vld [vmem:[#allocation17 + $0x1b0] sm:$0xf]  ;;  %v7349_v42 = vld [vmem:[#allocation17 + $0x1c4] sm:$0xf0]  ;;  %v6759_v44 = vor.u32 %v7451_v34, %v6758_v23  ;;  %v7478_v23 = vld [vmem:[#allocation17 + $0x5d4] sm:$0xf]  ;;  %v6403_v34 = vor.u32 %v7358_v21, %v6400_v28 }
 0x330   :  { %v7445_v46 = vld [vmem:[#allocation17 + $0x4c4] sm:$0xf0]  ;;  %v7436_v28 = vld [vmem:[#allocation17 + $0x484] sm:$0xf] }
 0x332   :  { %4254 = vmatpush.bf16.msrb.mxu1 %v6279_v37  ;;  %4267 = vmatpush.bf16.msrb.mxu2 %v6471_v47  ;;  %v6134_v37 = vld [vmem:[#allocation17] sm:$0xf]  ;;  %v7295_v47 = vld [vmem:[#allocation17 + $0x14] sm:$0xf0] }
 0x333   :  { %4280 = vmatpush.bf16.msrb.mxu3 %v6663_v52  ;;  %4293 = vmatpush.bf16.msra.mxu0 %v6855_v53  ;;  %v6735_v52 = vor.u32 %v7445_v46, %v6734_v45  ;;  %v6304_v53 = vld [vmem:[#allocation17 + $0x168] sm:$0xf0]  ;;  %v7472_v45 = vld [vmem:[#allocation17 + $0x5a4] sm:$0xf]  ;;  %v6379_v46 = vor.u32 %v7352_v10, %v6376_v39  ;;  %v6310_v39 = vld [vmem:[#allocation17 + $0x158] sm:$0xf] }
 0x334   :  { %v6307_v59 = vor.u32 %v7334_v48, %v6304_v53  ;;  %v6352_v53 = vld [vmem:[#allocation17 + $0x1c8] sm:$0xf0] }
 0x336   :  { %4255 = vmatpush.bf16.msrb.mxu1 %v6255_v58  ;;  %4268 = vmatpush.bf16.msrb.mxu2 %v6447_v25  ;;  %v6135_v58 = vor.u32 %v7295_v47, %v6134_v37  ;;  %v6327_v25 = vor.u32 %v7343_v50, %v6326_v49  ;;  %v7298_v37 = vld [vmem:[#allocation17 + $0x34] sm:$0xf]  ;;  %v6160_v47 = vld [vmem:[#allocation17 + $0x48] sm:$0xf0] }
 0x337   :  { %4281 = vmatpush.bf16.msrb.mxu3 %v6639_v63  ;;  %4294 = vmatpush.bf16.msra.mxu0 %v6831_v0  ;;  %v7376_v63 = vld [vmem:[#allocation17 + $0x2a4] sm:$0xf]  ;;  %v6472_v0 = vld [vmem:[#allocation17 + $0x2b8] sm:$0xf0]  ;;  %v6163_v48 = vor.u32 %v7298_v37, %v6160_v47  ;;  %v7418_v49 = vld [vmem:[#allocation17 + $0x3f4] sm:$0xf] }
 0x338   :  { %v6475_v3 = vor.u32 %v7376_v63, %v6472_v0  ;;  %v6640_v50 = vld [vmem:[#allocation17 + $0x408] sm:$0xf0]  ;;  %v7340_v63 = vld [vmem:[#allocation17 + $0x184] sm:$0xf]  ;;  %v6328_v0 = vld [vmem:[#allocation17 + $0x198] sm:$0xf0] }
 0x33a   :  { %4256 = vmatpush.bf16.msrb.mxu1 %v6231_v6  ;;  %4269 = vmatpush.bf16.msrb.mxu2 %v6423_v7  ;;  %v6256_v6 = vld [vmem:[#allocation17 + $0x108] sm:$0xf0]  ;;  %v7370_v7 = vld [vmem:[#allocation17 + $0x274] sm:$0xf] }
 0x33b   :  { %4282 = vmatpush.bf16.msrb.mxu3 %v6615_v16  ;;  %4295 = vmatpush.bf16.msra.mxu0 %v6807_v17  ;;  %v6259_v54 = vor.u32 %v7322_v4, %v6256_v6  ;;  %v6451_v13 = vor.u32 %v7370_v7, %v6448_v11  ;;  %v6232_v16 = vld [vmem:[#allocation17 + $0xd8] sm:$0xf0]  ;;  %v7364_v17 = vld [vmem:[#allocation17 + $0x244] sm:$0xf]  ;;  %v7406_v6 = vld [vmem:[#allocation17 + $0x394] sm:$0xf] }
 0x33c   :  { %3035 = vmatmul.bf16.vlgmr.msra.gmra.mxu1 %v8078_v30  ;;  %3048 = vmatmul.bf16.vlgmr.msra.gmra.mxu2 %v8080_v31  ;;  %v6235_v18 = vor.u32 %v7316_v14, %v6232_v16  ;;  %v6427_v5 = vor.u32 %v7364_v17, %v6424_v8  ;;  %v6592_v7 = vld [vmem:[#allocation17 + $0x3a8] sm:$0xf0]  ;;  %v7400_v16 = vld [vmem:[#allocation17 + $0x364] sm:$0xf]  ;;  %v6568_v17 = vld [vmem:[#allocation17 + $0x378] sm:$0xf0] }
 0x33d   :  { %3061 = vmatmul.bf16.vlgmr.msra.gmra.mxu3 %v8078_v30  ;;  %3074 = vmatmul.bf16.vlgmr.msrb.gmra.mxu0 %v8080_v31  ;;  %v6159_v30 = vor.u32 %v7301_v40, %v6158_v33  ;;  %v6351_v31 = vor.u32 %v7349_v42, %v6350_v41  ;;  %v6184_v33 = vld [vmem:[#allocation17 + $0x78] sm:$0xf0]  ;;  %v7424_v42 = vld [vmem:[#allocation17 + $0x424] sm:$0xf]  ;;  %v6595_v11 = vor.u32 %v7406_v6, %v6592_v7  ;;  %v7374_v6 = vld [vmem:[#allocation17 + $0x28c] sm:$0xf0] }
 0x33e   :  { %4257 = vmatpush.bf16.msrb.mxu1 %v6207_v20  ;;  %4270 = vmatpush.bf16.msrb.mxu2 %v6399_v22  ;;  %v6208_v20 = vld [vmem:[#allocation17 + $0xa8] sm:$0xf0]  ;;  %v7430_v22 = vld [vmem:[#allocation17 + $0x454] sm:$0xf]  ;;  %v6571_v8 = vor.u32 %v7400_v16, %v6568_v17  ;;  %v6238_v7 = vld [vmem:[#allocation17 + $0xc8] sm:$0xf] }
 0x33f   :  { %4283 = vmatpush.bf16.msrb.mxu3 %v6591_v26  ;;  %4296 = vmatpush.bf16.msra.mxu0 %v6783_v27  ;;  %v6211_v15 = vor.u32 %v7310_v19, %v6208_v20  ;;  %v6691_v26 = vor.u32 %v7430_v22, %v6688_v32  ;;  %v6711_v27 = vor.u32 %v7439_v35, %v6710_v24  ;;  %v7394_v20 = vld [vmem:[#allocation17 + $0x334] sm:$0xf]  ;;  %v6544_v22 = vld [vmem:[#allocation17 + $0x348] sm:$0xf0] }
 0x340   :  { %v7442_v32 = vld [vmem:[#allocation17 + $0x4b4] sm:$0xf]  ;;  %v6736_v24 = vld [vmem:[#allocation17 + $0x4c8] sm:$0xf0] }
 0x341   :  { %v6739_v35 = vor.u32 %v7442_v32, %v6736_v24  ;;  %v6214_v24 = vld [vmem:[#allocation17 + $0x98] sm:$0xf] }
 0x342   :  { %4258 = vmatpush.bf16.msrb.mxu1 %v6183_v36  ;;  %4271 = vmatpush.bf16.msrb.mxu2 %v6375_v38  ;;  %v6880_v36 = vld [vmem:[#allocation17 + $0x5e8] sm:$0xf0]  ;;  %v7304_v38 = vld [vmem:[#allocation17 + $0x64] sm:$0xf] }
 0x343   :  { %4284 = vmatpush.bf16.msrb.mxu3 %v6567_v43  ;;  %4297 = vmatpush.bf16.msra.mxu0 %v6759_v44  ;;  %v6883_v40 = vor.u32 %v7478_v23, %v6880_v36  ;;  %v6187_v41 = vor.u32 %v7304_v38, %v6184_v33  ;;  %v6664_v43 = vld [vmem:[#allocation17 + $0x438] sm:$0xf0] }
 0x344   :  { %v6667_v44 = vor.u32 %v7424_v42, %v6664_v43  ;;  %v6712_v23 = vld [vmem:[#allocation17 + $0x498] sm:$0xf0] }
 0x345   :  { %v6715_v36 = vor.u32 %v7436_v28, %v6712_v23  ;;  %v6406_v28 = vld [vmem:[#allocation17 + $0x218] sm:$0xf] }
 0x346   :  { %4259 = vmatpush.bf16.msrb.mxu1 %v6159_v30  ;;  %4272 = vmatpush.bf16.msrb.mxu2 %v6351_v31  ;;  %v6856_v30 = vld [vmem:[#allocation17 + $0x5b8] sm:$0xf0] }
 0x347   :  { %4285 = vmatpush.bf16.msrb.mxu3 %v6543_v51  ;;  %4298 = vmatpush.bf16.msra.mxu0 %v6735_v52  ;;  %v6859_v31 = vor.u32 %v7472_v45, %v6856_v30  ;;  %v6643_v51 = vor.u32 %v7418_v49, %v6640_v50  ;;  %v7346_v52 = vld [vmem:[#allocation17 + $0x1b4] sm:$0xf]  ;;  %v7338_v45 = vld [vmem:[#allocation17 + $0x16c] sm:$0xf0]  ;;  %v6502_v49 = vld [vmem:[#allocation17 + $0x2d8] sm:$0xf] }
 0x348   :  { %v6355_v56 = vor.u32 %v7346_v52, %v6352_v53  ;;  %v7386_v50 = vld [vmem:[#allocation17 + $0x2ec] sm:$0xf0]  ;;  %v6286_v52 = vld [vmem:[#allocation17 + $0x128] sm:$0xf]  ;;  %v7332_v53 = vld [vmem:[#allocation17 + $0x13c] sm:$0xf0] }
 0x34a   :  { %4260 = vmatpush.bf16.msrb.mxu1 %v6135_v58  ;;  %4273 = vmatpush.bf16.msrb.mxu2 %v6327_v25  ;;  %v7292_v58 = vld [vmem:[#allocation17 + $0x4] sm:$0xf]  ;;  %v6136_v25 = vld [vmem:[#allocation17 + $0x18] sm:$0xf0] }
 0x34b   :  { %4286 = vmatpush.bf16.msrb.mxu3 %v6519_v1  ;;  %4299 = vmatpush.bf16.msra.mxu0 %v6711_v27  ;;  %v7460_v1 = vld [vmem:[#allocation17 + $0x544] sm:$0xf]  ;;  %v6520_v27 = vld [vmem:[#allocation17 + $0x318] sm:$0xf0] }
 0x34e   :  { %4305 = vmatpush.bf16.msra.mxu1 %v6307_v59  ;;  %4318 = vmatpush.bf16.msra.mxu2 %v6499_v60  ;;  %v7412_v59 = vld [vmem:[#allocation17 + $0x3c4] sm:$0xf]  ;;  %v6139_v60 = vor.u32 %v7292_v58, %v6136_v25  ;;  %v6287_v58 = vor.u32 %v7332_v53, %v6286_v52  ;;  %v6478_v25 = vld [vmem:[#allocation17 + $0x2a8] sm:$0xf] }
 0x34f   :  { %4331 = vmatpush.bf16.msra.mxu3 %v6691_v26  ;;  %4344 = vmatpush.bf16.msrb.mxu0 %v6883_v40  ;;  %v6619_v62 = vor.u32 %v7412_v59, %v6616_v61  ;;  %v7388_v26 = vld [vmem:[#allocation17 + $0x304] sm:$0xf]  ;;  %v7380_v59 = vld [vmem:[#allocation17 + $0x2bc] sm:$0xf0]  ;;  %v6262_v61 = vld [vmem:[#allocation17 + $0xf8] sm:$0xf] }
 0x350   :  { %v6523_v21 = vor.u32 %v7388_v26, %v6520_v27 }
 0x352   :  { %4306 = vmatpush.bf16.msra.mxu1 %v6283_v2  ;;  %4319 = vmatpush.bf16.msra.mxu2 %v6475_v3  ;;  %v6331_v2 = vor.u32 %v7340_v63, %v6328_v0  ;;  %v6808_v3 = vld [vmem:[#allocation17 + $0x558] sm:$0xf0] }
 0x353   :  { %4332 = vmatpush.bf16.msra.mxu3 %v6667_v44  ;;  %4345 = vmatpush.bf16.msrb.mxu0 %v6859_v31  ;;  %v6811_v4 = vor.u32 %v7460_v1, %v6808_v3 }
 0x356   :  { %4307 = vmatpush.bf16.msra.mxu1 %v6259_v54  ;;  %4320 = vmatpush.bf16.msra.mxu2 %v6451_v13  ;;  %v7454_v54 = vld [vmem:[#allocation17 + $0x514] sm:$0xf]  ;;  %v6784_v13 = vld [vmem:[#allocation17 + $0x528] sm:$0xf0] }
 0x357   :  { %4333 = vmatpush.bf16.msra.mxu3 %v6643_v51  ;;  %4346 = vmatpush.bf16.msrb.mxu0 %v6835_v57  ;;  %v6787_v14 = vor.u32 %v7454_v54, %v6784_v13 }
 0x35a   :  { %4308 = vmatpush.bf16.msra.mxu1 %v6235_v18  ;;  %4321 = vmatpush.bf16.msra.mxu2 %v6427_v5  ;;  %v7448_v18 = vld [vmem:[#allocation17 + $0x4e4] sm:$0xf]  ;;  %v6760_v5 = vld [vmem:[#allocation17 + $0x4f8] sm:$0xf0] }
 0x35b   :  { %4334 = vmatpush.bf16.msra.mxu3 %v6619_v62  ;;  %4347 = vmatpush.bf16.msrb.mxu0 %v6811_v4  ;;  %v6763_v19 = vor.u32 %v7448_v18, %v6760_v5  ;;  %v7326_v62 = vld [vmem:[#allocation17 + $0x10c] sm:$0xf0]  ;;  %v6454_v4 = vld [vmem:[#allocation17 + $0x278] sm:$0xf]  ;;  %v7368_v18 = vld [vmem:[#allocation17 + $0x25c] sm:$0xf0] }
 0x35c   :  { %v6263_v3 = vor.u32 %v7326_v62, %v6262_v61  ;;  %v7350_v62 = vld [vmem:[#allocation17 + $0x1cc] sm:$0xf0] }
 0x35e   :  { %4309 = vmatpush.bf16.msra.mxu1 %v6211_v15  ;;  %4322 = vmatpush.bf16.msra.mxu2 %v6403_v34  ;;  %v6547_v15 = vor.u32 %v7394_v20, %v6544_v22  ;;  %v8093_v34 = vld [vmem:[%s8163_s10] sm:$0xf]  ;;  %v6694_v20 = vld [vmem:[#allocation17 + $0x458] sm:$0xf]  ;;  %v7434_v22 = vld [vmem:[#allocation17 + $0x46c] sm:$0xf0] }
 0x35f   :  { %4335 = vmatpush.bf16.msra.mxu3 %v6595_v11  ;;  %4348 = vmatpush.bf16.msrb.mxu0 %v6787_v14  ;;  %v2647_v33 = vperm.slane %v8093_v34, 0  ;;  %v2649_v0 = vperm.slane %v8093_v34, 2  ;;  %v7320_v11 = vld [vmem:[#allocation17 + $0xdc] sm:$0xf0]  ;;  %v2650_v54 = vperm.slane %v8093_v34, 3  ;;  %v6455_v14 = vor.u32 %v7374_v6, %v6454_v4 }
 0x360   :  { %v6239_v17 = vor.u32 %v7320_v11, %v6238_v7  ;;  %v6142_v4 = vld [vmem:[#allocation17 + $0x8] sm:$0xf]  ;;  %v7296_v6 = vld [vmem:[#allocation17 + $0x1c] sm:$0xf0] }
 0x362   :  { %4310 = vmatpush.bf16.msra.mxu1 %v6187_v41  ;;  %4323 = vmatpush.bf16.msra.mxu2 %v6379_v46  ;;  %v2648_v41 = vperm.slane %v8093_v34, 1  ;;  %v6695_v34 = vor.u32 %v7434_v22, %v6694_v20  ;;  %v6504_v20 = vld [vmem:[#allocation17 + $0x2f0] sm:$0xf0] }
 0x363   :  { %4336 = vmatpush.bf16.msra.mxu3 %v6571_v8  ;;  %4349 = vmatpush.bf16.msrb.mxu0 %v6763_v19  ;;  %v6430_v8 = vld [vmem:[#allocation17 + $0x248] sm:$0xf] }
 0x366   :  { %4311 = vmatpush.bf16.msra.mxu1 %v6163_v48  ;;  %4324 = vmatpush.bf16.msra.mxu2 %v6355_v56  ;;  %v6311_v48 = vor.u32 %v7338_v45, %v6310_v39  ;;  %v6503_v56 = vor.u32 %v7386_v50, %v6502_v49  ;;  %v7308_v39 = vld [vmem:[#allocation17 + $0x7c] sm:$0xf0]  ;;  %v6862_v49 = vld [vmem:[#allocation17 + $0x5a8] sm:$0xf] }
 0x367   :  { %4337 = vmatpush.bf16.msra.mxu3 %v6547_v15  ;;  %4350 = vmatpush.bf16.msrb.mxu0 %v6739_v35  ;;  %v7314_v35 = vld [vmem:[#allocation17 + $0xac] sm:$0xf0]  ;;  %v7476_v50 = vld [vmem:[#allocation17 + $0x5bc] sm:$0xf0] }
 0x36a   :  { %4312 = vmatpush.bf16.msra.mxu1 %v6139_v60  ;;  %4325 = vmatpush.bf16.msra.mxu2 %v6331_v2  ;;  %v6479_v2 = vor.u32 %v7380_v59, %v6478_v25  ;;  %v6863_v59 = vor.u32 %v7476_v50, %v6862_v49  ;;  %v6550_v49 = vld [vmem:[#allocation17 + $0x338] sm:$0xf]  ;;  %v7398_v50 = vld [vmem:[#allocation17 + $0x34c] sm:$0xf0] }
 0x36b   :  { %4338 = vmatpush.bf16.msra.mxu3 %v6523_v21  ;;  %4351 = vmatpush.bf16.msrb.mxu0 %v6715_v36  ;;  %v6431_v21 = vor.u32 %v7368_v18, %v6430_v8  ;;  %v7362_v36 = vld [vmem:[#allocation17 + $0x22c] sm:$0xf0]  ;;  %v6814_v8 = vld [vmem:[#allocation17 + $0x548] sm:$0xf]  ;;  %v7464_v18 = vld [vmem:[#allocation17 + $0x55c] sm:$0xf0] }
 0x36c   :  { %v6407_v45 = vor.u32 %v7362_v36, %v6406_v28  ;;  %v6790_v28 = vld [vmem:[#allocation17 + $0x518] sm:$0xf]  ;;  %v7377_v36 = vld [vmem:[#allocation17 + $0x2ac] sm:$0xf] }
 0x3a9   :  { %v2984_v38 = vpop.f32.mrf.mxu1 }
 0x3aa   :  { %v3023_v40 = vpop.f32.mrf.mxu0  ;;  %v2985_v42 = vadd.f32 %v2984_v38, %v2647_v33  ;;  %v6886_v38 = vld [vmem:[#allocation17 + $0x5d8] sm:$0xf]  ;;  %v7482_v33 = vld [vmem:[#allocation17 + $0x5ec] sm:$0xf0] }
 0x3af   :  { %v2997_v43 = vpop.f32.mrf.mxu2 }
 0x3b0   :  { %v2998_v44 = vadd.f32 %v2997_v43, %v2985_v42  ;;  %v3010_v10 = vpop.f32.mrf.mxu3  ;;  %v6670_v42 = vld [vmem:[#allocation17 + $0x428] sm:$0xf]  ;;  %v7428_v43 = vld [vmem:[#allocation17 + $0x43c] sm:$0xf0] }
 0x3b1   :  { %v3011_v46 = vadd.f32 %v3010_v10, %v2648_v41  ;;  %v2986_v30 = vpop.f32.mrf.mxu1  ;;  %v6215_v41 = vor.u32 %v7314_v35, %v6214_v24  ;;  %v6190_v10 = vld [vmem:[#allocation17 + $0x68] sm:$0xf]  ;;  %v6815_v35 = vor.u32 %v7464_v18, %v6814_v8 }
 0x3b2   :  { %v3079_v31 = vmax.f32 %v2998_v44, 0.0  ;;  %v3025_v37 = vpop.f32.mrf.mxu0  ;;  %v6382_v30 = vld [vmem:[#allocation17 + $0x1e8] sm:$0xf]  ;;  %v6191_v53 = vor.u32 %v7308_v39, %v6190_v10  ;;  %v6264_v10 = vld [vmem:[#allocation17 + $0x110] sm:$0xf0] }
 0x3b3   :  { %v3024_v47 = vadd.f32 %v3023_v40, %v3011_v46  ;;  %v6887_v46 = vor.u32 %v7482_v33, %v6886_v38  ;;  %v6480_v38 = vld [vmem:[#allocation17 + $0x2c0] sm:$0xf0] }
 0x3b4   :  { %v8097_v51 = vpack.c.bf16 %v3079_v31, %v3079_v31  ;;  %v6483_v39 = vor.u32 %v7377_v36, %v6480_v38  ;;  %v6168_v36 = vld [vmem:[#allocation17 + $0x50] sm:$0xf0]  ;;  %v7419_v38 = vld [vmem:[#allocation17 + $0x3fc] sm:$0xf] }
 0x3b5   :  { %v3080_v55 = vmax.f32 %v3024_v47, 0.0  ;;  %v6671_v47 = vor.u32 %v7428_v43, %v6670_v42  ;;  %v7404_v42 = vld [vmem:[#allocation17 + $0x37c] sm:$0xf0] }
 0x3b6   :  { %4261 = vmatmul.bf16.vlgmr.msrb.gmra.mxu1 %v8097_v51 }
 0x3b7   :  { %v8100_v9 = vpack.c.bf16 %v3080_v55, %v3080_v55  ;;  %4357 = vmatpush.bf16.msrb.mxu1 %v6311_v48  ;;  %v2999_v57 = vpop.f32.mrf.mxu2  ;;  %v7356_v48 = vld [vmem:[#allocation17 + $0x1fc] sm:$0xf0]  ;;  %v6646_v55 = vld [vmem:[#allocation17 + $0x3f8] sm:$0xf] }
 0x3b8   :  { %v3012_v60 = vpop.f32.mrf.mxu3  ;;  %v6166_v57 = vld [vmem:[#allocation17 + $0x38] sm:$0xf]  ;;  %v6383_v25 = vor.u32 %v7356_v48, %v6382_v30 }
 0x3b9   :  { %4274 = vmatmul.bf16.vlgmr.msrb.gmra.mxu2 %v8100_v9  ;;  %v3036_v63 = vpop.f32.mrf.mxu1  ;;  %v6358_v60 = vld [vmem:[#allocation17 + $0x1b8] sm:$0xf] }
 0x3ba   :  { %4370 = vmatpush.bf16.msrb.mxu2 %v6503_v56  ;;  %v3075_v1 = vpop.f32.mrf.mxu0  ;;  %v3037_v13 = vadd.f32 %v3036_v63, %v2649_v0  ;;  %v7422_v56 = vld [vmem:[#allocation17 + $0x40c] sm:$0xf0]  ;;  %v6838_v63 = vld [vmem:[#allocation17 + $0x578] sm:$0xf]  ;;  %v6359_v7 = vor.u32 %v7350_v62, %v6358_v60  ;;  %v6432_v60 = vld [vmem:[#allocation17 + $0x260] sm:$0xf0] }
 0x3bb   :  { %4358 = vmatpush.bf16.msrb.mxu1 %v6287_v58  ;;  %v7302_v58 = vld [vmem:[#allocation17 + $0x4c] sm:$0xf0]  ;;  %v6647_v61 = vor.u32 %v7422_v56, %v6646_v55  ;;  %v6240_v55 = vld [vmem:[#allocation17 + $0xe0] sm:$0xf0]  ;;  %v6526_v62 = vld [vmem:[#allocation17 + $0x308] sm:$0xf] }
 0x3bc   :  { %v7470_v0 = vld [vmem:[#allocation17 + $0x58c] sm:$0xf0] }
 0x3bd   :  { %v6839_v11 = vor.u32 %v7470_v0, %v6838_v63  ;;  %v7392_v63 = vld [vmem:[#allocation17 + $0x31c] sm:$0xf0]  ;;  %v7311_v0 = vld [vmem:[#allocation17 + $0x9c] sm:$0xf] }
 0x3be   :  { %4371 = vmatpush.bf16.msrb.mxu2 %v6479_v2  ;;  %v6622_v2 = vld [vmem:[#allocation17 + $0x3c8] sm:$0xf] }
 0x3bf   :  { %4359 = vmatpush.bf16.msrb.mxu1 %v6263_v3  ;;  %v3049_v16 = vpop.f32.mrf.mxu2  ;;  %v7416_v3 = vld [vmem:[#allocation17 + $0x3dc] sm:$0xf0] }
 0x3c0   :  { %v3050_v5 = vadd.f32 %v3049_v16, %v3037_v13  ;;  %v3062_v19 = vpop.f32.mrf.mxu3  ;;  %v6312_v13 = vld [vmem:[#allocation17 + $0x170] sm:$0xf0]  ;;  %v6623_v16 = vor.u32 %v7416_v3, %v6622_v2  ;;  %v7431_v3 = vld [vmem:[#allocation17 + $0x45c] sm:$0xf] }
 0x3c1   :  { %v3063_v15 = vadd.f32 %v3062_v19, %v2650_v54  ;;  %v3038_v32 = vpop.f32.mrf.mxu1  ;;  %v7335_v54 = vld [vmem:[#allocation17 + $0x15c] sm:$0xf]  ;;  %v6216_v2 = vld [vmem:[#allocation17 + $0xb0] sm:$0xf0] }
 0x3c2   :  { %v3081_v26 = vmax.f32 %v3050_v5, 0.0  ;;  %4372 = vmatpush.bf16.msrb.mxu2 %v6455_v14  ;;  %v3077_v27 = vpop.f32.mrf.mxu0  ;;  %v6334_v14 = vld [vmem:[#allocation17 + $0x188] sm:$0xf]  ;;  %v6143_v5 = vor.u32 %v7296_v6, %v6142_v4  ;;  %v7383_v19 = vld [vmem:[#allocation17 + $0x2dc] sm:$0xf]  ;;  %v6315_v22 = vor.u32 %v7335_v54, %v6312_v13  ;;  %v6527_v13 = vor.u32 %v7392_v63, %v6526_v62 }
 0x3c3   :  { %v3076_v23 = vadd.f32 %v3075_v1, %v3063_v15  ;;  %4360 = vmatpush.bf16.msrb.mxu1 %v6239_v17  ;;  %v6167_v1 = vor.u32 %v7302_v58, %v6166_v57  ;;  %v7344_v17 = vld [vmem:[#allocation17 + $0x19c] sm:$0xf0]  ;;  %v6598_v15 = vld [vmem:[#allocation17 + $0x398] sm:$0xf]  ;;  %v7410_v32 = vld [vmem:[#allocation17 + $0x3ac] sm:$0xf0]  ;;  %v6219_v8 = vor.u32 %v7311_v0, %v6216_v2 }
 0x3c4   :  { %v8105_v40 = vpack.c.bf16 %v3081_v26, %v3081_v26  ;;  %v6335_v24 = vor.u32 %v7344_v17, %v6334_v14  ;;  %v7329_v26 = vld [vmem:[#allocation17 + $0x12c] sm:$0xf]  ;;  %v6288_v27 = vld [vmem:[#allocation17 + $0x140] sm:$0xf0]  ;;  %v6742_v57 = vld [vmem:[#allocation17 + $0x4b8] sm:$0xf] }
 0x3c5   :  { %v3082_v44 = vmax.f32 %v3076_v23, 0.0  ;;  %v7458_v23 = vld [vmem:[#allocation17 + $0x52c] sm:$0xf0]  ;;  %v6291_v33 = vor.u32 %v7329_v26, %v6288_v27  ;;  %v6696_v4 = vld [vmem:[#allocation17 + $0x470] sm:$0xf0] }
 0x3c6   :  { %4373 = vmatpush.bf16.msrb.mxu2 %v6431_v21  ;;  %4287 = vmatmul.bf16.vlgmr.msrb.gmra.mxu3 %v8105_v40  ;;  %v6507_v21 = vor.u32 %v7383_v19, %v6504_v20  ;;  %v6791_v43 = vor.u32 %v7458_v23, %v6790_v28  ;;  %v7446_v58 = vld [vmem:[#allocation17 + $0x4cc] sm:$0xf0]  ;;  %v7359_v54 = vld [vmem:[#allocation17 + $0x21c] sm:$0xf]  ;;  %v6408_v14 = vld [vmem:[#allocation17 + $0x230] sm:$0xf0]  ;;  %v6699_v18 = vor.u32 %v7431_v3, %v6696_v4 }
 0x3c7   :  { %v8108_v31 = vpack.c.bf16 %v3082_v44, %v3082_v44  ;;  %4313 = vmatmul.bf16.vlgmr.msra.gmra.mxu1 %v8097_v51  ;;  %4383 = vmatpush.bf16.msrb.mxu3 %v6695_v34  ;;  %v3051_v37 = vpop.f32.mrf.mxu2  ;;  %v6599_v34 = vor.u32 %v7410_v32, %v6598_v15  ;;  %v7323_v44 = vld [vmem:[#allocation17 + $0xfc] sm:$0xf]  ;;  %v6888_v17 = vld [vmem:[#allocation17 + $0x5f0] sm:$0xf0]  ;;  %v6192_v20 = vld [vmem:[#allocation17 + $0x80] sm:$0xf0]  ;;  %v6411_v32 = vor.u32 %v7359_v54, %v6408_v14 }
 0x3c8   :  { %4361 = vmatpush.bf16.msrb.mxu1 %v6215_v41  ;;  %v3064_v52 = vpop.f32.mrf.mxu3  ;;  %v6574_v41 = vld [vmem:[#allocation17 + $0x368] sm:$0xf]  ;;  %v7371_v37 = vld [vmem:[#allocation17 + $0x27c] sm:$0xf]  ;;  %v6267_v48 = vor.u32 %v7323_v44, %v6264_v10  ;;  %v6672_v15 = vld [vmem:[#allocation17 + $0x440] sm:$0xf0] }
 0x3c9   :  { %4300 = vmatmul.bf16.vlgmr.msra.gmra.mxu0 %v8108_v31  ;;  %4326 = vmatmul.bf16.vlgmr.msra.gmra.mxu2 %v8100_v9  ;;  %v6575_v30 = vor.u32 %v7404_v42, %v6574_v41  ;;  %v6384_v26 = vld [vmem:[#allocation17 + $0x200] sm:$0xf0]  ;;  %v7473_v27 = vld [vmem:[#allocation17 + $0x5ac] sm:$0xf]  ;;  %v6360_v44 = vld [vmem:[#allocation17 + $0x1d0] sm:$0xf0] }
 0x3ca   :  { %4374 = vmatpush.bf16.msrb.mxu2 %v6407_v45  ;;  %4396 = vmatpush.bf16.msra.mxu0 %v6887_v46  ;;  %v6766_v45 = vld [vmem:[#allocation17 + $0x4e8] sm:$0xf]  ;;  %v7452_v46 = vld [vmem:[#allocation17 + $0x4fc] sm:$0xf0]  ;;  %v7467_v10 = vld [vmem:[#allocation17 + $0x57c] sm:$0xf] }
 0x3cb   :  { %4384 = vmatpush.bf16.msrb.mxu3 %v6671_v47  ;;  %v6456_v47 = vld [vmem:[#allocation17 + $0x290] sm:$0xf0]  ;;  %v6767_v52 = vor.u32 %v7452_v46, %v6766_v45  ;;  %v7407_v63 = vld [vmem:[#allocation17 + $0x39c] sm:$0xf]  ;;  %v6294_v3 = vld [vmem:[#allocation17 + $0x130] sm:$0xf] }
 0x3cc   :  { %4362 = vmatpush.bf16.msrb.mxu1 %v6191_v53  ;;  %v7317_v53 = vld [vmem:[#allocation17 + $0xcc] sm:$0xf]  ;;  %v6459_v56 = vor.u32 %v7371_v37, %v6456_v47  ;;  %v6144_v37 = vld [vmem:[#allocation17 + $0x20] sm:$0xf0]  ;;  %v6600_v0 = vld [vmem:[#allocation17 + $0x3b0] sm:$0xf0] }
 0x3cd   :  { %v7413_v47 = vld [vmem:[#allocation17 + $0x3cc] sm:$0xf]  ;;  %v7333_v4 = vld [vmem:[#allocation17 + $0x144] sm:$0xf0]  ;;  %v6603_v54 = vor.u32 %v7407_v63, %v6600_v0  ;;  %v6678_v63 = vld [vmem:[#allocation17 + $0x430] sm:$0xf] }
 0x3ce   :  { %4375 = vmatpush.bf16.msrb.mxu2 %v6383_v25  ;;  %4397 = vmatpush.bf16.msra.mxu0 %v6863_v59  ;;  %v6551_v25 = vor.u32 %v7398_v50, %v6550_v49  ;;  %v7365_v59 = vld [vmem:[#allocation17 + $0x24c] sm:$0xf]  ;;  %v7381_v14 = vld [vmem:[#allocation17 + $0x2c4] sm:$0xf0] }
 0x3cf   :  { %4385 = vmatpush.bf16.msrb.mxu3 %v6647_v61  ;;  %v6243_v61 = vor.u32 %v7317_v53, %v6240_v55  ;;  %v6435_v6 = vor.u32 %v7365_v59, %v6432_v60  ;;  %v7339_v53 = vld [vmem:[#allocation17 + $0x174] sm:$0xf0]  ;;  %v7341_v55 = vld [vmem:[#allocation17 + $0x18c] sm:$0xf]  ;;  %v6510_v60 = vld [vmem:[#allocation17 + $0x2e0] sm:$0xf] }
 0x3d0   :  { %4363 = vmatpush.bf16.msrb.mxu1 %v6167_v1  ;;  %v6743_v1 = vor.u32 %v7446_v58, %v6742_v57  ;;  %v7461_v57 = vld [vmem:[#allocation17 + $0x54c] sm:$0xf]  ;;  %v6816_v58 = vld [vmem:[#allocation17 + $0x560] sm:$0xf0]  ;;  %v7429_v0 = vld [vmem:[#allocation17 + $0x444] sm:$0xf0] }
 0x3d1   :  { %v6819_v2 = vor.u32 %v7461_v57, %v6816_v58  ;;  %v6894_v58 = vld [vmem:[#allocation17 + $0x5e0] sm:$0xf] }
 0x3d2   :  { %4376 = vmatpush.bf16.msrb.mxu2 %v6359_v7  ;;  %4398 = vmatpush.bf16.msra.mxu0 %v6839_v11  ;;  %v6718_v7 = vld [vmem:[#allocation17 + $0x488] sm:$0xf]  ;;  %v7440_v11 = vld [vmem:[#allocation17 + $0x49c] sm:$0xf0] }
 0x3d3   :  { %4386 = vmatpush.bf16.msrb.mxu3 %v6623_v16  ;;  %v7479_v16 = vld [vmem:[#allocation17 + $0x5dc] sm:$0xf]  ;;  %v6719_v19 = vor.u32 %v7440_v11, %v6718_v7  ;;  %v6792_v11 = vld [vmem:[#allocation17 + $0x530] sm:$0xf0] }
 0x3d4   :  { %4364 = vmatpush.bf16.msrb.mxu1 %v6143_v5  ;;  %v7305_v5 = vld [vmem:[#allocation17 + $0x6c] sm:$0xf]  ;;  %v7455_v7 = vld [vmem:[#allocation17 + $0x51c] sm:$0xf] }
 0x3d5   :  { %v6195_v28 = vor.u32 %v7305_v5, %v6192_v20  ;;  %v6270_v5 = vld [vmem:[#allocation17 + $0x100] sm:$0xf] }
 0x3d6   :  { %4377 = vmatpush.bf16.msrb.mxu2 %v6335_v24  ;;  %4399 = vmatpush.bf16.msra.mxu0 %v6815_v35  ;;  %v6891_v24 = vor.u32 %v7479_v16, %v6888_v17  ;;  %v7353_v35 = vld [vmem:[#allocation17 + $0x1ec] sm:$0xf]  ;;  %v6295_v16 = vor.u32 %v7333_v4, %v6294_v3  ;;  %v7357_v3 = vld [vmem:[#allocation17 + $0x204] sm:$0xf0] }
 0x3d7   :  { %4339 = vmatmul.bf16.vlgmr.msra.gmra.mxu3 %v8105_v40  ;;  %4365 = vmatmul.bf16.vlgmr.msrb.gmra.mxu1 %v8097_v51  ;;  %v6387_v41 = vor.u32 %v7353_v35, %v6384_v26  ;;  %v7401_v17 = vld [vmem:[#allocation17 + $0x36c] sm:$0xf]  ;;  %v7375_v35 = vld [vmem:[#allocation17 + $0x294] sm:$0xf0] }
 0x3d8   :  { %4409 = vmatpush.bf16.msra.mxu1 %v6315_v22  ;;  %4387 = vmatpush.bf16.msrb.mxu3 %v6599_v34  ;;  %v7425_v22 = vld [vmem:[#allocation17 + $0x42c] sm:$0xf]  ;;  %v7299_v34 = vld [vmem:[#allocation17 + $0x3c] sm:$0xf] }
 0x3d9   :  { %4352 = vmatmul.bf16.vlgmr.msrb.gmra.mxu0 %v8108_v31  ;;  %4378 = vmatmul.bf16.vlgmr.msrb.gmra.mxu2 %v8100_v9  ;;  %v6675_v23 = vor.u32 %v7425_v22, %v6672_v15  ;;  %v6171_v45 = vor.u32 %v7299_v34, %v6168_v36  ;;  %v7449_v22 = vld [vmem:[#allocation17 + $0x4ec] sm:$0xf]  ;;  %v6768_v15 = vld [vmem:[#allocation17 + $0x500] sm:$0xf0]  ;;  %v7321_v34 = vld [vmem:[#allocation17 + $0xe4] sm:$0xf0] }
 0x3da   :  { %4422 = vmatpush.bf16.msra.mxu2 %v6507_v21  ;;  %4400 = vmatpush.bf16.msra.mxu0 %v6791_v43  ;;  %v6864_v21 = vld [vmem:[#allocation17 + $0x5c0] sm:$0xf0]  ;;  %v7347_v43 = vld [vmem:[#allocation17 + $0x1bc] sm:$0xf] }
 0x3db   :  { %v6867_v42 = vor.u32 %v7473_v27, %v6864_v21  ;;  %v6363_v49 = vor.u32 %v7347_v43, %v6360_v44  ;;  %v7395_v27 = vld [vmem:[#allocation17 + $0x33c] sm:$0xf]  ;;  %v6552_v21 = vld [vmem:[#allocation17 + $0x350] sm:$0xf0]  ;;  %v7369_v43 = vld [vmem:[#allocation17 + $0x264] sm:$0xf0] }
 0x3dc   :  { %4410 = vmatpush.bf16.msra.mxu1 %v6291_v33  ;;  %4388 = vmatpush.bf16.msrb.mxu3 %v6575_v30  ;;  %v6648_v33 = vld [vmem:[#allocation17 + $0x410] sm:$0xf0]  ;;  %v7293_v30 = vld [vmem:[#allocation17 + $0xc] sm:$0xf] }
 0x3dd   :  { %v6651_v46 = vor.u32 %v7419_v38, %v6648_v33  ;;  %v7443_v38 = vld [vmem:[#allocation17 + $0x4bc] sm:$0xf]  ;;  %v6744_v33 = vld [vmem:[#allocation17 + $0x4d0] sm:$0xf0] }
 0x3de   :  { %4423 = vmatpush.bf16.msra.mxu2 %v6483_v39  ;;  %4401 = vmatpush.bf16.msra.mxu0 %v6767_v52  ;;  %v6840_v39 = vld [vmem:[#allocation17 + $0x590] sm:$0xf0]  ;;  %v6318_v52 = vld [vmem:[#allocation17 + $0x160] sm:$0xf] }
 0x3df   :  { %v6843_v50 = vor.u32 %v7467_v10, %v6840_v39  ;;  %v6319_v62 = vor.u32 %v7339_v53, %v6318_v52  ;;  %v7389_v10 = vld [vmem:[#allocation17 + $0x30c] sm:$0xf]  ;;  %v6528_v39 = vld [vmem:[#allocation17 + $0x320] sm:$0xf0]  ;;  %v6414_v53 = vld [vmem:[#allocation17 + $0x220] sm:$0xf] }
 0x3e0   :  { %4411 = vmatpush.bf16.msra.mxu1 %v6267_v48  ;;  %4389 = vmatpush.bf16.msrb.mxu3 %v6551_v25  ;;  %v6624_v48 = vld [vmem:[#allocation17 + $0x3e0] sm:$0xf0]  ;;  %v6147_v25 = vor.u32 %v7293_v30, %v6144_v37  ;;  %v7315_v30 = vld [vmem:[#allocation17 + $0xb4] sm:$0xf0]  ;;  %v6702_v37 = vld [vmem:[#allocation17 + $0x460] sm:$0xf]  ;;  %v6531_v52 = vor.u32 %v7389_v10, %v6528_v39 }
 0x3e1   :  { %v6627_v59 = vor.u32 %v7413_v47, %v6624_v48  ;;  %v7435_v47 = vld [vmem:[#allocation17 + $0x474] sm:$0xf0]  ;;  %v6512_v10 = vld [vmem:[#allocation17 + $0x2f8] sm:$0xf0] }
 0x3e2   :  { %4424 = vmatpush.bf16.msra.mxu2 %v6459_v56  ;;  %4402 = vmatpush.bf16.msra.mxu0 %v6743_v1  ;;  %v6336_v56 = vld [vmem:[#allocation17 + $0x1a0] sm:$0xf0]  ;;  %v6703_v57 = vor.u32 %v7435_v47, %v6702_v37  ;;  %v7330_v37 = vld [vmem:[#allocation17 + $0x134] sm:$0xf]  ;;  %v6296_v47 = vld [vmem:[#allocation17 + $0x148] sm:$0xf0] }
 0x3e3   :  { %v6339_v1 = vor.u32 %v7341_v55, %v6336_v56  ;;  %v7363_v55 = vld [vmem:[#allocation17 + $0x234] sm:$0xf0] }
 0x3e4   :  { %4412 = vmatpush.bf16.msra.mxu1 %v6243_v61  ;;  %4390 = vmatpush.bf16.msrb.mxu3 %v6527_v13  ;;  %v7387_v61 = vld [vmem:[#allocation17 + $0x2f4] sm:$0xf0]  ;;  %v6486_v13 = vld [vmem:[#allocation17 + $0x2b0] sm:$0xf] }
 0x3e5   :  { %v6487_v20 = vor.u32 %v7381_v14, %v6486_v13  ;;  %v7303_v13 = vld [vmem:[#allocation17 + $0x54] sm:$0xf0] }
 0x3e6   :  { %4425 = vmatpush.bf16.msra.mxu2 %v6435_v6  ;;  %4403 = vmatpush.bf16.msra.mxu0 %v6719_v19  ;;  %v6511_v6 = vor.u32 %v7387_v61, %v6510_v60  ;;  %v7327_v19 = vld [vmem:[#allocation17 + $0x114] sm:$0xf0]  ;;  %v6198_v60 = vld [vmem:[#allocation17 + $0x70] sm:$0xf]  ;;  %v7309_v61 = vld [vmem:[#allocation17 + $0x84] sm:$0xf0] }
 0x3e7   :  { %4391 = vmatmul.bf16.vlgmr.msrb.gmra.mxu3 %v8105_v40  ;;  %v6271_v26 = vor.u32 %v7327_v19, %v6270_v5  ;;  %v6199_v4 = vor.u32 %v7309_v61, %v6198_v60  ;;  %v7351_v5 = vld [vmem:[#allocation17 + $0x1d4] sm:$0xf0]  ;;  %v6272_v60 = vld [vmem:[#allocation17 + $0x118] sm:$0xf0] }
 0x3e8   :  { %4413 = vmatpush.bf16.msra.mxu1 %v6219_v8  ;;  %4435 = vmatpush.bf16.msra.mxu3 %v6699_v18  ;;  %v6576_v8 = vld [vmem:[#allocation17 + $0x380] sm:$0xf0]  ;;  %v6795_v18 = vor.u32 %v7455_v7, %v6792_v11  ;;  %v7477_v7 = vld [vmem:[#allocation17 + $0x5c4] sm:$0xf0]  ;;  %v6679_v11 = vor.u32 %v7429_v0, %v6678_v63 }
 0x3e9   :  { %4404 = vmatmul.bf16.vlgmr.msra.gmra.mxu0 %v8108_v31  ;;  %v7453_v63 = vld [vmem:[#allocation17 + $0x504] sm:$0xf0] }
 0x3ea   :  { %4426 = vmatpush.bf16.msra.mxu2 %v6411_v32  ;;  %4448 = vmatpush.bf16.msrb.mxu0 %v6891_v24  ;;  %v6579_v32 = vor.u32 %v7401_v17, %v6576_v8  ;;  %v6462_v24 = vld [vmem:[#allocation17 + $0x280] sm:$0xf]  ;;  %v7423_v17 = vld [vmem:[#allocation17 + $0x414] sm:$0xf0] }
 0x3eb   :  { %v6463_v36 = vor.u32 %v7375_v35, %v6462_v24  ;;  %v7297_v24 = vld [vmem:[#allocation17 + $0x24] sm:$0xf0]  ;;  %v6630_v35 = vld [vmem:[#allocation17 + $0x3d0] sm:$0xf] }
 0x3ec   :  { %4414 = vmatpush.bf16.msra.mxu1 %v6195_v28  ;;  %4436 = vmatpush.bf16.msra.mxu3 %v6675_v23  ;;  %v6771_v28 = vor.u32 %v7449_v22, %v6768_v15  ;;  %v6246_v23 = vld [vmem:[#allocation17 + $0xd0] sm:$0xf]  ;;  %v7471_v22 = vld [vmem:[#allocation17 + $0x594] sm:$0xf0] }
 0x3ed   :  { %v6247_v44 = vor.u32 %v7321_v34, %v6246_v23  ;;  %v6342_v34 = vld [vmem:[#allocation17 + $0x190] sm:$0xf] }
 0x3ee   :  { %4427 = vmatpush.bf16.msra.mxu2 %v6387_v41  ;;  %4449 = vmatpush.bf16.msrb.mxu0 %v6867_v42  ;;  %v6555_v41 = vor.u32 %v7395_v27, %v6552_v21  ;;  %v6438_v42 = vld [vmem:[#allocation17 + $0x250] sm:$0xf]  ;;  %v7417_v27 = vld [vmem:[#allocation17 + $0x3e4] sm:$0xf0]  ;;  %v7336_v21 = vld [vmem:[#allocation17 + $0x164] sm:$0xf] }
 0x3ef   :  { %v6439_v48 = vor.u32 %v7369_v43, %v6438_v42  ;;  %v6631_v42 = vor.u32 %v7417_v27, %v6630_v35  ;;  %v6704_v35 = vld [vmem:[#allocation17 + $0x478] sm:$0xf0]  ;;  %v6726_v27 = vld [vmem:[#allocation17 + $0x490] sm:$0xf] }
 0x3f0   :  { %4415 = vmatpush.bf16.msra.mxu1 %v6171_v45  ;;  %4437 = vmatpush.bf16.msra.mxu3 %v6651_v46  ;;  %v6222_v45 = vld [vmem:[#allocation17 + $0xa0] sm:$0xf]  ;;  %v6747_v46 = vor.u32 %v7443_v38, %v6744_v33  ;;  %v6822_v33 = vld [vmem:[#allocation17 + $0x550] sm:$0xf] }
 0x3f1   :  { %v6223_v56 = vor.u32 %v7315_v30, %v6222_v45  ;;  %v6606_v45 = vld [vmem:[#allocation17 + $0x3a0] sm:$0xf] }
 0x3f2   :  { %4428 = vmatpush.bf16.msra.mxu2 %v6363_v49  ;;  %4450 = vmatpush.bf16.msrb.mxu0 %v6843_v50  ;;  %v7437_v49 = vld [vmem:[#allocation17 + $0x48c] sm:$0xf]  ;;  %v6720_v50 = vld [vmem:[#allocation17 + $0x4a0] sm:$0xf0] }
 0x3f4   :  { %4416 = vmatpush.bf16.msra.mxu1 %v6147_v25  ;;  %4438 = vmatpush.bf16.msra.mxu3 %v6627_v59  ;;  %v7483_v25 = vld [vmem:[#allocation17 + $0x5f4] sm:$0xf0]  ;;  %v6723_v59 = vor.u32 %v7437_v49, %v6720_v50  ;;  %v6798_v49 = vld [vmem:[#allocation17 + $0x520] sm:$0xf] }
 0x3f5   :  { %v7459_v50 = vld [vmem:[#allocation17 + $0x534] sm:$0xf0] }
 0x3f6   :  { %4429 = vmatpush.bf16.msra.mxu2 %v6339_v1  ;;  %4451 = vmatpush.bf16.msrb.mxu0 %v6819_v2  ;;  %v6895_v1 = vor.u32 %v7483_v25, %v6894_v58  ;;  %v6390_v2 = vld [vmem:[#allocation17 + $0x1f0] sm:$0xf]  ;;  %v7405_v58 = vld [vmem:[#allocation17 + $0x384] sm:$0xf0]  ;;  %v6799_v25 = vor.u32 %v7459_v50, %v6798_v49  ;;  %v6872_v49 = vld [vmem:[#allocation17 + $0x5c8] sm:$0xf0] }
 0x3f7   :  { %4417 = vmatmul.bf16.vlgmr.msra.gmra.mxu1 %v8097_v51  ;;  %v6391_v14 = vor.u32 %v7357_v3, %v6390_v2  ;;  %v6464_v2 = vld [vmem:[#allocation17 + $0x298] sm:$0xf0] }
 0x3f8   :  { %4461 = vmatpush.bf16.msrb.mxu1 %v6319_v62  ;;  %4439 = vmatpush.bf16.msra.mxu3 %v6603_v54  ;;  %v6415_v62 = vor.u32 %v7363_v55, %v6414_v53  ;;  %v6174_v54 = vld [vmem:[#allocation17 + $0x40] sm:$0xf]  ;;  %v7378_v53 = vld [vmem:[#allocation17 + $0x2b4] sm:$0xf]  ;;  %v6488_v55 = vld [vmem:[#allocation17 + $0x2c8] sm:$0xf0] }
 0x3f9   :  { %4430 = vmatmul.bf16.vlgmr.msra.gmra.mxu2 %v8100_v9  ;;  %v6175_v19 = vor.u32 %v7303_v13, %v6174_v54  ;;  %v6491_v61 = vor.u32 %v7378_v53, %v6488_v55  ;;  %v6248_v54 = vld [vmem:[#allocation17 + $0xe8] sm:$0xf0]  ;;  %v6176_v53 = vld [vmem:[#allocation17 + $0x58] sm:$0xf0] }
 0x3fa   :  { %4474 = vmatpush.bf16.msrb.mxu2 %v6511_v6  ;;  %4452 = vmatpush.bf16.msrb.mxu0 %v6795_v18  ;;  %v6870_v6 = vld [vmem:[#allocation17 + $0x5b0] sm:$0xf]  ;;  %v6366_v18 = vld [vmem:[#allocation17 + $0x1c0] sm:$0xf] }
 0x3fb   :  { %v6871_v8 = vor.u32 %v7477_v7, %v6870_v6  ;;  %v7399_v6 = vld [vmem:[#allocation17 + $0x354] sm:$0xf0] }
 0x3fc   :  { %4462 = vmatpush.bf16.msrb.mxu1 %v6295_v16  ;;  %4440 = vmatpush.bf16.msra.mxu3 %v6579_v32  ;;  %v6654_v16 = vld [vmem:[#allocation17 + $0x400] sm:$0xf]  ;;  %v6150_v32 = vld [vmem:[#allocation17 + $0x10] sm:$0xf] }
 0x3fd   :  { %v6655_v15 = vor.u32 %v7423_v17, %v6654_v16  ;;  %v6151_v38 = vor.u32 %v7297_v24, %v6150_v32  ;;  %v7447_v16 = vld [vmem:[#allocation17 + $0x4d4] sm:$0xf0]  ;;  %v6224_v32 = vld [vmem:[#allocation17 + $0xb8] sm:$0xf0]  ;;  %v7432_v24 = vld [vmem:[#allocation17 + $0x464] sm:$0xf] }
 0x3fe   :  { %4475 = vmatpush.bf16.msrb.mxu2 %v6487_v20  ;;  %4453 = vmatpush.bf16.msrb.mxu0 %v6771_v28  ;;  %v6846_v20 = vld [vmem:[#allocation17 + $0x580] sm:$0xf]  ;;  %v6320_v28 = vld [vmem:[#allocation17 + $0x178] sm:$0xf0] }
 0x3ff   :  { %v6847_v23 = vor.u32 %v7471_v22, %v6846_v20  ;;  %v6323_v43 = vor.u32 %v7336_v21, %v6320_v28  ;;  %v7393_v20 = vld [vmem:[#allocation17 + $0x324] sm:$0xf0]  ;;  %v7312_v22 = vld [vmem:[#allocation17 + $0xa4] sm:$0xf] }
 0x400   :  { %4463 = vmatpush.bf16.msrb.mxu1 %v6271_v26  ;;  %4441 = vmatpush.bf16.msra.mxu3 %v6555_v41  ;;  %v6367_v26 = vor.u32 %v7351_v5, %v6366_v18  ;;  %v7465_v41 = vld [vmem:[#allocation17 + $0x564] sm:$0xf0]  ;;  %v6440_v18 = vld [vmem:[#allocation17 + $0x268] sm:$0xf0] }
 0x401   :  { %v6823_v30 = vor.u32 %v7465_v41, %v6822_v33  ;;  %v7441_v21 = vld [vmem:[#allocation17 + $0x4a4] sm:$0xf0]  ;;  %v7480_v33 = vld [vmem:[#allocation17 + $0x5e4] sm:$0xf]  ;;  %v6896_v41 = vld [vmem:[#allocation17 + $0x5f8] sm:$0xf0] }
 0x402   :  { %4476 = vmatpush.bf16.msrb.mxu2 %v6463_v36  ;;  %4454 = vmatpush.bf16.msrb.mxu0 %v6747_v46  ;;  %v7345_v36 = vld [vmem:[#allocation17 + $0x1a4] sm:$0xf0]  ;;  %v7411_v46 = vld [vmem:[#allocation17 + $0x3b4] sm:$0xf0] }
 0x403   :  { %v6343_v39 = vor.u32 %v7345_v36, %v6342_v34  ;;  %v6416_v34 = vld [vmem:[#allocation17 + $0x238] sm:$0xf0]  ;;  %v6227_v36 = vor.u32 %v7312_v22, %v6224_v32  ;;  %v7490_v32 = vld [vmem:[#allocation19 + $0x30] sm:$0xff] }
 0x404   :  { %4464 = vmatpush.bf16.msrb.mxu1 %v6247_v44  ;;  %4442 = vmatpush.bf16.msra.mxu3 %v6531_v52  ;;  %v7384_v44 = vld [vmem:[#allocation17 + $0x2e4] sm:$0xf]  ;;  %v6607_v52 = vor.u32 %v7411_v46, %v6606_v45  ;;  %v6680_v45 = vld [vmem:[#allocation17 + $0x448] sm:$0xf0]  ;;  %v6899_v46 = vor.u32 %v7480_v33, %v6896_v41  ;;  %v6800_v22 = vld [vmem:[#allocation17 + $0x538] sm:$0xf0] }
 0x405   :  { %v7444_v41 = vld [vmem:[#allocation17 + $0x4c4] sm:$0xf] }
 0x406   :  { %4477 = vmatpush.bf16.msrb.mxu2 %v6439_v48  ;;  %4455 = vmatpush.bf16.msrb.mxu0 %v6723_v59  ;;  %v6515_v48 = vor.u32 %v7384_v44, %v6512_v10  ;;  %v7324_v59 = vld [vmem:[#allocation17 + $0x104] sm:$0xf]  ;;  %v6200_v44 = vld [vmem:[#allocation17 + $0x88] sm:$0xf0] }
 0x407   :  { %4443 = vmatmul.bf16.vlgmr.msra.gmra.mxu3 %v8105_v40  ;;  %v6275_v3 = vor.u32 %v7324_v59, %v6272_v60  ;;  %v6368_v59 = vld [vmem:[#allocation17 + $0x1d8] sm:$0xf0] }
 0x408   :  { %4465 = vmatpush.bf16.msrb.mxu1 %v6223_v56  ;;  %4487 = vmatpush.bf16.msrb.mxu3 %v6703_v57  ;;  %v6299_v56 = vor.u32 %v7330_v37, %v6296_v47  ;;  %v6582_v57 = vld [vmem:[#allocation17 + $0x370] sm:$0xf]  ;;  %v6392_v37 = vld [vmem:[#allocation17 + $0x208] sm:$0xf0] }
 0x409   :  { %4456 = vmatmul.bf16.vlgmr.msrb.gmra.mxu0 %v8108_v31  ;;  %v6583_v0 = vor.u32 %v7405_v58, %v6582_v57  ;;  %v6656_v57 = vld [vmem:[#allocation17 + $0x418] sm:$0xf0] }
 0x40a   :  { %4478 = vmatpush.bf16.msrb.mxu2 %v6415_v62  ;;  %4500 = vmatpush.bf16.msra.mxu0 %v6895_v1  ;;  %v6774_v62 = vld [vmem:[#allocation17 + $0x4f0] sm:$0xf]  ;;  %v7372_v1 = vld [vmem:[#allocation17 + $0x284] sm:$0xf] }
 0x40b   :  { %v6775_v7 = vor.u32 %v7453_v63, %v6774_v62  ;;  %v6467_v13 = vor.u32 %v7372_v1, %v6464_v2  ;;  %v6848_v62 = vld [vmem:[#allocation17 + $0x598] sm:$0xf0]  ;;  %v6152_v1 = vld [vmem:[#allocation17 + $0x28] sm:$0xf0] }
 0x40c   :  { %4466 = vmatpush.bf16.msrb.mxu1 %v6199_v4  ;;  %4488 = vmatpush.bf16.msrb.mxu3 %v6679_v11  ;;  %v6558_v4 = vld [vmem:[#allocation17 + $0x340] sm:$0xf]  ;;  %v7318_v11 = vld [vmem:[#allocation17 + $0xd4] sm:$0xf] }
 0x40d   :  { %v6559_v17 = vor.u32 %v7399_v6, %v6558_v4  ;;  %v6251_v5 = vor.u32 %v7318_v11, %v6248_v54  ;;  %v6632_v4 = vld [vmem:[#allocation17 + $0x3e8] sm:$0xf0] }
 0x40e   :  { %4479 = vmatpush.bf16.msrb.mxu2 %v6391_v14  ;;  %4501 = vmatpush.bf16.msra.mxu0 %v6871_v8  ;;  %v6750_v14 = vld [vmem:[#allocation17 + $0x4c0] sm:$0xf]  ;;  %v7366_v8 = vld [vmem:[#allocation17 + $0x254] sm:$0xf]  ;;  %v6344_v11 = vld [vmem:[#allocation17 + $0x1a8] sm:$0xf0] }
 0x410   :  { %4467 = vmatpush.bf16.msrb.mxu1 %v6175_v19  ;;  %4489 = vmatpush.bf16.msrb.mxu3 %v6655_v15  ;;  %v6534_v19 = vld [vmem:[#allocation17 + $0x310] sm:$0xf]  ;;  %v6751_v15 = vor.u32 %v7447_v16, %v6750_v14  ;;  %v6824_v14 = vld [vmem:[#allocation17 + $0x568] sm:$0xf0] }
 0x411   :  { %v6535_v28 = vor.u32 %v7393_v20, %v6534_v19  ;;  %v7456_v20 = vld [vmem:[#allocation17 + $0x524] sm:$0xf] }
 0x412   :  { %4480 = vmatpush.bf16.msrb.mxu2 %v6367_v26  ;;  %4502 = vmatpush.bf16.msra.mxu0 %v6847_v23  ;;  %v6443_v26 = vor.u32 %v7366_v8, %v6440_v18  ;;  %v7360_v23 = vld [vmem:[#allocation17 + $0x224] sm:$0xf] }
 0x413   :  { %v6419_v10 = vor.u32 %v7360_v23, %v6416_v34  ;;  %v7408_v18 = vld [vmem:[#allocation17 + $0x3a4] sm:$0xf]  ;;  %v7489_v23 = vld [vmem:[#allocation19 + $0x28] sm:$0xff] }
 0x414   :  { %4468 = vmatpush.bf16.msrb.mxu1 %v6151_v38  ;;  %4490 = vmatpush.bf16.msrb.mxu3 %v6631_v42  ;;  %v6707_v38 = vor.u32 %v7432_v24, %v6704_v35  ;;  %v6727_v42 = vor.u32 %v7441_v21, %v6726_v27  ;;  %v7402_v24 = vld [vmem:[#allocation17 + $0x374] sm:$0xf]  ;;  %v6584_v35 = vld [vmem:[#allocation17 + $0x388] sm:$0xf0]  ;;  %v7396_v34 = vld [vmem:[#allocation17 + $0x344] sm:$0xf] }
 0x415   :  { %v7450_v27 = vld [vmem:[#allocation17 + $0x4f4] sm:$0xf]  ;;  %v6776_v21 = vld [vmem:[#allocation17 + $0x508] sm:$0xf0] }
 0x416   :  { %4481 = vmatpush.bf16.msrb.mxu2 %v6343_v39  ;;  %4503 = vmatpush.bf16.msra.mxu0 %v6823_v30  ;;  %v7426_v39 = vld [vmem:[#allocation17 + $0x434] sm:$0xf]  ;;  %v6779_v33 = vor.u32 %v7450_v27, %v6776_v21 }
 0x417   :  { %4469 = vmatmul.bf16.vlgmr.msrb.gmra.mxu1 %v8097_v51  ;;  %v7354_v30 = vld [vmem:[#allocation17 + $0x1f4] sm:$0xf]  ;;  %v6683_v50 = vor.u32 %v7426_v39, %v6680_v45 }
 0x418   :  { %4513 = vmatpush.bf16.msra.mxu1 %v6323_v43  ;;  %4491 = vmatpush.bf16.msrb.mxu3 %v6607_v52  ;;  %v7306_v43 = vld [vmem:[#allocation17 + $0x74] sm:$0xf]  ;;  %v7300_v52 = vld [vmem:[#allocation17 + $0x44] sm:$0xf]  ;;  %v6395_v55 = vor.u32 %v7354_v30, %v6392_v37  ;;  %v7487_v30 = vld [vmem:[#allocation19 + $0x18] sm:$0xff] }
 0x419   :  { %4482 = vmatmul.bf16.vlgmr.msrb.gmra.mxu2 %v8100_v9  ;;  %v6203_v47 = vor.u32 %v7306_v43, %v6200_v44  ;;  %v6179_v60 = vor.u32 %v7300_v52, %v6176_v53  ;;  %v7390_v44 = vld [vmem:[#allocation17 + $0x314] sm:$0xf]  ;;  %v7485_v53 = vld [vmem:[#allocation19 + $0x8] sm:$0xff] }
 0x41a   :  { %4526 = vmatpush.bf16.msra.mxu2 %v6515_v48  ;;  %4504 = vmatpush.bf16.msra.mxu0 %v6799_v25  ;;  %v7474_v48 = vld [vmem:[#allocation17 + $0x5b4] sm:$0xf]  ;;  %v7348_v25 = vld [vmem:[#allocation17 + $0x1c4] sm:$0xf] }
 0x41b   :  { %v6875_v58 = vor.u32 %v7474_v48, %v6872_v49  ;;  %v6371_v2 = vor.u32 %v7348_v25, %v6368_v59  ;;  %v7438_v45 = vld [vmem:[#allocation17 + $0x494] sm:$0xf]  ;;  %v7484_v25 = vld [vmem:[#allocation19] sm:$0xff] }
 0x41c   :  { %4514 = vmatpush.bf16.msra.mxu1 %v6299_v56  ;;  %4492 = vmatpush.bf16.msrb.mxu3 %v6583_v0  ;;  %v7420_v56 = vld [vmem:[#allocation17 + $0x404] sm:$0xf]  ;;  %v7294_v0 = vld [vmem:[#allocation17 + $0x14] sm:$0xf] }
 0x41d   :  { %v6659_v63 = vor.u32 %v7420_v56, %v6656_v57  ;;  %v6155_v54 = vor.u32 %v7294_v0, %v6152_v1  ;;  %v7486_v49 = vld [vmem:[#allocation19 + $0x10] sm:$0xff] }
 0x41e   :  { %4527 = vmatpush.bf16.msra.mxu2 %v6491_v61  ;;  %4505 = vmatpush.bf16.msra.mxu0 %v6775_v7  ;;  %v7468_v61 = vld [vmem:[#allocation17 + $0x584] sm:$0xf]  ;;  %v7342_v7 = vld [vmem:[#allocation17 + $0x194] sm:$0xf] }
 0x41f   :  { %v6851_v6 = vor.u32 %v7468_v61, %v6848_v62  ;;  %v6347_v8 = vor.u32 %v7342_v7, %v6344_v11 }
 0x420   :  { %4515 = vmatpush.bf16.msra.mxu1 %v6275_v3  ;;  %4493 = vmatpush.bf16.msrb.mxu3 %v6559_v17  ;;  %v7414_v3 = vld [vmem:[#allocation17 + $0x3d4] sm:$0xf]  ;;  %v7491_v17 = vld [vmem:[#allocation19 + $0x38] sm:$0xff] }
 0x421   :  { %v6635_v16 = vor.u32 %v7414_v3, %v6632_v4 }
 0x422   :  { %4528 = vmatpush.bf16.msra.mxu2 %v6467_v13  ;;  %4506 = vmatpush.bf16.msra.mxu0 %v6751_v15  ;;  %v7462_v13 = vld [vmem:[#allocation17 + $0x554] sm:$0xf] }
 0x423   :  { %v6827_v19 = vor.u32 %v7462_v13, %v6824_v14 }
 0x424   :  { %4516 = vmatpush.bf16.msra.mxu1 %v6251_v5  ;;  %4494 = vmatpush.bf16.msrb.mxu3 %v6535_v28  ;;  %v6608_v5 = vld [vmem:[#allocation17 + $0x3b8] sm:$0xf0]  ;;  %v6587_v28 = vor.u32 %v7402_v24, %v6584_v35 }
 0x425   :  { %v6611_v15 = vor.u32 %v7408_v18, %v6608_v5 }
 0x426   :  { %4529 = vmatpush.bf16.msra.mxu2 %v6443_v26  ;;  %4507 = vmatpush.bf16.msra.mxu0 %v6727_v42  ;;  %v6803_v26 = vor.u32 %v7456_v20, %v6800_v22  ;;  %v6752_v42 = vld [vmem:[#allocation17 + $0x4d8] sm:$0xf0] }
 0x427   :  { %4495 = vmatmul.bf16.vlgmr.msrb.gmra.mxu3 %v8105_v40  ;;  %v6755_v39 = vor.u32 %v7444_v41, %v6752_v42 }
 0x428   :  { %4517 = vmatpush.bf16.msra.mxu1 %v6227_v36  ;;  %4539 = vmatpush.bf16.msra.mxu3 %v6707_v38  ;;  %v6560_v36 = vld [vmem:[#allocation17 + $0x358] sm:$0xf0] }
 0x429   :  { %4508 = vmatmul.bf16.vlgmr.msra.gmra.mxu0 %v8108_v31  ;;  %v6563_v43 = vor.u32 %v7396_v34, %v6560_v36 }
 0x42a   :  { %4530 = vmatpush.bf16.msra.mxu2 %v6419_v10  ;;  %4552 = vmatpush.bf16.msrb.mxu0 %v6899_v46  ;;  %v6536_v10 = vld [vmem:[#allocation17 + $0x328] sm:$0xf0] }
 0x42b   :  { %v6539_v46 = vor.u32 %v7390_v44, %v6536_v10 }
 0x42c   :  { %4518 = vmatpush.bf16.msra.mxu1 %v6203_v47  ;;  %4540 = vmatpush.bf16.msra.mxu3 %v6683_v50  ;;  %v7517_v50 = vld [vmem:[#allocation14] sm:$0x7] }
 0x42d   :  { %v2404_v52 = vperm.slane %v7517_v50, 2 }
 0x42e   :  { %4531 = vmatpush.bf16.msra.mxu2 %v6395_v55  ;;  %4553 = vmatpush.bf16.msrb.mxu0 %v6875_v58 }
 0x42f   :  { %v2572_v55 = vadd.f32 %v8076_v12, %v2404_v52 }
 0x430   :  { %4519 = vmatpush.bf16.msra.mxu1 %v6179_v60  ;;  %4541 = vmatpush.bf16.msra.mxu3 %v6659_v63 }
 0x431   :  { %v2577_v59 = vmax.f32 %v2572_v55, 0.0 }
 0x432   :  { %4532 = vmatpush.bf16.msra.mxu2 %v6371_v2  ;;  %4554 = vmatpush.bf16.msrb.mxu0 %v6851_v6 }
 0x433   :  { %v4262_v38 = vpop.f32.mrf.mxu1  ;;  %v2580_v61 = vpack.c.bf16 %v2577_v59, %v2577_v59 }
 0x434   :  { %4520 = vmatpush.bf16.msra.mxu1 %v6155_v54  ;;  %4542 = vmatpush.bf16.msra.mxu3 %v6635_v16 }
 0x436   :  { %4533 = vmatpush.bf16.msra.mxu2 %v6347_v8  ;;  %4555 = vmatpush.bf16.msrb.mxu0 %v6827_v19 }
 0x437   :  { %4521 = vmatmul.bf16.vlgmr.msra.gmra.mxu1 %v8097_v51  ;;  %v7488_v51 = vld [vmem:[#allocation19 + $0x20] sm:$0xff] }
 0x438   :  { %4633 = vmatpush.bf16.msrb.mxu1 %v7491_v17  ;;  %4543 = vmatpush.bf16.msra.mxu3 %v6611_v15 }
 0x439   :  { %4534 = vmatmul.bf16.vlgmr.msra.gmra.mxu2 %v8100_v9  ;;  %v6728_v9 = vld [vmem:[#allocation17 + $0x4a8] sm:$0xf0] }
 0x43a   :  { %4556 = vmatpush.bf16.msrb.mxu0 %v6803_v26  ;;  %v6731_v47 = vor.u32 %v7438_v45, %v6728_v9 }
 0x43b   :  { %v4264_v37 = vpop.f32.mrf.mxu1 }
 0x43c   :  { %4634 = vmatpush.bf16.msrb.mxu1 %v7490_v32  ;;  %4544 = vmatpush.bf16.msra.mxu3 %v6587_v28  ;;  %v4275_v48 = vpop.f32.mrf.mxu2 }
 0x43e   :  { %4557 = vmatpush.bf16.msrb.mxu0 %v6779_v33 }
 0x440   :  { %4635 = vmatpush.bf16.msrb.mxu1 %v7489_v23  ;;  %4545 = vmatpush.bf16.msra.mxu3 %v6563_v43 }
 0x442   :  { %4558 = vmatpush.bf16.msrb.mxu0 %v6755_v39 }
 0x444   :  { %4636 = vmatpush.bf16.msrb.mxu1 %v7488_v51  ;;  %4546 = vmatpush.bf16.msra.mxu3 %v6539_v46  ;;  %v4277_v56 = vpop.f32.mrf.mxu2  ;;  %v4314_v57 = vpop.f32.mrf.mxu1 }
 0x446   :  { %4559 = vmatpush.bf16.msrb.mxu0 %v6731_v47  ;;  %v4301_v58 = vpop.f32.mrf.mxu0 }
 0x447   :  { %4547 = vmatmul.bf16.vlgmr.msra.gmra.mxu3 %v8105_v40  ;;  %v8135_v40 = vld [vmem:[%s8165_s12] sm:$0x3f]  ;;  %s7867_s12 = smov [#allocation20]  }
 0x448   :  { %4637 = vmatpush.bf16.msrb.mxu1 %v7487_v30  ;;  %v3281_v12 = vperm.slane %v8135_v40, 0  ;;  %v3282_v1 = vperm.slane %v8135_v40, 1  ;;  %v3283_v23 = vperm.slane %v8135_v40, 2  ;;  %v3284_v34 = vperm.slane %v8135_v40, 3  ;;  %s4659_s29 = sshll.u32 %s7867_s12, 4  ;;  %s4660_s29 = int_to_ptr.vmem [resolvable:$true] %s4659_s29 }
 0x449   :  { %4560 = vmatmul.bf16.vlgmr.msrb.gmra.mxu0 %v8108_v31  ;;  %v4288_v60 = vpop.f32.mrf.mxu3  ;;  %v3286_v59 = vperm.slane %v8135_v40, 5 }
 0x44a   :  { %v4263_v3 = vadd.f32 %v4262_v38, %v3281_v12  ;;  %v4315_v11 = vadd.f32 %v4314_v57, %v3282_v1 }
 0x44c   :  { %4638 = vmatpush.bf16.msrb.mxu1 %v7486_v49  ;;  %v4316_v62 = vpop.f32.mrf.mxu1  ;;  %v4327_v63 = vpop.f32.mrf.mxu2  ;;  %v4276_v7 = vadd.f32 %v4275_v48, %v4263_v3 }
 0x44d   :  { %v4328_v13 = vadd.f32 %v4327_v63, %v4315_v11 }
 0x44e   :  { %v4303_v31 = vpop.f32.mrf.mxu0  ;;  %v4289_v54 = vadd.f32 %v4288_v60, %v4276_v7 }
 0x450   :  { %4639 = vmatpush.bf16.msrb.mxu1 %v7485_v53  ;;  %v4302_v17 = vadd.f32 %v4301_v58, %v4289_v54 }
 0x451   :  { %v4290_v0 = vpop.f32.mrf.mxu3 }
 0x454   :  { %4640 = vmatpush.bf16.msrb.mxu1 %v7484_v25  ;;  %v4329_v2 = vpop.f32.mrf.mxu2  ;;  %v4366_v4 = vpop.f32.mrf.mxu1  ;;  %v3285_v25 = vperm.slane %v8135_v40, 4  ;;  %v7516_v40 = vld [vmem:[%s8167_s14] ss:$0 sm:$0xff] }
 0x455   :  { %v4367_v38 = vadd.f32 %v4366_v4, %v3283_v23 }
 0x456   :  { %v4353_v6 = vpop.f32.mrf.mxu0 }
 0x457   :  { %4641 = vmatmul.bf16.vlgmr.msrb.gmra.mxu1 %v2580_v61 }
 0x45a   :  { %v4340_v14 = vpop.f32.mrf.mxu3 }
 0x45b   :  { %v4341_v16 = vadd.f32 %v4340_v14, %v4328_v13 }
 0x45c   :  { %v4368_v18 = vpop.f32.mrf.mxu1  ;;  %v4379_v5 = vpop.f32.mrf.mxu2 }
 0x45d   :  { %v4354_v8 = vadd.f32 %v4353_v6, %v4341_v16  ;;  %v4380_v41 = vadd.f32 %v4379_v5, %v4367_v38 }
 0x45e   :  { %v4355_v19 = vpop.f32.mrf.mxu0 }
 0x45f   :  { %v4646_v20 = vpack.c.bf16 %v4354_v8, %v4302_v17 }
 0x461   :  { %4649 = vst [vmem:[#allocation20] sm:$0xff] %v4646_v20 }
 0x462   :  { %v4342_v22 = vpop.f32.mrf.mxu3 }
 0x464   :  { %v4381_v15 = vpop.f32.mrf.mxu2 }
 0x466   :  { %v4405_v32 = vpop.f32.mrf.mxu0 }
 0x46a   :  { %v4392_v24 = vpop.f32.mrf.mxu3 }
 0x46b   :  { %v4393_v43 = vadd.f32 %v4392_v24, %v4380_v41 }
 0x46d   :  { %v4406_v39 = vadd.f32 %v4405_v32, %v4393_v43 }
 0x46e   :  { %v4407_v35 = vpop.f32.mrf.mxu0 }
 0x472   :  { %v4394_v27 = vpop.f32.mrf.mxu3 }
 0x474   :  { %v4418_v26 = vpop.f32.mrf.mxu1 }
 0x475   :  { %v4419_v42 = vadd.f32 %v4418_v26, %v3284_v34 }
 0x47c   :  { %v4420_v21 = vpop.f32.mrf.mxu1  ;;  %v4431_v28 = vpop.f32.mrf.mxu2 }
 0x47d   :  { %v4432_v51 = vadd.f32 %v4431_v28, %v4419_v42 }
 0x484   :  { %v4433_v36 = vpop.f32.mrf.mxu2 }
 0x486   :  { %v4457_v33 = vpop.f32.mrf.mxu0 }
 0x48a   :  { %v4444_v44 = vpop.f32.mrf.mxu3 }
 0x48b   :  { %v4445_v10 = vadd.f32 %v4444_v44, %v4432_v51 }
 0x48d   :  { %v4458_v45 = vadd.f32 %v4457_v33, %v4445_v10 }
 0x48e   :  { %v4459_v9 = vpop.f32.mrf.mxu0 }
 0x48f   :  { %v4647_v46 = vpack.c.bf16 %v4458_v45, %v4406_v39 }
 0x491   :  { %4650 = vst [vmem:[#allocation20 + $0x8] sm:$0xff] %v4647_v46 }
 0x492   :  { %v4446_v37 = vpop.f32.mrf.mxu3 }
 0x494   :  { %v4470_v30 = vpop.f32.mrf.mxu1 }
 0x495   :  { %v4471_v61 = vadd.f32 %v4470_v30, %v3285_v25 }
 0x49c   :  { %v4472_v47 = vpop.f32.mrf.mxu1  ;;  %v4483_v48 = vpop.f32.mrf.mxu2 }
 0x49d   :  { %v4484_v63 = vadd.f32 %v4483_v48, %v4471_v61 }
 0x4a4   :  { %v4485_v49 = vpop.f32.mrf.mxu2 }
 0x4a6   :  { %v4509_v50 = vpop.f32.mrf.mxu0 }
 0x4aa   :  { %v4496_v52 = vpop.f32.mrf.mxu3 }
 0x4ab   :  { %v4497_v12 = vadd.f32 %v4496_v52, %v4484_v63 }
 0x4ad   :  { %v4510_v3 = vadd.f32 %v4509_v50, %v4497_v12 }
 0x4ae   :  { %v4511_v53 = vpop.f32.mrf.mxu0 }
 0x4b2   :  { %v4498_v56 = vpop.f32.mrf.mxu3 }
 0x4b4   :  { %v4522_v55 = vpop.f32.mrf.mxu1 }
 0x4b5   :  { %v4523_v31 = vadd.f32 %v4522_v55, %v3286_v59 }
 0x4bc   :  { %v4524_v57 = vpop.f32.mrf.mxu1  ;;  %v4535_v58 = vpop.f32.mrf.mxu2 }
 0x4bd   :  { %v4536_v0 = vadd.f32 %v4535_v58, %v4523_v31 }
 0x4c4   :  { %v4537_v60 = vpop.f32.mrf.mxu2 }
 0x4c6   :  { %v4561_v62 = vpop.f32.mrf.mxu0 }
 0x4ca   :  { %v4548_v1 = vpop.f32.mrf.mxu3 }
 0x4cb   :  { %v4549_v2 = vadd.f32 %v4548_v1, %v4536_v0 }
 0x4cd   :  { %v4562_v4 = vadd.f32 %v4561_v62, %v4549_v2 }
 0x4ce   :  { %v4563_v6 = vpop.f32.mrf.mxu0 }
 0x4cf   :  { %v4648_v7 = vpack.c.bf16 %v4562_v4, %v4510_v3 }
 0x4d1   :  { %4651 = vst [vmem:[#allocation20 + $0x10] sm:$0xff] %v4648_v7 }
 0x4d2   :  { %v4550_v13 = vpop.f32.mrf.mxu3  ;;  %4664 = dma.vmem_to_hbm [thread:$0]  %s4660_s29, 384, %s4662_s8, [#allocation4]  }
 0x4d4   :  { %v4642_v11 = vpop.f32.mrf.mxu1 }
 0x4d5   :  { %v4643_v54 = vadd.f32 %v7516_v40, %v4642_v11 }
 0x4d7   :  { %v4652_v14 = vadd.f32 %v4643_v54, %v8072_v29 }
 0x4d9   :  { %4653 = vst [vmem:[#allocation21] sm:$0xff] %v4652_v14 }
 0x4da   :  { %4675 = dma.vmem_to_hbm [thread:$0]  %s4671_s22, 128, %s4673_s26, [#allocation22]  }
 0x4dc   :  { %v4644_v16 = vpop.f32.mrf.mxu1 }
 0x4dd   :  { %7842 = dma.done.wait [#allocation4], 384  }
 0x4de   :  { %7843 = vsyncadd [#allocation4], 4294966912 }
 0x4df   :  { %7844 = dma.done.wait [#allocation22], 128  }
 0x4e0   :  { %7845 = vsyncadd [#allocation22], 4294967168 }
 0x4e1   :  { %4684 = vsyncpa [#allocation3], 1 }
 0x4e2   :  { %4685 = vsyncpa [#allocation6], 1 }
 0x4e3   :  { %4686 = vsyncpa [#allocation9], 1 }
 0x4e4   :  { %4687 = vsyncpa [#allocation12], 1 }
 0x4e5   :  { %4688 = vsyncpa [#allocation15], 1 }
 0x4e6   :  { %4689 = vsyncpa [#allocation18], 1 }
 0x4e7   :  { %4690 = vsyncpa [#allocation4], 1 }
 0x4e8   :  { %4691 = vsyncpa [#allocation22], 1 }

</bundles_post_ra>
